<compile_context>
chip_gen: v5e
topology: v5e:2x2
jax: 0.10.0
libtpu: 0.0.40
codegen_flags: <defaults>
</compile_context>

<pallas_src>
import jax
import jax.numpy as jnp
from jax.experimental import pallas as pl
from jax.experimental.pallas import tpu as pltpu

LANE = 128
FUSED_MAX_NP = 2048          # padded-A bf16 <= 8 MiB -> resident fused path
VMEM_LIMIT = 48 * 1024 * 1024  # <= v7x physical 64 MiB; fine on v5e/v6e


def _round_up(x, m):
    return ((x + m - 1) // m) * m


def _pad_to(a, shape):
    pads = [(0, s - d) for d, s in zip(a.shape, shape)]
    return jnp.pad(a, pads)


def _pick_tile(np_, cap):
    """Largest multiple of LANE that divides np_ and is <= cap (>= LANE)."""
    best = LANE
    t = LANE
    limit = min(np_, cap)
    while t <= limit:
        if np_ % t == 0:
            best = t
        t += LANE
    return best


# --------------- Fused resident-A kernel (small / medium graphs) ---------------

def _gcn_fused_kernel(a_ref, x_ref, w1_ref, b1_ref, w2_ref, b2_ref, feat_ref):
    a = a_ref[...]                                            # bf16, resident
    # H1 = relu((A @ X) @ W1 + b1)
    ax = jnp.dot(a, x_ref[...], preferred_element_type=jnp.float32)
    h1 = jnp.dot(ax.astype(jnp.bfloat16), w1_ref[...],
                 preferred_element_type=jnp.float32) + b1_ref[...]
    h1 = jnp.maximum(h1, 0.0).astype(jnp.bfloat16)
    # features = (A @ H1) @ W2 + b2   (A reused from VMEM, H1 never hits HBM)
    ah = jnp.dot(a, h1, preferred_element_type=jnp.float32)
    feats = jnp.dot(ah.astype(jnp.bfloat16), w2_ref[...],
                    preferred_element_type=jnp.float32) + b2_ref[...]
    feat_ref[...] = feats.astype(feat_ref.dtype)


# --------------- Streaming two-pass kernels (large graphs) ---------------
# Pass 1: H1 = relu((A @ X) @ W1 + b1)

def _gcn_layer1_kernel(a_ref, x_ref, w1_ref, b1_ref, h1_ref, acc_ref):
    k = pl.program_id(1)

    @pl.when(k == 0)
    def _():
        acc_ref[...] = jnp.zeros_like(acc_ref)

    # Streamed N^2 matmul: accumulate A[i, k] @ X[k] in f32 (MXU, bf16 inputs).
    acc_ref[...] += jnp.dot(a_ref[...], x_ref[...],
                            preferred_element_type=jnp.float32)

    @pl.when(k == pl.num_programs(1) - 1)
    def _():
        ax = acc_ref[...].astype(jnp.bfloat16)
        h = jnp.dot(ax, w1_ref[...], preferred_element_type=jnp.float32)
        h = h + b1_ref[...]                      # bias added exactly once
        h1_ref[...] = jnp.maximum(h, 0.0).astype(h1_ref.dtype)


# Pass 2: feats = (A @ H1) @ W2 + b2

def _gcn_layer2_kernel(a_ref, h1_ref, w2_ref, b2_ref, feat_ref, acc_ref):
    k = pl.program_id(1)

    @pl.when(k == 0)
    def _():
        acc_ref[...] = jnp.zeros_like(acc_ref)

    acc_ref[...] += jnp.dot(a_ref[...], h1_ref[...],
                            preferred_element_type=jnp.float32)

    @pl.when(k == pl.num_programs(1) - 1)
    def _():
        ah = acc_ref[...].astype(jnp.bfloat16)
        feats = jnp.dot(ah, w2_ref[...],
                        preferred_element_type=jnp.float32) + b2_ref[...]
        feat_ref[...] = feats.astype(feat_ref.dtype)


# ------------------------------ wrapper ------------------------------

def prepare_adjacency(adj):
    """A_hat = D^-1 (A + I), zero-padded to a LANE multiple and cast to bf16.

    Called ONCE per graph (outside the per-forward path) so the forward pass
    never re-pays the N^2 pad + cast pass over A.
    """
    n = adj.shape[0]
    a = adj + jnp.eye(n, dtype=adj.dtype)
    deg = jnp.sum(a, axis=1, keepdims=True)
    a_hat = a / jnp.maximum(deg, 1.0)
    np_ = _round_up(n, LANE)
    return _pad_to(a_hat, (np_, np_)).astype(jnp.bfloat16)


def gnn_with_regression(a_hat_padded, n, x, params, *,
                        tile_m_cap=512, tile_k_cap=2048, force_two_pass=False):
    """Forward pass. a_hat_padded: output of prepare_adjacency (bf16, padded).

    Returns (output [n, reg_dim], features [n, out_dim]).
    """
    np_ = a_hat_padded.shape[0]
    assert a_hat_padded.shape == (np_, np_) and np_ % LANE == 0 and np_ >= n

    in_dim = x.shape[1]
    hidden = params["w1"].shape[1]
    out_dim = params["w2"].shape[1]

    din_p = _round_up(in_dim, LANE)
    h_p = _round_up(hidden, LANE)
    dout_p = _round_up(out_dim, LANE)

    # Cheap (N x d) padding / casts; the N^2 matrix is already prepared.
    x_p = _pad_to(x, (np_, din_p)).astype(jnp.bfloat16)
    w1_p = _pad_to(params["w1"], (din_p, h_p)).astype(jnp.bfloat16)
    b1_p = _pad_to(params["b1"], (1, h_p)).astype(jnp.float32)
    w2_p = _pad_to(params["w2"], (h_p, dout_p)).astype(jnp.bfloat16)
    b2_p = _pad_to(params["b2"], (1, dout_p)).astype(jnp.float32)

    if (np_ <= FUSED_MAX_NP) and not force_two_pass:
        # ---- Fused resident-A path: A read once, H1 stays in VMEM ----
        feat_p = pl.pallas_call(
            _gcn_fused_kernel,
            out_shape=jax.ShapeDtypeStruct((np_, dout_p), jnp.float32),
            grid=(1,),
            in_specs=[
                pl.BlockSpec((np_, np_), lambda i: (0, 0)),     # A (resident)
                pl.BlockSpec((np_, din_p), lambda i: (0, 0)),   # X
                pl.BlockSpec((din_p, h_p), lambda i: (0, 0)),   # W1
                pl.BlockSpec((1, h_p), lambda i: (0, 0)),       # b1
                pl.BlockSpec((h_p, dout_p), lambda i: (0, 0)),  # W2
                pl.BlockSpec((1, dout_p), lambda i: (0, 0)),    # b2
            ],
            out_specs=pl.BlockSpec((np_, dout_p), lambda i: (0, 0)),
            compiler_params=pltpu.CompilerParams(
                dimension_semantics=("arbitrary",),
                vmem_limit_bytes=VMEM_LIMIT,
            ),
        )(a_hat_padded, x_p, w1_p, b1_p, w2_p, b2_p)
    else:
        # ---- Streaming two-pass path (layer 2 needs ALL of H1) ----
        # tile_m capped at np_/2 so the parallel row axis shards across the
        # two v7x TensorCores; tile_k large to amortize step overhead and cut
        # X / H1 re-reads.
        cap_m = min(tile_m_cap, np_ // 2) if np_ >= 2 * LANE else np_
        tile_m = _pick_tile(np_, cap_m)
        tile_k = _pick_tile(np_, tile_k_cap)
        grid = (np_ // tile_m, np_ // tile_k)

        cparams = pltpu.CompilerParams(
            dimension_semantics=("parallel", "arbitrary"),
            vmem_limit_bytes=VMEM_LIMIT,
        )

        # Pass 1: H1 (kept bf16 for the pass-2 stream).
        h1_p = pl.pallas_call(
            _gcn_layer1_kernel,
            out_shape=jax.ShapeDtypeStruct((np_, h_p), jnp.bfloat16),
            grid=grid,
            in_specs=[
                pl.BlockSpec((tile_m, tile_k), lambda i, k: (i, k)),   # A tile
                pl.BlockSpec((tile_k, din_p), lambda i, k: (k, 0)),    # X rows
                pl.BlockSpec((din_p, h_p), lambda i, k: (0, 0)),       # W1
                pl.BlockSpec((1, h_p), lambda i, k: (0, 0)),           # b1
            ],
            out_specs=pl.BlockSpec((tile_m, h_p), lambda i, k: (i, 0)),
            scratch_shapes=[pltpu.VMEM((tile_m, din_p), jnp.float32)],
            compiler_params=cparams,
        )(a_hat_padded, x_p, w1_p, b1_p)

        # Pass 2: features.
        feat_p = pl.pallas_call(
            _gcn_layer2_kernel,
            out_shape=jax.ShapeDtypeStruct((np_, dout_p), jnp.float32),
            grid=grid,
            in_specs=[
                pl.BlockSpec((tile_m, tile_k), lambda i, k: (i, k)),   # A tile
                pl.BlockSpec((tile_k, h_p), lambda i, k: (k, 0)),      # H1 rows
                pl.BlockSpec((h_p, dout_p), lambda i, k: (0, 0)),      # W2
                pl.BlockSpec((1, dout_p), lambda i, k: (0, 0)),        # b2
            ],
            out_specs=pl.BlockSpec((tile_m, dout_p), lambda i, k: (i, 0)),
            scratch_shapes=[pltpu.VMEM((tile_m, h_p), jnp.float32)],
            compiler_params=cparams,
        )(a_hat_padded, h1_p, w2_p, b2_p)

    features = feat_p[:n, :out_dim]
    # Regression head as trivial XLA matmul on the returned features
    # (removing it from the kernel avoids a 128-lane-padded f32 store per row).
    output = features @ params["wr"].astype(jnp.float32) + params["br"].astype(jnp.float32)
    return output, features


def init_params(key, in_dim, hidden, out_dim, reg_dim):
    ks = jax.random.split(key, 6)
    s1 = 1.0 / jnp.sqrt(in_dim)
    s2 = 1.0 / jnp.sqrt(hidden)
    s3 = 1.0 / jnp.sqrt(out_dim)
    u = lambda k, shape, s: jax.random.uniform(k, shape, jnp.float32, -s, s)
    return {
        "w1": u(ks[0], (in_dim, hidden), s1),
        "b1": u(ks[1], (1, hidden), s1),
        "w2": u(ks[2], (hidden, out_dim), s2),
        "b2": u(ks[3], (1, out_dim), s2),
        # nn.Linear(out_dim, reg_dim): weight [reg_dim, out_dim] stored transposed
        "wr": u(ks[4], (out_dim, reg_dim), s3),
        "br": u(ks[5], (1, reg_dim), s3),
    }


if __name__ == "__main__":
    key = jax.random.PRNGKey(0)
    k_adj, k_x, k_p = jax.random.split(key, 3)

    # Small synthetic graph; N deliberately not a tile multiple to exercise
    # the padding path.  Feature dims match the toy GCN config.
    N, IN_DIM, HIDDEN, OUT_DIM, REG_DIM = 400, 16, 32, 32, 1

    adj_rand = jax.random.uniform(k_adj, (N, N), jnp.float32)
    adj = (adj_rand > 0.5).astype(jnp.float32)
    adj = jnp.maximum(adj, adj.T)                  # symmetric adjacency

    # Padded bf16 A_hat prepared ONCE per graph.
    a_hat_padded = prepare_adjacency(adj)

    x = jax.random.normal(k_x, (N, IN_DIM), jnp.float32)
    params = init_params(k_p, IN_DIM, HIDDEN, OUT_DIM, REG_DIM)

    # Fused resident-A path (default for this small graph).
    out_fused, feat_fused = gnn_with_regression(a_hat_padded, N, x, params)
    # Streaming two-pass path (used for large graphs) -- exercised here too.
    out_stream, feat_stream = gnn_with_regression(
        a_hat_padded, N, x, params, force_two_pass=True)
    jax.block_until_ready((out_fused, feat_fused, out_stream, feat_stream))

    # Plain-JAX f32 reference (PyTorch-equivalent math).
    a_full = adj + jnp.eye(N, dtype=jnp.float32)
    a_hat_ref = a_full / jnp.maximum(jnp.sum(a_full, axis=1, keepdims=True), 1.0)
    h1_ref = jnp.maximum(a_hat_ref @ x @ params["w1"] + params["b1"], 0.0)
    feats_ref = a_hat_ref @ h1_ref @ params["w2"] + params["b2"]
    out_ref = feats_ref @ params["wr"] + params["br"]

    for out, feats in ((out_fused, feat_fused), (out_stream, feat_stream)):
        assert out.shape == (N, REG_DIM) and feats.shape == (N, OUT_DIM)
        # bf16 streaming operands with f32 accumulation -> relaxed tolerance.
        assert jnp.allclose(feats, feats_ref, rtol=2e-2, atol=2e-2), "features mismatch"
        assert jnp.allclose(out, out_ref, rtol=2e-2, atol=2e-2), "output mismatch"

    print("KERNEL_OK")
</pallas_src>

<mosaic_0001>
module attributes {stable_mosaic.version = 11 : i64} {
  func.func @_gcn_fused_kernel(%arg0: i32, %arg1: memref<512x512xbf16, #tpu.memory_space<vmem>>, %arg2: memref<512x128xbf16, #tpu.memory_space<vmem>>, %arg3: memref<128x128xbf16, #tpu.memory_space<vmem>>, %arg4: memref<1x128xf32, #tpu.memory_space<vmem>>, %arg5: memref<128x128xbf16, #tpu.memory_space<vmem>>, %arg6: memref<1x128xf32, #tpu.memory_space<vmem>>, %arg7: memref<512x128xf32, #tpu.memory_space<vmem>>) attributes {dimension_semantics = [#tpu.dimension_semantics<arbitrary>], iteration_bounds = array<i64: 1>, scalar_prefetch = 0 : i64, scratch_operands = 0 : i64, tpu.core_type = #tpu.core_type<tc>, window_params = [{pipeline_mode = #tpu.pipeline_mode<synchronous>, transform_indices = @transform_0, window_bounds = array<i64: 512, 512>}, {pipeline_mode = #tpu.pipeline_mode<synchronous>, transform_indices = @transform_1, window_bounds = array<i64: 512, 128>}, {pipeline_mode = #tpu.pipeline_mode<synchronous>, transform_indices = @transform_2, window_bounds = array<i64: 128, 128>}, {pipeline_mode = #tpu.pipeline_mode<synchronous>, transform_indices = @transform_3, window_bounds = array<i64: 1, 128>}, {pipeline_mode = #tpu.pipeline_mode<synchronous>, transform_indices = @transform_4, window_bounds = array<i64: 128, 128>}, {pipeline_mode = #tpu.pipeline_mode<synchronous>, transform_indices = @transform_5, window_bounds = array<i64: 1, 128>}, {pipeline_mode = #tpu.pipeline_mode<synchronous>, transform_indices = @transform_6, window_bounds = array<i64: 512, 128>}]} {
    %c0 = arith.constant 0 : index
    %c0_0 = arith.constant 0 : index
    %0 = vector.load %arg1[%c0, %c0_0] : memref<512x512xbf16, #tpu.memory_space<vmem>>, vector<512x512xbf16>
    %c0_1 = arith.constant 0 : index
    %c0_2 = arith.constant 0 : index
    %1 = vector.load %arg2[%c0_1, %c0_2] : memref<512x128xbf16, #tpu.memory_space<vmem>>, vector<512x128xbf16>
    %cst = arith.constant dense<0.000000e+00> : vector<512x128xf32>
    %2 = tpu.matmul %0, %1, %cst {dimension_numbers = #tpu.dot_dimension_numbers<[1], [0], [0], [1], [0, 0, 1, 1], [], []>} : vector<512x512xbf16>, vector<512x128xbf16>, vector<512x128xf32> -> vector<512x128xf32>
    %3 = arith.truncf %2 : vector<512x128xf32> to vector<512x128xbf16>
    %c0_3 = arith.constant 0 : index
    %c0_4 = arith.constant 0 : index
    %4 = vector.load %arg3[%c0_3, %c0_4] : memref<128x128xbf16, #tpu.memory_space<vmem>>, vector<128x128xbf16>
    %cst_5 = arith.constant dense<0.000000e+00> : vector<512x128xf32>
    %5 = tpu.matmul %3, %4, %cst_5 {dimension_numbers = #tpu.dot_dimension_numbers<[1], [0], [0], [1], [0, 0, 1, 1], [], []>} : vector<512x128xbf16>, vector<128x128xbf16>, vector<512x128xf32> -> vector<512x128xf32>
    %c0_6 = arith.constant 0 : index
    %c0_7 = arith.constant 0 : index
    %6 = vector.load %arg4[%c0_6, %c0_7] : memref<1x128xf32, #tpu.memory_space<vmem>>, vector<1x128xf32>
    %7 = vector.broadcast %6 : vector<1x128xf32> to vector<512x128xf32>
    %8 = arith.addf %5, %7 : vector<512x128xf32>
    %cst_8 = arith.constant 0.000000e+00 : f32
    %9 = vector.broadcast %cst_8 : f32 to vector<512x128xf32>
    %10 = arith.maximumf %8, %9 : vector<512x128xf32>
    %11 = arith.truncf %10 : vector<512x128xf32> to vector<512x128xbf16>
    %cst_9 = arith.constant dense<0.000000e+00> : vector<512x128xf32>
    %12 = tpu.matmul %0, %11, %cst_9 {dimension_numbers = #tpu.dot_dimension_numbers<[1], [0], [0], [1], [0, 0, 1, 1], [], []>} : vector<512x512xbf16>, vector<512x128xbf16>, vector<512x128xf32> -> vector<512x128xf32>
    %13 = arith.truncf %12 : vector<512x128xf32> to vector<512x128xbf16>
    %c0_10 = arith.constant 0 : index
    %c0_11 = arith.constant 0 : index
    %14 = vector.load %arg5[%c0_10, %c0_11] : memref<128x128xbf16, #tpu.memory_space<vmem>>, vector<128x128xbf16>
    %cst_12 = arith.constant dense<0.000000e+00> : vector<512x128xf32>
    %15 = tpu.matmul %13, %14, %cst_12 {dimension_numbers = #tpu.dot_dimension_numbers<[1], [0], [0], [1], [0, 0, 1, 1], [], []>} : vector<512x128xbf16>, vector<128x128xbf16>, vector<512x128xf32> -> vector<512x128xf32>
    %c0_13 = arith.constant 0 : index
    %c0_14 = arith.constant 0 : index
    %16 = vector.load %arg6[%c0_13, %c0_14] : memref<1x128xf32, #tpu.memory_space<vmem>>, vector<1x128xf32>
    %17 = vector.broadcast %16 : vector<1x128xf32> to vector<512x128xf32>
    %18 = arith.addf %15, %17 : vector<512x128xf32>
    %c0_15 = arith.constant 0 : index
    %c0_16 = arith.constant 0 : index
    %19 = vector.load %arg7[%c0_15, %c0_16] : memref<512x128xf32, #tpu.memory_space<vmem>>, vector<512x128xf32>
    tpu.vector_store %arg7[%c0_15, %c0_16], %18 {strides = array<i32>} : memref<512x128xf32, #tpu.memory_space<vmem>>, vector<512x128xf32>,
    return
  }
  func.func @transform_0(%arg0: i32) -> (i32, i32) {
    %c0_i32 = arith.constant 0 : i32
    %c0_i32_0 = arith.constant 0 : i32
    %c0_i32_1 = arith.constant 0 : i32
    return %c0_i32, %c0_i32_0 : i32, i32
  }
  func.func @transform_1(%arg0: i32) -> (i32, i32) {
    %c0_i32 = arith.constant 0 : i32
    %c0_i32_0 = arith.constant 0 : i32
    %c0_i32_1 = arith.constant 0 : i32
    return %c0_i32, %c0_i32_0 : i32, i32
  }
  func.func @transform_2(%arg0: i32) -> (i32, i32) {
    %c0_i32 = arith.constant 0 : i32
    %c0_i32_0 = arith.constant 0 : i32
    %c0_i32_1 = arith.constant 0 : i32
    return %c0_i32, %c0_i32_0 : i32, i32
  }
  func.func @transform_3(%arg0: i32) -> (i32, i32) {
    %c0_i32 = arith.constant 0 : i32
    %c0_i32_0 = arith.constant 0 : i32
    %c0_i32_1 = arith.constant 0 : i32
    return %c0_i32, %c0_i32_0 : i32, i32
  }
  func.func @transform_4(%arg0: i32) -> (i32, i32) {
    %c0_i32 = arith.constant 0 : i32
    %c0_i32_0 = arith.constant 0 : i32
    %c0_i32_1 = arith.constant 0 : i32
    return %c0_i32, %c0_i32_0 : i32, i32
  }
  func.func @transform_5(%arg0: i32) -> (i32, i32) {
    %c0_i32 = arith.constant 0 : i32
    %c0_i32_0 = arith.constant 0 : i32
    %c0_i32_1 = arith.constant 0 : i32
    return %c0_i32, %c0_i32_0 : i32, i32
  }
  func.func @transform_6(%arg0: i32) -> (i32, i32) {
    %c0_i32 = arith.constant 0 : i32
    %c0_i32_0 = arith.constant 0 : i32
    %c0_i32_1 = arith.constant 0 : i32
    return %c0_i32, %c0_i32_0 : i32, i32
  }
}

</mosaic_0001>

<bundles_post_ra>
// kernel: tpu_custom_call.1
= control target key start
LH: loop header
LB: loop body
LE: loop exit
PB: predicated region body
PF: predicated region fallthrough
CT: control target
= control target key end

     0   :  { %11 = vsyncpa [#allocation3], 0  ;;  %s5653_s0 = inlined_call_operand.hbm [shape: bf16[512,512], index: 0, kind: input, shape index: {}]   ;;  %s5654_s1 = inlined_call_operand.hbm [shape: bf16[512,128], index: 1, kind: input, shape index: {}]   ;;  %s5655_s2 = inlined_call_operand.hbm [shape: bf16[128,128], index: 2, kind: input, shape index: {}]   ;;  %s5656_s3 = inlined_call_operand.vmem [shape: f32[1,128], index: 3, kind: input, shape index: {}]   ;;  %s5657_s4 = inlined_call_operand.hbm [shape: bf16[128,128], index: 4, kind: input, shape index: {}]   ;;  %s5658_s5 = inlined_call_operand.vmem [shape: f32[1,128], index: 5, kind: input, shape index: {}]   ;;  %s5659_s6 = inlined_call_operand.hbm [shape: f32[512,128], index: 6, kind: output, shape index: {}]  }
   0x1   :  { %12 = vsyncpa [#allocation6], 0 }
   0x2   :  { %13 = vsyncpa [#allocation9], 0  ;;  %s32_s23 = sshll.u32 %s5654_s1, 4  ;;  %s33_s23 = int_to_ptr.hbm [resolvable:$true] %s32_s23 }
   0x3   :  { %14 = vsyncpa [#allocation4], 0  ;;  %s4220_s24 = smov [#allocation5]   ;;  %s19_s28 = sshll.u32 %s5653_s0, 4  ;;  %s20_s28 = int_to_ptr.hbm [resolvable:$true] %s19_s28 }
   0x4   :  { %s34_s25 = sshll.u32 %s4220_s24, 4  ;;  %s4221_s29 = smov 64   ;;  %s35_s25 = int_to_ptr.vmem [resolvable:$true] %s34_s25 }
   0x5   :  { %s4222_s30 = smov 4   ;;  %s4223_s7 = smov [#allocation2]  }
   0x6   :  { %40 = dma.hbm_to_vmem [thread:$0]  %s33_s23, 4096, %s35_s25, [#allocation6], %s4221_s29, %s4221_s29, %s4222_s30  }
   0x7   :  { %s21_s8 = sshll.u32 %s4223_s7, 4  ;;  %s4224_s9 = smov 256   ;;  %s22_s8 = int_to_ptr.vmem [resolvable:$true] %s21_s8 }
   0x8   :  { %s4225_s10 = smov 16   ;;  %s45_s12 = sshll.u32 %s5655_s2, 4  ;;  %s46_s12 = int_to_ptr.hbm [resolvable:$true] %s45_s12 }
   0x9   :  { %27 = dma.hbm_to_vmem [thread:$0]  %s20_s28, 16384, %s22_s8, [#allocation3], %s4224_s9, %s4224_s9, %s4225_s10  }
   0xa   :  { %s4226_s13 = smov [#allocation7]   ;;  %s60_s16 = sshll.u32 %s5657_s4, 4  ;;  %s61_s16 = int_to_ptr.hbm [resolvable:$true] %s60_s16 }
   0xb   :  { %s47_s14 = sshll.u32 %s4226_s13, 4  ;;  %s4227_s17 = smov [#allocation8]   ;;  %s48_s14 = int_to_ptr.vmem [resolvable:$true] %s47_s14 }
   0xc   :  { %53 = dma.hbm_to_vmem [thread:$0]  %s46_s12, 1024, %s48_s14, [#allocation6], %s4221_s29, %s4221_s29, %s4222_s30  }
   0xd   :  { %s62_s18 = sshll.u32 %s4227_s17, 4  ;;  %s63_s18 = int_to_ptr.vmem [resolvable:$true] %s62_s18 }
   0xe   :  { %68 = dma.hbm_to_vmem [thread:$0]  %s61_s16, 1024, %s63_s18, [#allocation9], %s4221_s29, %s4221_s29, %s4222_s30  }
   0xf   :  { %4212 = dma.done.wait [#allocation3], 16384  }
  0x10   :  { %4213 = vsyncadd [#allocation3], 4294950912 }
  0x11   :  { %4214 = dma.done.wait [#allocation6], 5120  }
  0x12   :  { %4215 = vsyncadd [#allocation6], 4294962176 }
  0x13   :  { %4216 = dma.done.wait [#allocation9], 1024  }
  0x14   :  { %4217 = vsyncadd [#allocation9], 4294966272  ;;  %v4021_v0 = vld [vmem:[#allocation5 + $0x38] sm:$0xff]  ;;  %v4020_v2 = vld [vmem:[#allocation5 + $0x30] sm:$0xff]  ;;  %s3167_s25 = sshll.u32 %s5659_s6, 4  ;;  %s4229_s26 = smov 128   ;;  %s3168_s25 = int_to_ptr.hbm [resolvable:$true] %s3167_s25 }
  0x15   :  { %v4029_v1 = vld [vmem:[#allocation5 + $0x78] sm:$0xff]  ;;  %4062 = vmatpush.bf16.msra.mxu2 %v4021_v0  ;;  %v4028_v3 = vld [vmem:[#allocation5 + $0x70] sm:$0xff]  ;;  %1111 = vmatpush.bf16.msra.mxu0 %v4021_v0  ;;  %v4019_v4 = vld [vmem:[#allocation5 + $0x28] sm:$0xff]  ;;  %s4230_s27 = smov 8  }
  0x16   :  { %4070 = vmatpush.bf16.msra.mxu3 %v4029_v1  ;;  %1280 = vmatpush.bf16.msra.mxu1 %v4029_v1  ;;  %v4027_v5 = vld [vmem:[#allocation5 + $0x68] sm:$0xff]  ;;  %v4018_v6 = vld [vmem:[#allocation5 + $0x20] sm:$0xff]  ;;  %v4017_v8 = vld [vmem:[#allocation5 + $0x18] sm:$0xff] }
  0x17   :  { %v4026_v7 = vld [vmem:[#allocation5 + $0x60] sm:$0xff]  ;;  %v4025_v9 = vld [vmem:[#allocation5 + $0x58] sm:$0xff]  ;;  %v4016_v10 = vld [vmem:[#allocation5 + $0x10] sm:$0xff] }
  0x18   :  { %v4024_v11 = vld [vmem:[#allocation5 + $0x50] sm:$0xff]  ;;  %v4015_v12 = vld [vmem:[#allocation5 + $0x8] sm:$0xff]  ;;  %v4014_v14 = vld [vmem:[#allocation5] sm:$0xff] }
  0x19   :  { %4063 = vmatpush.bf16.msra.mxu2 %v4020_v2  ;;  %1112 = vmatpush.bf16.msra.mxu0 %v4020_v2  ;;  %v4023_v13 = vld [vmem:[#allocation5 + $0x48] sm:$0xff]  ;;  %v4022_v15 = vld [vmem:[#allocation5 + $0x40] sm:$0xff]  ;;  %v3952_v17 = vld [vmem:[#allocation2 + $0x20c] sm:$0xf0] }
  0x1a   :  { %4071 = vmatpush.bf16.msra.mxu3 %v4028_v3  ;;  %1281 = vmatpush.bf16.msra.mxu1 %v4028_v3  ;;  %v3440_v16 = vld [vmem:[#allocation2 + $0x200] sm:$0xf]  ;;  %v3950_v18 = vld [vmem:[#allocation2 + $0x204] sm:$0xf]  ;;  %v3442_v19 = vld [vmem:[#allocation2 + $0x210] sm:$0xf0] }
  0x1b   :  { %v4278_v20 = vor.u32 %v3952_v17, %v3440_v16  ;;  %v4280_v21 = vor.u32 %v3950_v18, %v3442_v19  ;;  %v3456_v22 = vld [vmem:[#allocation2 + $0x220] sm:$0xf]  ;;  %v3956_v23 = vld [vmem:[#allocation2 + $0x22c] sm:$0xf0]  ;;  %v3954_v24 = vld [vmem:[#allocation2 + $0x224] sm:$0xf] }
  0x1c   :  { %v3458_v25 = vld [vmem:[#allocation2 + $0x230] sm:$0xf0]  ;;  %v4284_v26 = vor.u32 %v3956_v23, %v3456_v22  ;;  %v3472_v28 = vld [vmem:[#allocation2 + $0x240] sm:$0xf]  ;;  %v3960_v29 = vld [vmem:[#allocation2 + $0x24c] sm:$0xf0] }
  0x1d   :  { %4064 = vmatpush.bf16.msra.mxu2 %v4019_v4  ;;  %1113 = vmatpush.bf16.msra.mxu0 %v4019_v4  ;;  %5781 = vst [vmem:[#allocation15_spill] sm:$0xff] %v4278_v20  ;;  %v4286_v27 = vor.u32 %v3954_v24, %v3458_v25  ;;  %v3958_v30 = vld [vmem:[#allocation2 + $0x244] sm:$0xf]  ;;  %v3474_v31 = vld [vmem:[#allocation2 + $0x250] sm:$0xf0]  ;;  %v4290_v32 = vor.u32 %v3960_v29, %v3472_v28 }
  0x1e   :  { %4072 = vmatpush.bf16.msra.mxu3 %v4027_v5  ;;  %1282 = vmatpush.bf16.msra.mxu1 %v4027_v5  ;;  %5782 = vst [vmem:[#allocation16_spill] sm:$0xff] %v4280_v21  ;;  %v4292_v33 = vor.u32 %v3958_v30, %v3474_v31  ;;  %v3488_v34 = vld [vmem:[#allocation2 + $0x260] sm:$0xf]  ;;  %v3964_v35 = vld [vmem:[#allocation2 + $0x26c] sm:$0xf0] }
  0x1f   :  { %5783 = vst [vmem:[#allocation17_spill] sm:$0xff] %v4284_v26  ;;  %v3962_v36 = vld [vmem:[#allocation2 + $0x264] sm:$0xf]  ;;  %v3490_v37 = vld [vmem:[#allocation2 + $0x270] sm:$0xf0]  ;;  %v4296_v38 = vor.u32 %v3964_v35, %v3488_v34 }
  0x20   :  { %5784 = vst [vmem:[#allocation18_spill] sm:$0xff] %v4286_v27  ;;  %v4298_v39 = vor.u32 %v3962_v36, %v3490_v37  ;;  %v3504_v40 = vld [vmem:[#allocation2 + $0x280] sm:$0xf]  ;;  %v3968_v41 = vld [vmem:[#allocation2 + $0x28c] sm:$0xf0] }
  0x21   :  { %4065 = vmatpush.bf16.msra.mxu2 %v4018_v6  ;;  %1114 = vmatpush.bf16.msra.mxu0 %v4018_v6  ;;  %5785 = vst [vmem:[#allocation19_spill] sm:$0xff] %v4290_v32  ;;  %v3966_v42 = vld [vmem:[#allocation2 + $0x284] sm:$0xf]  ;;  %v3506_v43 = vld [vmem:[#allocation2 + $0x290] sm:$0xf0]  ;;  %v4302_v44 = vor.u32 %v3968_v41, %v3504_v40 }
  0x22   :  { %4073 = vmatpush.bf16.msra.mxu3 %v4026_v7  ;;  %1283 = vmatpush.bf16.msra.mxu1 %v4026_v7  ;;  %5786 = vst [vmem:[#allocation20_spill] sm:$0xff] %v4292_v33  ;;  %v4304_v45 = vor.u32 %v3966_v42, %v3506_v43  ;;  %v3520_v46 = vld [vmem:[#allocation2 + $0x2a0] sm:$0xf]  ;;  %v3972_v47 = vld [vmem:[#allocation2 + $0x2ac] sm:$0xf0] }
  0x23   :  { %5787 = vst [vmem:[#allocation21_spill] sm:$0xff] %v4296_v38  ;;  %v3970_v48 = vld [vmem:[#allocation2 + $0x2a4] sm:$0xf]  ;;  %v3522_v49 = vld [vmem:[#allocation2 + $0x2b0] sm:$0xf0]  ;;  %v4308_v50 = vor.u32 %v3972_v47, %v3520_v46 }
  0x24   :  { %5788 = vst [vmem:[#allocation22_spill] sm:$0xff] %v4298_v39  ;;  %v4310_v51 = vor.u32 %v3970_v48, %v3522_v49  ;;  %v3536_v52 = vld [vmem:[#allocation2 + $0x2c0] sm:$0xf]  ;;  %v3976_v53 = vld [vmem:[#allocation2 + $0x2cc] sm:$0xf0] }
  0x25   :  { %4066 = vmatpush.bf16.msra.mxu2 %v4017_v8  ;;  %1115 = vmatpush.bf16.msra.mxu0 %v4017_v8  ;;  %5789 = vst [vmem:[#allocation23_spill] sm:$0xff] %v4302_v44  ;;  %v3974_v54 = vld [vmem:[#allocation2 + $0x2c4] sm:$0xf]  ;;  %v3538_v55 = vld [vmem:[#allocation2 + $0x2d0] sm:$0xf0]  ;;  %v4314_v56 = vor.u32 %v3976_v53, %v3536_v52 }
  0x26   :  { %4074 = vmatpush.bf16.msra.mxu3 %v4025_v9  ;;  %1284 = vmatpush.bf16.msra.mxu1 %v4025_v9  ;;  %5790 = vst [vmem:[#allocation24_spill] sm:$0xff] %v4304_v45  ;;  %v4316_v57 = vor.u32 %v3974_v54, %v3538_v55  ;;  %v3184_v58 = vld [vmem:[#allocation2] sm:$0xf]  ;;  %v3888_v59 = vld [vmem:[#allocation2 + $0xc] sm:$0xf0] }
  0x27   :  { %5791 = vst [vmem:[#allocation25_spill] sm:$0xff] %v4308_v50  ;;  %v3886_v60 = vld [vmem:[#allocation2 + $0x4] sm:$0xf]  ;;  %v4320_v61 = vor.u32 %v3888_v59, %v3184_v58  ;;  %v3186_v62 = vld [vmem:[#allocation2 + $0x10] sm:$0xf0] }
  0x28   :  { %5792 = vst [vmem:[#allocation26_spill] sm:$0xff] %v4310_v51  ;;  %v4322_v63 = vor.u32 %v3886_v60, %v3186_v62  ;;  %v3552_v0 = vld [vmem:[#allocation2 + $0x2e0] sm:$0xf]  ;;  %v3980_v1 = vld [vmem:[#allocation2 + $0x2ec] sm:$0xf0] }
  0x29   :  { %4067 = vmatpush.bf16.msra.mxu2 %v4016_v10  ;;  %1116 = vmatpush.bf16.msra.mxu0 %v4016_v10  ;;  %5793 = vst [vmem:[#allocation27_spill] sm:$0xff] %v4314_v56  ;;  %v3978_v2 = vld [vmem:[#allocation2 + $0x2e4] sm:$0xf]  ;;  %v3554_v3 = vld [vmem:[#allocation2 + $0x2f0] sm:$0xf0]  ;;  %v4326_v4 = vor.u32 %v3980_v1, %v3552_v0 }
  0x2a   :  { %4075 = vmatpush.bf16.msra.mxu3 %v4024_v11  ;;  %1285 = vmatpush.bf16.msra.mxu1 %v4024_v11  ;;  %5794 = vst [vmem:[#allocation28_spill] sm:$0xff] %v4316_v57  ;;  %v4328_v5 = vor.u32 %v3978_v2, %v3554_v3  ;;  %v3200_v6 = vld [vmem:[#allocation2 + $0x20] sm:$0xf]  ;;  %v3892_v7 = vld [vmem:[#allocation2 + $0x2c] sm:$0xf0] }
  0x2b   :  { %5795 = vst [vmem:[#allocation29_spill] sm:$0xff] %v4322_v63  ;;  %v3890_v8 = vld [vmem:[#allocation2 + $0x24] sm:$0xf]  ;;  %v4332_v9 = vor.u32 %v3892_v7, %v3200_v6  ;;  %v3202_v10 = vld [vmem:[#allocation2 + $0x30] sm:$0xf0] }
  0x2c   :  { %5796 = vst [vmem:[#allocation30_spill] sm:$0xff] %v4326_v4  ;;  %v4334_v11 = vor.u32 %v3890_v8, %v3202_v10  ;;  %v3216_v23 = vld [vmem:[#allocation2 + $0x40] sm:$0xf]  ;;  %v3896_v24 = vld [vmem:[#allocation2 + $0x4c] sm:$0xf0] }
  0x2d   :  { %4068 = vmatpush.bf16.msra.mxu2 %v4015_v12  ;;  %1117 = vmatpush.bf16.msra.mxu0 %v4015_v12  ;;  %5797 = vst [vmem:[#allocation31_spill] sm:$0xff] %v4328_v5  ;;  %v3568_v12 = vld [vmem:[#allocation2 + $0x300] sm:$0xf]  ;;  %v3894_v25 = vld [vmem:[#allocation2 + $0x44] sm:$0xf]  ;;  %v4346_v28 = vor.u32 %v3896_v24, %v3216_v23 }
  0x2e   :  { %4076 = vmatpush.bf16.msra.mxu3 %v4023_v13  ;;  %1286 = vmatpush.bf16.msra.mxu1 %v4023_v13  ;;  %5798 = vst [vmem:[#allocation32_spill] sm:$0xff] %v4334_v11  ;;  %v3984_v13 = vld [vmem:[#allocation2 + $0x30c] sm:$0xf0]  ;;  %v3218_v29 = vld [vmem:[#allocation2 + $0x50] sm:$0xf0] }
  0x2f   :  { %v4338_v16 = vor.u32 %v3984_v13, %v3568_v12  ;;  %v4348_v30 = vor.u32 %v3894_v25, %v3218_v29  ;;  %v3584_v31 = vld [vmem:[#allocation2 + $0x320] sm:$0xf]  ;;  %v3988_v34 = vld [vmem:[#allocation2 + $0x32c] sm:$0xf0]  ;;  %v3986_v35 = vld [vmem:[#allocation2 + $0x324] sm:$0xf] }
  0x30   :  { %v3586_v36 = vld [vmem:[#allocation2 + $0x330] sm:$0xf0]  ;;  %v4354_v42 = vor.u32 %v3988_v34, %v3584_v31  ;;  %v3232_v49 = vld [vmem:[#allocation2 + $0x60] sm:$0xf]  ;;  %v3900_v52 = vld [vmem:[#allocation2 + $0x6c] sm:$0xf0] }
  0x31   :  { %4069 = vmatpush.bf16.msra.mxu2 %v4014_v14  ;;  %1118 = vmatpush.bf16.msra.mxu0 %v4014_v14  ;;  %v3982_v14 = vld [vmem:[#allocation2 + $0x304] sm:$0xf]  ;;  %5799 = vst [vmem:[#allocation33_spill] sm:$0xff] %v4338_v16  ;;  %v4356_v43 = vor.u32 %v3986_v35, %v3586_v36  ;;  %v4362_v54 = vor.u32 %v3900_v52, %v3232_v49  ;;  %v3234_v55 = vld [vmem:[#allocation2 + $0x70] sm:$0xf0] }
  0x32   :  { %4077 = vmatpush.bf16.msra.mxu3 %v4022_v15  ;;  %1287 = vmatpush.bf16.msra.mxu1 %v4022_v15  ;;  %v3570_v15 = vld [vmem:[#allocation2 + $0x310] sm:$0xf0]  ;;  %5801 = vst [vmem:[#allocation35_spill] sm:$0xff] %v4348_v30  ;;  %v3898_v53 = vld [vmem:[#allocation2 + $0x64] sm:$0xf] }
  0x33   :  { %v4340_v17 = vor.u32 %v3982_v14, %v3570_v15  ;;  %5802 = vst [vmem:[#allocation36_spill] sm:$0xff] %v4354_v42  ;;  %v4364_v58 = vor.u32 %v3898_v53, %v3234_v55  ;;  %v3600_v59 = vld [vmem:[#allocation2 + $0x340] sm:$0xf]  ;;  %v3992_v60 = vld [vmem:[#allocation2 + $0x34c] sm:$0xf0] }
  0x34   :  { %1199 = vmatmul.bf16.vlgmr.msra.gmra.mxu2 %v4278_v20  ;;  %1119 = vmatmul.bf16.vlgmr.msra.gmra.mxu0 %v4320_v61  ;;  %5803 = vst [vmem:[#allocation37_spill] sm:$0xff] %v4356_v43  ;;  %v3990_v62 = vld [vmem:[#allocation2 + $0x344] sm:$0xf]  ;;  %v3602_v0 = vld [vmem:[#allocation2 + $0x350] sm:$0xf0]  ;;  %v4370_v6 = vor.u32 %v3992_v60, %v3600_v59 }
  0x35   :  { %1368 = vmatmul.bf16.vlgmr.msra.gmra.mxu3 %v4280_v21  ;;  %1288 = vmatmul.bf16.vlgmr.msra.gmra.mxu1 %v4322_v63  ;;  %5800 = vst [vmem:[#allocation34_spill] sm:$0xff] %v4340_v17  ;;  %v4372_v7 = vor.u32 %v3990_v62, %v3602_v0  ;;  %v3248_v13 = vld [vmem:[#allocation2 + $0x80] sm:$0xf]  ;;  %v3904_v14 = vld [vmem:[#allocation2 + $0x8c] sm:$0xf0] }
  0x36   :  { %5804 = vst [vmem:[#allocation38_spill] sm:$0xff] %v4364_v58  ;;  %v3902_v15 = vld [vmem:[#allocation2 + $0x84] sm:$0xf]  ;;  %v3616_v24 = vld [vmem:[#allocation2 + $0x360] sm:$0xf] }
  0x37   :  { %5805 = vst [vmem:[#allocation39_spill] sm:$0xff] %v4370_v6  ;;  %v3996_v25 = vld [vmem:[#allocation2 + $0x36c] sm:$0xf0]  ;;  %v3994_v29 = vld [vmem:[#allocation2 + $0x364] sm:$0xf] }
  0x38   :  { %5806 = vst [vmem:[#allocation40_spill] sm:$0xff] %v4372_v7  ;;  %v3618_v31 = vld [vmem:[#allocation2 + $0x370] sm:$0xf0]  ;;  %v3264_v52 = vld [vmem:[#allocation2 + $0xa0] sm:$0xf] }
  0x39   :  { %v3908_v53 = vld [vmem:[#allocation2 + $0xac] sm:$0xf0]  ;;  %v3906_v55 = vld [vmem:[#allocation2 + $0xa4] sm:$0xf]  ;;  %v3266_v60 = vld [vmem:[#allocation2 + $0xb0] sm:$0xf0] }
  0x3a   :  { %v4394_v59 = vor.u32 %v3908_v53, %v3264_v52  ;;  %v4396_v62 = vor.u32 %v3906_v55, %v3266_v60  ;;  %v3632_v0 = vld [vmem:[#allocation2 + $0x380] sm:$0xf]  ;;  %v4043_v52 = vld [vmem:[#allocation5 + $0xe8] sm:$0xff]  ;;  %v3912_v55 = vld [vmem:[#allocation2 + $0xcc] sm:$0xf0] }
  0x3b   :  { %v3280_v53 = vld [vmem:[#allocation2 + $0xc0] sm:$0xf]  ;;  %v3910_v60 = vld [vmem:[#allocation2 + $0xc4] sm:$0xf]  ;;  %v3923_v63 = vld [vmem:[#allocation2 + $0x12c] sm:$0xf] }
  0x3c   :  { %5810 = vst [vmem:[#allocation44_spill] sm:$0xff] %v4396_v62  ;;  %v3344_v21 = vld [vmem:[#allocation2 + $0x140] sm:$0xf] }
  0x44   :  { %1204 = vmatmul.bf16.gmra.mxu2 %v4284_v26  ;;  %1124 = vmatmul.bf16.gmra.mxu0 %v4332_v9 }
  0x45   :  { %1373 = vmatmul.bf16.gmra.mxu3 %v4286_v27  ;;  %1293 = vmatmul.bf16.gmra.mxu1 %v4334_v11  ;;  %v3424_v11 = vld [vmem:[#allocation2 + $0x1e0] sm:$0xf] }
  0x54   :  { %1209 = vmatmul.bf16.gmra.mxu2 %v4290_v32  ;;  %1129 = vmatmul.bf16.gmra.mxu0 %v4346_v28 }
  0x55   :  { %1378 = vmatmul.bf16.gmra.mxu3 %v4292_v33  ;;  %1298 = vmatmul.bf16.gmra.mxu1 %v4348_v30 }
  0x64   :  { %1214 = vmatmul.bf16.gmra.mxu2 %v4296_v38  ;;  %1134 = vmatmul.bf16.gmra.mxu0 %v4362_v54 }
  0x65   :  { %1383 = vmatmul.bf16.gmra.mxu3 %v4298_v39  ;;  %1303 = vmatmul.bf16.gmra.mxu1 %v4364_v58  ;;  %v3328_v39 = vld [vmem:[#allocation2 + $0x120] sm:$0xf] }
  0x74   :  { %1219 = vmatmul.bf16.gmra.mxu2 %v4302_v44 }
  0x75   :  { %1388 = vmatmul.bf16.gmra.mxu3 %v4304_v45 }
  0x84   :  { %1224 = vmatmul.bf16.gmra.mxu2 %v4308_v50 }
  0x85   :  { %1393 = vmatmul.bf16.gmra.mxu3 %v4310_v51  ;;  %v3918_v51 = vld [vmem:[#allocation2 + $0x104] sm:$0xf] }
  0x94   :  { %1229 = vmatmul.bf16.gmra.mxu2 %v4314_v56 }
  0x95   :  { %1398 = vmatmul.bf16.gmra.mxu3 %v4316_v57  ;;  %v3920_v57 = vld [vmem:[#allocation2 + $0x10c] sm:$0xf0] }
  0xa4   :  { %1234 = vmatmul.bf16.gmra.mxu2 %v4326_v4 }
  0xa5   :  { %1403 = vmatmul.bf16.gmra.mxu3 %v4328_v5  ;;  %v3312_v5 = vld [vmem:[#allocation2 + $0x100] sm:$0xf] }
  0xb4   :  { %1239 = vmatmul.bf16.gmra.mxu2 %v4338_v16  ;;  %v3893_v16 = vld [vmem:[#allocation2 + $0x34] sm:$0xf0] }
  0xb5   :  { %1408 = vmatmul.bf16.gmra.mxu3 %v4340_v17 }
  0xb7   :  { %v1200_v18 = vpop.f32.mrf.mxu2 }
  0xb8   :  { %v1369_v19 = vpop.f32.mrf.mxu3 }
  0xb9   :  { %v4344_v22 = vadd.f32 %v1369_v19, %v1200_v18  ;;  %v4378_v18 = vor.u32 %v3904_v14, %v3248_v13  ;;  %v3250_v19 = vld [vmem:[#allocation2 + $0x90] sm:$0xf0] }
  0xba   :  { %v4380_v23 = vor.u32 %v3902_v15, %v3250_v19 }
  0xbb   :  { %1139 = vmatmul.bf16.gmra.mxu0 %v4378_v18 }
  0xbc   :  { %5807 = vst [vmem:[#allocation41_spill] sm:$0xff] %v4380_v23  ;;  %1308 = vmatmul.bf16.gmra.mxu1 %v4380_v23 }
  0xbf   :  { %v1202_v37 = vpop.f32.mrf.mxu2 }
  0xc0   :  { %v1371_v40 = vpop.f32.mrf.mxu3 }
  0xc1   :  { %v4352_v41 = vadd.f32 %v1371_v40, %v1202_v37  ;;  %v4386_v37 = vor.u32 %v3996_v25, %v3616_v24  ;;  %v4388_v40 = vor.u32 %v3994_v29, %v3618_v31  ;;  %v4037_v24 = vld [vmem:[#allocation5 + $0xb8] sm:$0xff] }
  0xc2   :  { %v4045_v25 = vld [vmem:[#allocation5 + $0xf8] sm:$0xff]  ;;  %1449 = vmatpush.bf16.msrb.mxu2 %v4037_v24  ;;  %v3650_v24 = vld [vmem:[#allocation2 + $0x3b0] sm:$0xf0] }
  0xc3   :  { %5808 = vst [vmem:[#allocation42_spill] sm:$0xff] %v4386_v37  ;;  %1618 = vmatpush.bf16.msrb.mxu3 %v4045_v25 }
  0xc4   :  { %1244 = vmatmul.bf16.gmra.mxu2 %v4354_v42  ;;  %5809 = vst [vmem:[#allocation43_spill] sm:$0xff] %v4388_v40 }
  0xc5   :  { %1413 = vmatmul.bf16.gmra.mxu3 %v4356_v43  ;;  %v4038_v43 = vld [vmem:[#allocation5 + $0xc0] sm:$0xff] }
  0xc7   :  { %v1205_v46 = vpop.f32.mrf.mxu2 }
  0xc8   :  { %v1374_v47 = vpop.f32.mrf.mxu3 }
  0xc9   :  { %v4360_v48 = vadd.f32 %v1374_v47, %v1205_v46 }
  0xcb   :  { %1144 = vmatmul.bf16.gmra.mxu0 %v4394_v59 }
  0xcc   :  { %1313 = vmatmul.bf16.gmra.mxu1 %v4396_v62  ;;  %v3940_v62 = vld [vmem:[#allocation2 + $0x1ac] sm:$0xf0] }
  0xcf   :  { %v1207_v1 = vpop.f32.mrf.mxu2 }
  0xd0   :  { %v1376_v2 = vpop.f32.mrf.mxu3 }
  0xd1   :  { %v4368_v3 = vadd.f32 %v1376_v2, %v1207_v1  ;;  %v4000_v1 = vld [vmem:[#allocation2 + $0x38c] sm:$0xf0]  ;;  %v3998_v2 = vld [vmem:[#allocation2 + $0x384] sm:$0xf] }
  0xd2   :  { %v4402_v15 = vor.u32 %v4000_v1, %v3632_v0  ;;  %v3282_v0 = vld [vmem:[#allocation2 + $0xd0] sm:$0xf0]  ;;  %v4410_v1 = vor.u32 %v3912_v55, %v3280_v53 }
  0xd4   :  { %1249 = vmatmul.bf16.gmra.mxu2 %v4370_v6  ;;  %5811 = vst [vmem:[#allocation45_spill] sm:$0xff] %v4402_v15 }
  0xd5   :  { %1418 = vmatmul.bf16.gmra.mxu3 %v4372_v7  ;;  %5813 = vst [vmem:[#allocation47_spill] sm:$0xff] %v4410_v1 }
  0xd7   :  { %v1210_v8 = vpop.f32.mrf.mxu2 }
  0xd8   :  { %v1379_v10 = vpop.f32.mrf.mxu3 }
  0xd9   :  { %v4376_v12 = vadd.f32 %v1379_v10, %v1210_v8  ;;  %v3634_v8 = vld [vmem:[#allocation2 + $0x390] sm:$0xf0] }
  0xda   :  { %v4404_v19 = vor.u32 %v3998_v2, %v3634_v8  ;;  %v4412_v2 = vor.u32 %v3910_v60, %v3282_v0  ;;  %v3648_v8 = vld [vmem:[#allocation2 + $0x3a0] sm:$0xf]  ;;  %v4033_v60 = vld [vmem:[#allocation5 + $0x98] sm:$0xff] }
  0xdb   :  { %1149 = vmatmul.bf16.gmra.mxu0 %v4410_v1  ;;  %v4041_v0 = vld [vmem:[#allocation5 + $0xd8] sm:$0xff] }
  0xdc   :  { %5812 = vst [vmem:[#allocation46_spill] sm:$0xff] %v4404_v19  ;;  %1318 = vmatmul.bf16.gmra.mxu1 %v4412_v2 }
  0xdd   :  { %5814 = vst [vmem:[#allocation48_spill] sm:$0xff] %v4412_v2  ;;  %v3392_v2 = vld [vmem:[#allocation2 + $0x1a0] sm:$0xf] }
  0xdf   :  { %v1212_v34 = vpop.f32.mrf.mxu2 }
  0xe0   :  { %v1381_v35 = vpop.f32.mrf.mxu3 }
  0xe1   :  { %v4384_v36 = vadd.f32 %v1381_v35, %v1212_v34  ;;  %v4036_v34 = vld [vmem:[#allocation5 + $0xb0] sm:$0xff] }
  0xe2   :  { %v4044_v35 = vld [vmem:[#allocation5 + $0xf0] sm:$0xff]  ;;  %1450 = vmatpush.bf16.msrb.mxu2 %v4036_v34  ;;  %v4042_v34 = vld [vmem:[#allocation5 + $0xe0] sm:$0xff] }
  0xe3   :  { %1619 = vmatpush.bf16.msrb.mxu3 %v4044_v35 }
  0xe4   :  { %1254 = vmatmul.bf16.gmra.mxu2 %v4386_v37 }
  0xe5   :  { %1423 = vmatmul.bf16.gmra.mxu3 %v4388_v40  ;;  %v4040_v40 = vld [vmem:[#allocation5 + $0xd0] sm:$0xff] }
  0xe7   :  { %v1215_v46 = vpop.f32.mrf.mxu2  ;;  %1620 = vmatpush.bf16.msrb.mxu3 %v4043_v52 }
  0xe8   :  { %v1384_v47 = vpop.f32.mrf.mxu3 }
  0xe9   :  { %v4392_v49 = vadd.f32 %v1384_v47, %v1215_v46  ;;  %v4035_v47 = vld [vmem:[#allocation5 + $0xa8] sm:$0xff] }
  0xea   :  { %1451 = vmatpush.bf16.msrb.mxu2 %v4035_v47 }
  0xeb   :  { %1621 = vmatpush.bf16.msrb.mxu3 %v4042_v34 }
  0xef   :  { %v1217_v10 = vpop.f32.mrf.mxu2  ;;  %1622 = vmatpush.bf16.msrb.mxu3 %v4041_v0  ;;  %v4008_v0 = vld [vmem:[#allocation2 + $0x3cc] sm:$0xf0] }
  0xf0   :  { %v1386_v13 = vpop.f32.mrf.mxu3 }
  0xf1   :  { %v4400_v14 = vadd.f32 %v1386_v13, %v1217_v10  ;;  %v4004_v10 = vld [vmem:[#allocation2 + $0x3ac] sm:$0xf0]  ;;  %v4002_v13 = vld [vmem:[#allocation2 + $0x3a4] sm:$0xf] }
  0xf2   :  { %v4418_v53 = vor.u32 %v4004_v10, %v3648_v8  ;;  %v4420_v55 = vor.u32 %v4002_v13, %v3650_v24  ;;  %v4031_v8 = vld [vmem:[#allocation5 + $0x88] sm:$0xff]  ;;  %v3296_v13 = vld [vmem:[#allocation2 + $0xe0] sm:$0xf]  ;;  %v3916_v24 = vld [vmem:[#allocation2 + $0xec] sm:$0xf0] }
  0xf3   :  { %v4039_v10 = vld [vmem:[#allocation5 + $0xc8] sm:$0xff]  ;;  %1623 = vmatpush.bf16.msrb.mxu3 %v4040_v40  ;;  %v4426_v34 = vor.u32 %v3916_v24, %v3296_v13  ;;  %v4030_v40 = vld [vmem:[#allocation5 + $0x80] sm:$0xff] }
  0xf4   :  { %1259 = vmatmul.bf16.gmra.mxu2 %v4402_v15  ;;  %5815 = vst [vmem:[#allocation49_spill] sm:$0xff] %v4418_v53 }
  0xf5   :  { %1428 = vmatmul.bf16.gmra.mxu3 %v4404_v19  ;;  %5816 = vst [vmem:[#allocation50_spill] sm:$0xff] %v4420_v55  ;;  %v4032_v19 = vld [vmem:[#allocation5 + $0x90] sm:$0xff]  ;;  %1154 = vmatmul.bf16.gmra.mxu0 %v4426_v34 }
  0xf6   :  { %5817 = vst [vmem:[#allocation51_spill] sm:$0xff] %v4426_v34  ;;  %v3352_v34 = vld [vmem:[#allocation2 + $0x148] sm:$0xf] }
  0xf7   :  { %v1220_v29 = vpop.f32.mrf.mxu2  ;;  %1624 = vmatpush.bf16.msrb.mxu3 %v4039_v10  ;;  %v1120_v10 = vpop.f32.mrf.mxu0 }
  0xf8   :  { %v1389_v31 = vpop.f32.mrf.mxu3 }
  0xf9   :  { %v4408_v46 = vadd.f32 %v1389_v31, %v1220_v29  ;;  %v4034_v31 = vld [vmem:[#allocation5 + $0xa0] sm:$0xff] }
  0xfa   :  { %1452 = vmatpush.bf16.msrb.mxu2 %v4034_v31  ;;  %v3298_v31 = vld [vmem:[#allocation2 + $0xf0] sm:$0xf0] }
  0xfb   :  { %1625 = vmatpush.bf16.msrb.mxu3 %v4038_v43  ;;  %v3680_v43 = vld [vmem:[#allocation2 + $0x3e0] sm:$0xf] }
  0xfe   :  { %1453 = vmatpush.bf16.msrb.mxu2 %v4033_v60  ;;  %v3664_v60 = vld [vmem:[#allocation2 + $0x3c0] sm:$0xf] }
  0xff   :  { %v1222_v25 = vpop.f32.mrf.mxu2  ;;  %v4434_v13 = vor.u32 %v4008_v0, %v3664_v60  ;;  %v3314_v60 = vld [vmem:[#allocation2 + $0x110] sm:$0xf0] }
 0x100   :  { %v1391_v29 = vpop.f32.mrf.mxu3 }
 0x101   :  { %v4416_v35 = vadd.f32 %v1391_v29, %v1222_v25  ;;  %v3914_v29 = vld [vmem:[#allocation2 + $0xe4] sm:$0xf]  ;;  %5819 = vst [vmem:[#allocation53_spill] sm:$0xff] %v4434_v13 }
 0x102   :  { %1454 = vmatpush.bf16.msrb.mxu2 %v4032_v19  ;;  %v4428_v7 = vor.u32 %v3914_v29, %v3298_v31 }
 0x104   :  { %1264 = vmatmul.bf16.gmra.mxu2 %v4418_v53  ;;  %5818 = vst [vmem:[#allocation52_spill] sm:$0xff] %v4428_v7  ;;  %1323 = vmatmul.bf16.gmra.mxu1 %v4428_v7 }
 0x105   :  { %1433 = vmatmul.bf16.gmra.mxu3 %v4420_v55 }
 0x106   :  { %1455 = vmatpush.bf16.msrb.mxu2 %v4031_v8 }
 0x107   :  { %v1225_v47 = vpop.f32.mrf.mxu2 }
 0x108   :  { %v1394_v52 = vpop.f32.mrf.mxu3 }
 0x109   :  { %v4424_v25 = vadd.f32 %v1394_v52, %v1225_v47  ;;  %v4006_v47 = vld [vmem:[#allocation2 + $0x3c4] sm:$0xf]  ;;  %v3666_v52 = vld [vmem:[#allocation2 + $0x3d0] sm:$0xf0] }
 0x10a   :  { %v4436_v24 = vor.u32 %v4006_v47, %v3666_v52  ;;  %1456 = vmatpush.bf16.msrb.mxu2 %v4030_v40  ;;  %v4446_v47 = vor.u32 %v3918_v51, %v3314_v60  ;;  %v4012_v52 = vld [vmem:[#allocation2 + $0x3ec] sm:$0xf0]  ;;  %v4010_v40 = vld [vmem:[#allocation2 + $0x3e4] sm:$0xf] }
 0x10b   :  { %v4452_v53 = vor.u32 %v4012_v52, %v3680_v43 }
 0x10c   :  { %5820 = vst [vmem:[#allocation54_spill] sm:$0xff] %v4436_v24 }
 0x10d   :  { %5822 = vst [vmem:[#allocation56_spill] sm:$0xff] %v4446_v47 }
 0x10e   :  { %5823 = vst [vmem:[#allocation57_spill] sm:$0xff] %v4452_v53 }
 0x10f   :  { %v1227_v55 = vpop.f32.mrf.mxu2 }
 0x110   :  { %v1396_v19 = vpop.f32.mrf.mxu3 }
 0x111   :  { %v4432_v17 = vadd.f32 %v1396_v19, %v1227_v55  ;;  %v1289_v55 = vpop.f32.mrf.mxu1  ;;  %v4442_v19 = vor.u32 %v3920_v57, %v3312_v5  ;;  %v1122_v5 = vpop.f32.mrf.mxu0 }
 0x112   :  { %v4444_v0 = vadd.f32 %v1289_v55, %v1120_v10 }
 0x113   :  { %5821 = vst [vmem:[#allocation55_spill] sm:$0xff] %v4442_v19  ;;  %1159 = vmatmul.bf16.gmra.mxu0 %v4442_v19  ;;  %v3338_v19 = vld [vmem:[#allocation2 + $0x138] sm:$0xf0] }
 0x114   :  { %1269 = vmatmul.bf16.gmra.mxu2 %v4434_v13  ;;  %1328 = vmatmul.bf16.gmra.mxu1 %v4446_v47 }
 0x115   :  { %1438 = vmatmul.bf16.gmra.mxu3 %v4436_v24 }
 0x117   :  { %v1230_v29 = vpop.f32.mrf.mxu2 }
 0x118   :  { %v1399_v31 = vpop.f32.mrf.mxu3 }
 0x119   :  { %v4440_v8 = vadd.f32 %v1399_v31, %v1230_v29  ;;  %v3682_v29 = vld [vmem:[#allocation2 + $0x3f0] sm:$0xf0]  ;;  %v1291_v10 = vpop.f32.mrf.mxu1  ;;  %v1125_v15 = vpop.f32.mrf.mxu0 }
 0x11a   :  { %v4454_v57 = vor.u32 %v4010_v40, %v3682_v29  ;;  %v4456_v51 = vadd.f32 %v1291_v10, %v1122_v5  ;;  %v3330_v40 = vld [vmem:[#allocation2 + $0x130] sm:$0xf0]  ;;  %v3192_v10 = vld [vmem:[#allocation2 + $0x8] sm:$0xf] }
 0x11c   :  { %5824 = vst [vmem:[#allocation58_spill] sm:$0xff] %v4454_v57 }
 0x11f   :  { %v1232_v31 = vpop.f32.mrf.mxu2 }
 0x120   :  { %v1401_v24 = vpop.f32.mrf.mxu3 }
 0x121   :  { %v4450_v13 = vadd.f32 %v1401_v24, %v1232_v31  ;;  %v3924_v24 = vld [vmem:[#allocation2 + $0x12c] sm:$0xf0]  ;;  %v3922_v31 = vld [vmem:[#allocation2 + $0x124] sm:$0xf]  ;;  %v1294_v43 = vpop.f32.mrf.mxu1 }
 0x122   :  { %v4462_v52 = vor.u32 %v3924_v24, %v3328_v39  ;;  %v4464_v29 = vadd.f32 %v1294_v43, %v1125_v15  ;;  %v4466_v5 = vor.u32 %v3922_v31, %v3330_v40  ;;  %v1127_v15 = vpop.f32.mrf.mxu0 }
 0x124   :  { %1274 = vmatmul.bf16.gmra.mxu2 %v4452_v53  ;;  %5825 = vst [vmem:[#allocation59_spill] sm:$0xff] %v4462_v52  ;;  %1164 = vmatmul.bf16.gmra.mxu0 %v4462_v52 }
 0x125   :  { %1443 = vmatmul.bf16.gmra.mxu3 %v4454_v57  ;;  %5826 = vst [vmem:[#allocation60_spill] sm:$0xff] %v4466_v5  ;;  %1333 = vmatmul.bf16.gmra.mxu1 %v4466_v5  ;;  %v3889_v57 = vld [vmem:[#allocation2 + $0x14] sm:$0xf0] }
 0x126   :  { %v4472_v6 = vor.u32 %v3889_v57, %v3192_v10 }
 0x127   :  { %v1235_v55 = vpop.f32.mrf.mxu2 }
 0x128   :  { %v1404_v60 = vpop.f32.mrf.mxu3  ;;  %5827 = vst [vmem:[#allocation61_spill] sm:$0xff] %v4472_v6 }
 0x129   :  { %v4460_v45 = vadd.f32 %v1404_v60, %v1235_v55  ;;  %v3887_v55 = vld [vmem:[#allocation2 + $0xc] sm:$0xf]  ;;  %v3194_v60 = vld [vmem:[#allocation2 + $0x18] sm:$0xf0]  ;;  %v1296_v24 = vpop.f32.mrf.mxu1 }
 0x12a   :  { %v4474_v39 = vor.u32 %v3887_v55, %v3194_v60  ;;  %v4476_v31 = vadd.f32 %v1296_v24, %v1127_v15  ;;  %v1130_v42 = vpop.f32.mrf.mxu0  ;;  %v3346_v55 = vld [vmem:[#allocation2 + $0x150] sm:$0xf0]  ;;  %v3208_v24 = vld [vmem:[#allocation2 + $0x28] sm:$0xf] }
 0x12b   :  { %v4492_v50 = vor.u32 %v3893_v16, %v3208_v24 }
 0x12c   :  { %5828 = vst [vmem:[#allocation62_spill] sm:$0xff] %v4474_v39 }
 0x12d   :  { %5832 = vst [vmem:[#allocation66_spill] sm:$0xff] %v4492_v50 }
 0x12f   :  { %v1237_v53 = vpop.f32.mrf.mxu2 }
 0x130   :  { %v1406_v37 = vpop.f32.mrf.mxu3 }
 0x131   :  { %v4470_v33 = vadd.f32 %v1406_v37, %v1237_v53  ;;  %v3928_v37 = vld [vmem:[#allocation2 + $0x14c] sm:$0xf0]  ;;  %v3926_v53 = vld [vmem:[#allocation2 + $0x144] sm:$0xf]  ;;  %v1299_v57 = vpop.f32.mrf.mxu1 }
 0x132   :  { %v4482_v10 = vor.u32 %v3928_v37, %v3344_v21  ;;  %v4484_v60 = vadd.f32 %v1299_v57, %v1130_v42  ;;  %v4486_v15 = vor.u32 %v3926_v53, %v3346_v55  ;;  %v1132_v42 = vpop.f32.mrf.mxu0 }
 0x134   :  { %1457 = vmatmul.bf16.vlgmr.msrb.gmra.mxu2 %v4472_v6  ;;  %5829 = vst [vmem:[#allocation63_spill] sm:$0xff] %v4482_v10  ;;  %1169 = vmatmul.bf16.gmra.mxu0 %v4482_v10 }
 0x135   :  { %1626 = vmatmul.bf16.vlgmr.msrb.gmra.mxu3 %v4474_v39  ;;  %5830 = vst [vmem:[#allocation64_spill] sm:$0xff] %v4486_v15  ;;  %1338 = vmatmul.bf16.gmra.mxu1 %v4486_v15  ;;  %v3360_v15 = vld [vmem:[#allocation2 + $0x160] sm:$0xf] }
 0x137   :  { %v1240_v43 = vpop.f32.mrf.mxu2 }
 0x138   :  { %v1409_v40 = vpop.f32.mrf.mxu3 }
 0x139   :  { %v4480_v27 = vadd.f32 %v1409_v40, %v1240_v43  ;;  %v3891_v43 = vld [vmem:[#allocation2 + $0x2c] sm:$0xf]  ;;  %v3210_v40 = vld [vmem:[#allocation2 + $0x38] sm:$0xf0]  ;;  %v1301_v37 = vpop.f32.mrf.mxu1 }
 0x13a   :  { %v4494_v21 = vor.u32 %v3891_v43, %v3210_v40  ;;  %v4496_v53 = vadd.f32 %v1301_v37, %v1132_v42  ;;  %v1135_v38 = vpop.f32.mrf.mxu0  ;;  %v3362_v43 = vld [vmem:[#allocation2 + $0x170] sm:$0xf0]  ;;  %v3224_v37 = vld [vmem:[#allocation2 + $0x48] sm:$0xf] }
 0x13c   :  { %5833 = vst [vmem:[#allocation67_spill] sm:$0xff] %v4494_v21 }
 0x13f   :  { %v1242_v39 = vpop.f32.mrf.mxu2 }
 0x140   :  { %v1411_v4 = vpop.f32.mrf.mxu3 }
 0x141   :  { %v4490_v56 = vadd.f32 %v1411_v4, %v1242_v39  ;;  %v3932_v4 = vld [vmem:[#allocation2 + $0x16c] sm:$0xf0]  ;;  %v3930_v39 = vld [vmem:[#allocation2 + $0x164] sm:$0xf]  ;;  %v1304_v16 = vpop.f32.mrf.mxu1 }
 0x142   :  { %v4502_v24 = vor.u32 %v3932_v4, %v3360_v15  ;;  %v4504_v40 = vadd.f32 %v1304_v16, %v1135_v38  ;;  %v4506_v42 = vor.u32 %v3930_v39, %v3362_v43  ;;  %v1137_v38 = vpop.f32.mrf.mxu0 }
 0x143   :  { %5831 = vst [vmem:[#allocation65_spill] sm:$0xff] %v4490_v56 }
 0x144   :  { %1462 = vmatmul.bf16.gmra.mxu2 %v4492_v50  ;;  %5835 = vst [vmem:[#allocation69_spill] sm:$0xff] %v4502_v24  ;;  %1174 = vmatmul.bf16.gmra.mxu0 %v4502_v24  ;;  %v3942_v24 = vld [vmem:[#allocation2 + $0x1c4] sm:$0xf] }
 0x145   :  { %1631 = vmatmul.bf16.gmra.mxu3 %v4494_v21  ;;  %5836 = vst [vmem:[#allocation70_spill] sm:$0xff] %v4506_v42  ;;  %1343 = vmatmul.bf16.gmra.mxu1 %v4506_v42  ;;  %v3897_v21 = vld [vmem:[#allocation2 + $0x54] sm:$0xf0] }
 0x146   :  { %v4512_v26 = vor.u32 %v3897_v21, %v3224_v37  ;;  %v3934_v21 = vld [vmem:[#allocation2 + $0x184] sm:$0xf] }
 0x147   :  { %v1245_v57 = vpop.f32.mrf.mxu2 }
 0x148   :  { %v1414_v55 = vpop.f32.mrf.mxu3  ;;  %5838 = vst [vmem:[#allocation72_spill] sm:$0xff] %v4512_v26 }
 0x149   :  { %v4500_v44 = vadd.f32 %v1414_v55, %v1245_v57  ;;  %v3895_v57 = vld [vmem:[#allocation2 + $0x4c] sm:$0xf]  ;;  %v3226_v55 = vld [vmem:[#allocation2 + $0x58] sm:$0xf0]  ;;  %v1306_v4 = vpop.f32.mrf.mxu1 }
 0x14a   :  { %v4514_v15 = vor.u32 %v3895_v57, %v3226_v55  ;;  %v4516_v39 = vadd.f32 %v1306_v4, %v1137_v38  ;;  %v4522_v47 = vpop.f32.mrf.mxu0  ;;  %v3378_v57 = vld [vmem:[#allocation2 + $0x190] sm:$0xf0]  ;;  %v3240_v38 = vld [vmem:[#allocation2 + $0x68] sm:$0xf]  ;;  %v3901_v4 = vld [vmem:[#allocation2 + $0x74] sm:$0xf0] }
 0x14b   :  { %5834 = vst [vmem:[#allocation68_spill] sm:$0xff] %v4500_v44  ;;  %v4526_v55 = vor.u32 %v3934_v21, %v3378_v57  ;;  %v4532_v20 = vor.u32 %v3901_v4, %v3240_v38  ;;  %v3394_v38 = vld [vmem:[#allocation2 + $0x1b0] sm:$0xf0]  ;;  %v3905_v4 = vld [vmem:[#allocation2 + $0x94] sm:$0xf0] }
 0x14c   :  { %5839 = vst [vmem:[#allocation73_spill] sm:$0xff] %v4514_v15  ;;  %v3368_v44 = vld [vmem:[#allocation2 + $0x168] sm:$0xf] }
 0x14d   :  { %5842 = vst [vmem:[#allocation76_spill] sm:$0xff] %v4526_v55 }
 0x14e   :  { %5844 = vst [vmem:[#allocation78_spill] sm:$0xff] %v4532_v20 }
 0x14f   :  { %v1247_v32 = vpop.f32.mrf.mxu2 }
 0x150   :  { %v1416_v5 = vpop.f32.mrf.mxu3 }
 0x151   :  { %v4510_v50 = vadd.f32 %v1416_v5, %v1247_v32  ;;  %v3376_v32 = vld [vmem:[#allocation2 + $0x180] sm:$0xf]  ;;  %v3936_v5 = vld [vmem:[#allocation2 + $0x18c] sm:$0xf0] }
 0x152   :  { %v4524_v37 = vor.u32 %v3936_v5, %v3376_v32  ;;  %v4536_v32 = vpop.f32.mrf.mxu0 }
 0x153   :  { %5837 = vst [vmem:[#allocation71_spill] sm:$0xff] %v4510_v50 }
 0x154   :  { %1467 = vmatmul.bf16.gmra.mxu2 %v4512_v26  ;;  %5841 = vst [vmem:[#allocation75_spill] sm:$0xff] %v4524_v37  ;;  %1179 = vmatmul.bf16.gmra.mxu0 %v4524_v37  ;;  %v3242_v26 = vld [vmem:[#allocation2 + $0x78] sm:$0xf0] }
 0x155   :  { %1636 = vmatmul.bf16.gmra.mxu3 %v4514_v15  ;;  %1348 = vmatmul.bf16.gmra.mxu1 %v4526_v55  ;;  %v3899_v15 = vld [vmem:[#allocation2 + $0x6c] sm:$0xf] }
 0x156   :  { %v4534_v7 = vor.u32 %v3899_v15, %v3242_v26  ;;  %v3256_v15 = vld [vmem:[#allocation2 + $0x88] sm:$0xf] }
 0x157   :  { %v1250_v16 = vpop.f32.mrf.mxu2  ;;  %v4552_v37 = vor.u32 %v3905_v4, %v3256_v15  ;;  %v3909_v4 = vld [vmem:[#allocation2 + $0xb4] sm:$0xf0] }
 0x158   :  { %v1419_v43 = vpop.f32.mrf.mxu3  ;;  %5845 = vst [vmem:[#allocation79_spill] sm:$0xff] %v4534_v7 }
 0x159   :  { %v4520_v42 = vadd.f32 %v1419_v43, %v1250_v16  ;;  %5850 = vst [vmem:[#allocation84_spill] sm:$0xff] %v4552_v37 }
 0x15a   :  { %v4542_v55 = vpop.f32.mrf.mxu0 }
 0x15b   :  { %5840 = vst [vmem:[#allocation74_spill] sm:$0xff] %v4520_v42 }
 0x15f   :  { %v1252_v16 = vpop.f32.mrf.mxu2 }
 0x160   :  { %v1421_v43 = vpop.f32.mrf.mxu3 }
 0x161   :  { %v4530_v6 = vadd.f32 %v1421_v43, %v1252_v16  ;;  %v3938_v16 = vld [vmem:[#allocation2 + $0x1a4] sm:$0xf]  ;;  %v4544_v43 = vor.u32 %v3940_v62, %v3392_v2 }
 0x162   :  { %v4546_v26 = vor.u32 %v3938_v16, %v3394_v38  ;;  %v4556_v62 = vpop.f32.mrf.mxu0 }
 0x163   :  { %5843 = vst [vmem:[#allocation77_spill] sm:$0xff] %v4530_v6 }
 0x164   :  { %1472 = vmatmul.bf16.gmra.mxu2 %v4532_v20  ;;  %5847 = vst [vmem:[#allocation81_spill] sm:$0xff] %v4544_v43  ;;  %1184 = vmatmul.bf16.gmra.mxu0 %v4544_v43  ;;  %v3258_v20 = vld [vmem:[#allocation2 + $0x98] sm:$0xf0]  ;;  %v3944_v43 = vld [vmem:[#allocation2 + $0x1cc] sm:$0xf0] }
 0x165   :  { %1641 = vmatmul.bf16.gmra.mxu3 %v4534_v7  ;;  %5848 = vst [vmem:[#allocation82_spill] sm:$0xff] %v4546_v26  ;;  %1353 = vmatmul.bf16.gmra.mxu1 %v4546_v26  ;;  %v3903_v7 = vld [vmem:[#allocation2 + $0x8c] sm:$0xf]  ;;  %v3408_v26 = vld [vmem:[#allocation2 + $0x1c0] sm:$0xf] }
 0x166   :  { %v4554_v58 = vor.u32 %v3903_v7, %v3258_v20  ;;  %v4562_v30 = vor.u32 %v3944_v43, %v3408_v26  ;;  %v3272_v20 = vld [vmem:[#allocation2 + $0xa8] sm:$0xf] }
 0x167   :  { %v1255_v5 = vpop.f32.mrf.mxu2  ;;  %v4572_v10 = vor.u32 %v3909_v4, %v3272_v20  ;;  %v3946_v20 = vld [vmem:[#allocation2 + $0x1e4] sm:$0xf] }
 0x168   :  { %v1424_v21 = vpop.f32.mrf.mxu3  ;;  %5851 = vst [vmem:[#allocation85_spill] sm:$0xff] %v4554_v58 }
 0x169   :  { %v4540_v57 = vadd.f32 %v1424_v21, %v1255_v5  ;;  %5853 = vst [vmem:[#allocation87_spill] sm:$0xff] %v4562_v30 }
 0x16a   :  { %v4566_v7 = vpop.f32.mrf.mxu0  ;;  %5856 = vst [vmem:[#allocation90_spill] sm:$0xff] %v4572_v10 }
 0x16b   :  { %5846 = vst [vmem:[#allocation80_spill] sm:$0xff] %v4540_v57  ;;  %v3320_v57 = vld [vmem:[#allocation2 + $0x108] sm:$0xf] }
 0x16f   :  { %v1257_v5 = vpop.f32.mrf.mxu2 }
 0x170   :  { %v1426_v21 = vpop.f32.mrf.mxu3 }
 0x171   :  { %v4550_v23 = vadd.f32 %v1426_v21, %v1257_v5  ;;  %v3410_v5 = vld [vmem:[#allocation2 + $0x1d0] sm:$0xf0]  ;;  %v3907_v21 = vld [vmem:[#allocation2 + $0xac] sm:$0xf] }
 0x172   :  { %v4564_v15 = vor.u32 %v3942_v24, %v3410_v5  ;;  %v4053_v24 = vld [vmem:[#allocation7 + $0x38] sm:$0xff]  ;;  %v4578_v26 = vpop.f32.mrf.mxu0 }
 0x173   :  { %5849 = vst [vmem:[#allocation83_spill] sm:$0xff] %v4550_v23  ;;  %1887 = vmatpush.bf16.msrb.mxu0 %v4053_v24  ;;  %v3290_v24 = vld [vmem:[#allocation2 + $0xd8] sm:$0xf0] }
 0x174   :  { %1477 = vmatmul.bf16.gmra.mxu2 %v4552_v37  ;;  %5854 = vst [vmem:[#allocation88_spill] sm:$0xff] %v4564_v15  ;;  %1189 = vmatmul.bf16.gmra.mxu0 %v4562_v30 }
 0x175   :  { %1646 = vmatmul.bf16.gmra.mxu3 %v4554_v58  ;;  %1358 = vmatmul.bf16.gmra.mxu1 %v4564_v15  ;;  %v3274_v58 = vld [vmem:[#allocation2 + $0xb8] sm:$0xf0] }
 0x176   :  { %v4574_v43 = vor.u32 %v3907_v21, %v3274_v58  ;;  %v3426_v58 = vld [vmem:[#allocation2 + $0x1f0] sm:$0xf0]  ;;  %v3288_v21 = vld [vmem:[#allocation2 + $0xc8] sm:$0xf] }
 0x177   :  { %v1260_v2 = vpop.f32.mrf.mxu2  ;;  %v4584_v4 = vor.u32 %v3946_v20, %v3426_v58  ;;  %v4049_v58 = vld [vmem:[#allocation7 + $0x18] sm:$0xff] }
 0x178   :  { %v1429_v16 = vpop.f32.mrf.mxu3  ;;  %5857 = vst [vmem:[#allocation91_spill] sm:$0xff] %v4574_v43 }
 0x179   :  { %v4560_v38 = vadd.f32 %v1429_v16, %v1260_v2  ;;  %5860 = vst [vmem:[#allocation94_spill] sm:$0xff] %v4584_v4 }
 0x17a   :  { %v4594_v20 = vpop.f32.mrf.mxu0 }
 0x17b   :  { %5852 = vst [vmem:[#allocation86_spill] sm:$0xff] %v4560_v38  ;;  %v4052_v38 = vld [vmem:[#allocation7 + $0x30] sm:$0xff] }
 0x17c   :  { %1888 = vmatpush.bf16.msrb.mxu0 %v4052_v38  ;;  %v4050_v38 = vld [vmem:[#allocation7 + $0x20] sm:$0xff] }
 0x17f   :  { %v1262_v2 = vpop.f32.mrf.mxu2 }
 0x180   :  { %v1431_v16 = vpop.f32.mrf.mxu3 }
 0x181   :  { %v4570_v37 = vadd.f32 %v1431_v16, %v1262_v2  ;;  %v3948_v2 = vld [vmem:[#allocation2 + $0x1ec] sm:$0xf0] }
 0x182   :  { %v4582_v16 = vor.u32 %v3948_v2, %v3424_v11 }
 0x183   :  { %5855 = vst [vmem:[#allocation89_spill] sm:$0xff] %v4570_v37 }
 0x184   :  { %1482 = vmatmul.bf16.gmra.mxu2 %v4572_v10  ;;  %5859 = vst [vmem:[#allocation93_spill] sm:$0xff] %v4582_v16  ;;  %1194 = vmatmul.bf16.gmra.mxu0 %v4582_v16  ;;  %v3911_v10 = vld [vmem:[#allocation2 + $0xcc] sm:$0xf] }
 0x185   :  { %1651 = vmatmul.bf16.gmra.mxu3 %v4574_v43  ;;  %v3913_v43 = vld [vmem:[#allocation2 + $0xd4] sm:$0xf0]  ;;  %1363 = vmatmul.bf16.gmra.mxu1 %v4584_v4  ;;  %v4592_v2 = vor.u32 %v3911_v10, %v3290_v24  ;;  %v3304_v10 = vld [vmem:[#allocation2 + $0xe8] sm:$0xf]  ;;  %v3306_v24 = vld [vmem:[#allocation2 + $0xf8] sm:$0xf0] }
 0x186   :  { %v4590_v11 = vor.u32 %v3913_v43, %v3288_v21  ;;  %v3917_v43 = vld [vmem:[#allocation2 + $0xf4] sm:$0xf0]  ;;  %v3915_v21 = vld [vmem:[#allocation2 + $0xec] sm:$0xf] }
 0x187   :  { %v1265_v5 = vpop.f32.mrf.mxu2  ;;  %5863 = vst [vmem:[#allocation97_spill] sm:$0xff] %v4592_v2  ;;  %v4606_v23 = vor.u32 %v3915_v21, %v3306_v24 }
 0x188   :  { %v1434_v15 = vpop.f32.mrf.mxu3  ;;  %5862 = vst [vmem:[#allocation96_spill] sm:$0xff] %v4590_v11 }
 0x189   :  { %v4580_v30 = vadd.f32 %v1434_v15, %v1265_v5  ;;  %v4051_v15 = vld [vmem:[#allocation7 + $0x28] sm:$0xff]  ;;  %5867 = vst [vmem:[#allocation101_spill] sm:$0xff] %v4606_v23 }
 0x18a   :  { %1889 = vmatpush.bf16.msrb.mxu0 %v4051_v15  ;;  %v4600_v15 = vpop.f32.mrf.mxu0 }
 0x18b   :  { %5858 = vst [vmem:[#allocation92_spill] sm:$0xff] %v4580_v30 }
 0x18e   :  { %1890 = vmatpush.bf16.msrb.mxu0 %v4050_v38 }
 0x18f   :  { %v1267_v5 = vpop.f32.mrf.mxu2 }
 0x190   :  { %v1436_v30 = vpop.f32.mrf.mxu3 }
 0x191   :  { %v4588_v37 = vadd.f32 %v1436_v30, %v1267_v5  ;;  %v4048_v30 = vld [vmem:[#allocation7 + $0x10] sm:$0xff]  ;;  %v4047_v5 = vld [vmem:[#allocation7 + $0x8] sm:$0xff] }
 0x192   :  { %1891 = vmatpush.bf16.msrb.mxu0 %v4049_v58 }
 0x193   :  { %5861 = vst [vmem:[#allocation95_spill] sm:$0xff] %v4588_v37 }
 0x194   :  { %1487 = vmatmul.bf16.gmra.mxu2 %v4590_v11 }
 0x195   :  { %1656 = vmatmul.bf16.gmra.mxu3 %v4592_v2  ;;  %v4604_v2 = vor.u32 %v3917_v43, %v3304_v10 }
 0x196   :  { %1892 = vmatpush.bf16.msrb.mxu0 %v4048_v30 }
 0x197   :  { %v1270_v4 = vpop.f32.mrf.mxu2  ;;  %5866 = vst [vmem:[#allocation100_spill] sm:$0xff] %v4604_v2 }
 0x198   :  { %v1439_v16 = vpop.f32.mrf.mxu3 }
 0x199   :  { %v4598_v52 = vadd.f32 %v1439_v16, %v1270_v4  ;;  %v4046_v16 = vld [vmem:[#allocation7] sm:$0xff]  ;;  %v4610_v4 = vpop.f32.mrf.mxu0 }
 0x19a   :  { %1893 = vmatpush.bf16.msrb.mxu0 %v4047_v5  ;;  %v3921_v5 = vld [vmem:[#allocation2 + $0x114] sm:$0xf0] }
 0x19b   :  { %5864 = vst [vmem:[#allocation98_spill] sm:$0xff] %v4598_v52 }
 0x19e   :  { %1894 = vmatpush.bf16.msrb.mxu0 %v4046_v16  ;;  %v4618_v16 = vor.u32 %v3921_v5, %v3320_v57 }
 0x19f   :  { %v1272_v38 = vpop.f32.mrf.mxu2 }
 0x1a0   :  { %v1441_v37 = vpop.f32.mrf.mxu3  ;;  %5870 = vst [vmem:[#allocation104_spill] sm:$0xff] %v4618_v16 }
 0x1a1   :  { %v4602_v11 = vadd.f32 %v1441_v37, %v1272_v38  ;;  %v3919_v37 = vld [vmem:[#allocation2 + $0x10c] sm:$0xf]  ;;  %v3322_v38 = vld [vmem:[#allocation2 + $0x118] sm:$0xf0]  ;;  %v4614_v10 = vpop.f32.mrf.mxu0 }
 0x1a3   :  { %5865 = vst [vmem:[#allocation99_spill] sm:$0xff] %v4602_v11  ;;  %v3925_v11 = vld [vmem:[#allocation2 + $0x134] sm:$0xf0] }
 0x1a4   :  { %1492 = vmatmul.bf16.gmra.mxu2 %v4604_v2  ;;  %v4620_v2 = vor.u32 %v3919_v37, %v3322_v38  ;;  %v4630_v37 = vor.u32 %v3923_v63, %v3338_v19  ;;  %v3927_v63 = vld [vmem:[#allocation2 + $0x14c] sm:$0xf]  ;;  %v3354_v19 = vld [vmem:[#allocation2 + $0x158] sm:$0xf0] }
 0x1a5   :  { %1661 = vmatmul.bf16.gmra.mxu3 %v4606_v23 }
 0x1a6   :  { %5871 = vst [vmem:[#allocation105_spill] sm:$0xff] %v4620_v2 }
 0x1a7   :  { %v1275_v58 = vpop.f32.mrf.mxu2  ;;  %5873 = vst [vmem:[#allocation107_spill] sm:$0xff] %v4630_v37 }
 0x1a8   :  { %v1444_v30 = vpop.f32.mrf.mxu3 }
 0x1a9   :  { %v4612_v52 = vadd.f32 %v1444_v30, %v1275_v58  ;;  %v4624_v23 = vpop.f32.mrf.mxu0 }
 0x1ab   :  { %5868 = vst [vmem:[#allocation102_spill] sm:$0xff] %v4612_v52  ;;  %v3336_v52 = vld [vmem:[#allocation2 + $0x128] sm:$0xf] }
 0x1ac   :  { %v4628_v5 = vor.u32 %v3925_v11, %v3336_v52  ;;  %v3929_v52 = vld [vmem:[#allocation2 + $0x154] sm:$0xf0] }
 0x1ae   :  { %5872 = vst [vmem:[#allocation106_spill] sm:$0xff] %v4628_v5 }
 0x1af   :  { %v1277_v43 = vpop.f32.mrf.mxu2 }
 0x1b0   :  { %v1446_v21 = vpop.f32.mrf.mxu3 }
 0x1b1   :  { %v4616_v24 = vadd.f32 %v1446_v21, %v1277_v43 }
 0x1b3   :  { %5869 = vst [vmem:[#allocation103_spill] sm:$0xff] %v4616_v24  ;;  %v4634_v24 = vpop.f32.mrf.mxu1 }
 0x1b4   :  { %1497 = vmatmul.bf16.gmra.mxu2 %v4618_v16  ;;  %v4632_v16 = vpop.f32.mrf.mxu0 }
 0x1b5   :  { %1666 = vmatmul.bf16.gmra.mxu3 %v4620_v2 }
 0x1b7   :  { %v1458_v58 = vpop.f32.mrf.mxu2 }
 0x1b8   :  { %v1627_v30 = vpop.f32.mrf.mxu3  ;;  %v1459_v6 = vadd.f32 %v1458_v58, %v4444_v0 }
 0x1ba   :  { %v1628_v38 = vadd.f32 %v1627_v30, %v1459_v6 }
 0x1bb   :  { %v4640_v6 = vpop.f32.mrf.mxu1 }
 0x1bf   :  { %v1460_v43 = vpop.f32.mrf.mxu2 }
 0x1c0   :  { %v1629_v21 = vpop.f32.mrf.mxu3  ;;  %v1461_v57 = vadd.f32 %v1460_v43, %v4456_v51  ;;  %v4638_v51 = vpop.f32.mrf.mxu0 }
 0x1c2   :  { %v1630_v2 = vadd.f32 %v1629_v21, %v1461_v57  ;;  %v4644_v21 = vor.u32 %v3929_v52, %v3352_v34  ;;  %v4646_v57 = vor.u32 %v3927_v63, %v3354_v19  ;;  %v3931_v34 = vld [vmem:[#allocation2 + $0x16c] sm:$0xf]  ;;  %v3370_v52 = vld [vmem:[#allocation2 + $0x178] sm:$0xf0] }
 0x1c4   :  { %v1787_v42 = vpack.c.bf16 %v1630_v2, %v1628_v38  ;;  %1502 = vmatmul.bf16.gmra.mxu2 %v4628_v5  ;;  %5874 = vst [vmem:[#allocation108_spill] sm:$0xff] %v4644_v21 }
 0x1c5   :  { %1671 = vmatmul.bf16.gmra.mxu3 %v4630_v37  ;;  %5875 = vst [vmem:[#allocation109_spill] sm:$0xff] %v4646_v57 }
 0x1c6   :  { %1895 = vmatmul.bf16.vlgmr.msrb.gmra.mxu0 %v1787_v42 }
 0x1c7   :  { %v1463_v0 = vpop.f32.mrf.mxu2 }
 0x1c8   :  { %v1632_v58 = vpop.f32.mrf.mxu3  ;;  %v1464_v11 = vadd.f32 %v1463_v0, %v4464_v29  ;;  %v4650_v5 = vpop.f32.mrf.mxu0 }
 0x1c9   :  { %v4652_v0 = vpop.f32.mrf.mxu1 }
 0x1ca   :  { %v1633_v42 = vadd.f32 %v1632_v58, %v1464_v11 }
 0x1cf   :  { %v1465_v30 = vpop.f32.mrf.mxu2 }
 0x1d0   :  { %v1634_v43 = vpop.f32.mrf.mxu3  ;;  %v1466_v2 = vadd.f32 %v1465_v30, %v4476_v31  ;;  %v3933_v31 = vld [vmem:[#allocation2 + $0x174] sm:$0xf0] }
 0x1d1   :  { %v4656_v30 = vor.u32 %v3933_v31, %v3368_v44  ;;  %v3384_v44 = vld [vmem:[#allocation2 + $0x188] sm:$0xf]  ;;  %v3937_v31 = vld [vmem:[#allocation2 + $0x194] sm:$0xf0] }
 0x1d2   :  { %v1635_v38 = vadd.f32 %v1634_v43, %v1466_v2  ;;  %v4658_v43 = vor.u32 %v3931_v34, %v3370_v52  ;;  %v1316_v2 = vpop.f32.mrf.mxu1  ;;  %v3935_v34 = vld [vmem:[#allocation2 + $0x18c] sm:$0xf]  ;;  %v3386_v52 = vld [vmem:[#allocation2 + $0x198] sm:$0xf0] }
 0x1d3   :  { %5876 = vst [vmem:[#allocation110_spill] sm:$0xff] %v4656_v30 }
 0x1d4   :  { %v1788_v37 = vpack.c.bf16 %v1635_v38, %v1633_v42  ;;  %1507 = vmatmul.bf16.gmra.mxu2 %v4644_v21  ;;  %5877 = vst [vmem:[#allocation111_spill] sm:$0xff] %v4658_v43 }
 0x1d5   :  { %1676 = vmatmul.bf16.gmra.mxu3 %v4646_v57 }
 0x1d6   :  { %1900 = vmatmul.bf16.gmra.mxu0 %v1788_v37  ;;  %v4660_v37 = vpop.f32.mrf.mxu0 }
 0x1d7   :  { %v1468_v50 = vpop.f32.mrf.mxu2 }
 0x1d8   :  { %v1637_v29 = vpop.f32.mrf.mxu3  ;;  %v1469_v63 = vadd.f32 %v1468_v50, %v4484_v60 }
 0x1da   :  { %v1638_v42 = vadd.f32 %v1637_v29, %v1469_v63 }
 0x1de   :  { %v4664_v21 = vpop.f32.mrf.mxu0 }
 0x1df   :  { %v1470_v58 = vpop.f32.mrf.mxu2 }
 0x1e0   :  { %v1639_v19 = vpop.f32.mrf.mxu3  ;;  %v1471_v11 = vadd.f32 %v1470_v58, %v4496_v53  ;;  %v4666_v53 = vpop.f32.mrf.mxu1 }
 0x1e2   :  { %v1640_v38 = vadd.f32 %v1639_v19, %v1471_v11  ;;  %v4670_v11 = vor.u32 %v3937_v31, %v3384_v44  ;;  %v3400_v44 = vld [vmem:[#allocation2 + $0x1a8] sm:$0xf]  ;;  %v3941_v31 = vld [vmem:[#allocation2 + $0x1b4] sm:$0xf0] }
 0x1e4   :  { %v1789_v57 = vpack.c.bf16 %v1640_v38, %v1638_v42  ;;  %1512 = vmatmul.bf16.gmra.mxu2 %v4656_v30  ;;  %5878 = vst [vmem:[#allocation112_spill] sm:$0xff] %v4670_v11  ;;  %v4672_v42 = vor.u32 %v3935_v34, %v3386_v52  ;;  %v3939_v34 = vld [vmem:[#allocation2 + $0x1ac] sm:$0xf]  ;;  %v3402_v52 = vld [vmem:[#allocation2 + $0x1b8] sm:$0xf0] }
 0x1e5   :  { %1681 = vmatmul.bf16.gmra.mxu3 %v4658_v43 }
 0x1e6   :  { %1905 = vmatmul.bf16.gmra.mxu0 %v1789_v57  ;;  %5879 = vst [vmem:[#allocation113_spill] sm:$0xff] %v4672_v42  ;;  %v4676_v30 = vpop.f32.mrf.mxu0 }
 0x1e7   :  { %v1473_v50 = vpop.f32.mrf.mxu2 }
 0x1e8   :  { %v1642_v60 = vpop.f32.mrf.mxu3  ;;  %v1474_v58 = vadd.f32 %v1473_v50, %v4504_v40  ;;  %v1321_v1 = vpop.f32.mrf.mxu1 }
 0x1ea   :  { %v1643_v57 = vadd.f32 %v1642_v60, %v1474_v58  ;;  %v1312_v60 = vadd.f32 %v4640_v6, %v4536_v32 }
 0x1ef   :  { %v1475_v29 = vpop.f32.mrf.mxu2 }
 0x1f0   :  { %v1644_v63 = vpop.f32.mrf.mxu3  ;;  %v1476_v19 = vadd.f32 %v1475_v29, %v4516_v39  ;;  %v1310_v39 = vadd.f32 %v4634_v24, %v4522_v47  ;;  %v4682_v29 = vpop.f32.mrf.mxu0 }
 0x1f2   :  { %v1645_v38 = vadd.f32 %v1644_v63, %v1476_v19 }
 0x1f4   :  { %v1790_v43 = vpack.c.bf16 %v1645_v38, %v1643_v57  ;;  %1517 = vmatmul.bf16.gmra.mxu2 %v4670_v11  ;;  %v1324_v57 = vpop.f32.mrf.mxu1 }
 0x1f5   :  { %1686 = vmatmul.bf16.gmra.mxu3 %v4672_v42  ;;  %v4686_v42 = vor.u32 %v3939_v34, %v3402_v52  ;;  %v3943_v34 = vld [vmem:[#allocation2 + $0x1cc] sm:$0xf]  ;;  %v3418_v52 = vld [vmem:[#allocation2 + $0x1d8] sm:$0xf0] }
 0x1f6   :  { %1910 = vmatmul.bf16.gmra.mxu0 %v1790_v43  ;;  %v4684_v43 = vor.u32 %v3941_v31, %v3400_v44  ;;  %v3416_v44 = vld [vmem:[#allocation2 + $0x1c8] sm:$0xf]  ;;  %v3945_v31 = vld [vmem:[#allocation2 + $0x1d4] sm:$0xf0] }
 0x1f7   :  { %v1478_v40 = vpop.f32.mrf.mxu2  ;;  %5881 = vst [vmem:[#allocation115_spill] sm:$0xff] %v4686_v42 }
 0x1f8   :  { %v1647_v50 = vpop.f32.mrf.mxu3  ;;  %v1479_v58 = vadd.f32 %v1478_v40, %v1310_v39  ;;  %5880 = vst [vmem:[#allocation114_spill] sm:$0xff] %v4684_v43  ;;  %v4690_v40 = vpop.f32.mrf.mxu0 }
 0x1fa   :  { %v1648_v11 = vadd.f32 %v1647_v50, %v1479_v58  ;;  %v1317_v50 = vadd.f32 %v1316_v2, %v4556_v62  ;;  %v1320_v2 = vadd.f32 %v4666_v53, %v4566_v7 }
 0x1fc   :  { %v1326_v39 = vpop.f32.mrf.mxu1 }
 0x1ff   :  { %v1480_v63 = vpop.f32.mrf.mxu2 }
 0x200   :  { %v1649_v19 = vpop.f32.mrf.mxu3  ;;  %v1481_v38 = vadd.f32 %v1480_v63, %v1312_v60  ;;  %v1315_v60 = vadd.f32 %v4652_v0, %v4542_v55 }
 0x202   :  { %v1650_v47 = vadd.f32 %v1649_v19, %v1481_v38  ;;  %v4695_v38 = vor.u32 %v3945_v31, %v3416_v44  ;;  %v3949_v44 = vld [vmem:[#allocation2 + $0x1f4] sm:$0xf0]  ;;  %v3434_v31 = vld [vmem:[#allocation2 + $0x1f8] sm:$0xf0] }
 0x204   :  { %v1791_v24 = vpack.c.bf16 %v1650_v47, %v1648_v11  ;;  %1522 = vmatmul.bf16.gmra.mxu2 %v4684_v43  ;;  %5882 = vst [vmem:[#allocation116_spill] sm:$0xff] %v4695_v38  ;;  %v4697_v47 = vor.u32 %v3943_v34, %v3418_v52  ;;  %v4699_v43 = vpop.f32.mrf.mxu0  ;;  %v1329_v56 = vpop.f32.mrf.mxu1  ;;  %v1322_v34 = vadd.f32 %v1321_v1, %v4578_v26 }
 0x205   :  { %1691 = vmatmul.bf16.gmra.mxu3 %v4686_v42 }
 0x206   :  { %1915 = vmatmul.bf16.gmra.mxu0 %v1791_v24  ;;  %5883 = vst [vmem:[#allocation117_spill] sm:$0xff] %v4697_v47 }
 0x207   :  { %v1483_v32 = vpop.f32.mrf.mxu2 }
 0x208   :  { %v1652_v6 = vpop.f32.mrf.mxu3  ;;  %v1484_v11 = vadd.f32 %v1483_v32, %v1315_v60  ;;  %v3432_v60 = vld [vmem:[#allocation2 + $0x1e8] sm:$0xf] }
 0x20a   :  { %v1653_v24 = vadd.f32 %v1652_v6, %v1484_v11  ;;  %v3947_v6 = vld [vmem:[#allocation2 + $0x1ec] sm:$0xf] }
 0x20c   :  { %v4705_v32 = vpop.f32.mrf.mxu0  ;;  %v1331_v52 = vpop.f32.mrf.mxu1 }
 0x20f   :  { %v1485_v58 = vpop.f32.mrf.mxu2 }
 0x210   :  { %v1654_v63 = vpop.f32.mrf.mxu3  ;;  %v1486_v19 = vadd.f32 %v1485_v58, %v1317_v50 }
 0x212   :  { %v1655_v42 = vadd.f32 %v1654_v63, %v1486_v19  ;;  %v4708_v63 = vor.u32 %v3949_v44, %v3432_v60  ;;  %v4710_v19 = vor.u32 %v3947_v6, %v3434_v31  ;;  %v3953_v60 = vld [vmem:[#allocation2 + $0x214] sm:$0xf0]  ;;  %v3951_v44 = vld [vmem:[#allocation2 + $0x20c] sm:$0xf]  ;;  %v3450_v6 = vld [vmem:[#allocation2 + $0x218] sm:$0xf0] }
 0x214   :  { %v1792_v55 = vpack.c.bf16 %v1655_v42, %v1653_v24  ;;  %1527 = vmatmul.bf16.gmra.mxu2 %v4695_v38  ;;  %5884 = vst [vmem:[#allocation118_spill] sm:$0xff] %v4708_v63  ;;  %v4714_v53 = vpop.f32.mrf.mxu0 }
 0x215   :  { %1696 = vmatmul.bf16.gmra.mxu3 %v4697_v47  ;;  %5885 = vst [vmem:[#allocation119_spill] sm:$0xff] %v4710_v19 }
 0x216   :  { %1920 = vmatmul.bf16.gmra.mxu0 %v1792_v55 }
 0x217   :  { %v1488_v62 = vpop.f32.mrf.mxu2 }
 0x218   :  { %v1657_v0 = vpop.f32.mrf.mxu3  ;;  %v1489_v42 = vadd.f32 %v1488_v62, %v1320_v2  ;;  %v1334_v62 = vpop.f32.mrf.mxu1  ;;  %v1325_v2 = vadd.f32 %v1324_v57, %v4594_v20 }
 0x21a   :  { %v1658_v24 = vadd.f32 %v1657_v0, %v1489_v42  ;;  %v1327_v0 = vadd.f32 %v1326_v39, %v4600_v15 }
 0x21f   :  { %v1490_v50 = vpop.f32.mrf.mxu2 }
 0x220   :  { %v1659_v11 = vpop.f32.mrf.mxu3  ;;  %v1491_v58 = vadd.f32 %v1490_v50, %v1322_v34  ;;  %v3448_v34 = vld [vmem:[#allocation2 + $0x208] sm:$0xf] }
 0x222   :  { %v1660_v55 = vadd.f32 %v1659_v11, %v1491_v58  ;;  %v4718_v58 = vor.u32 %v3953_v60, %v3448_v34  ;;  %v3464_v34 = vld [vmem:[#allocation2 + $0x228] sm:$0xf]  ;;  %v3957_v60 = vld [vmem:[#allocation2 + $0x234] sm:$0xf0] }
 0x224   :  { %v1793_v7 = vpack.c.bf16 %v1660_v55, %v1658_v24  ;;  %1532 = vmatmul.bf16.gmra.mxu2 %v4708_v63  ;;  %5886 = vst [vmem:[#allocation120_spill] sm:$0xff] %v4718_v58  ;;  %v4720_v24 = vor.u32 %v3951_v44, %v3450_v6  ;;  %v4722_v55 = vpop.f32.mrf.mxu0  ;;  %v3955_v44 = vld [vmem:[#allocation2 + $0x22c] sm:$0xf]  ;;  %v3466_v6 = vld [vmem:[#allocation2 + $0x238] sm:$0xf0] }
 0x225   :  { %1701 = vmatmul.bf16.gmra.mxu3 %v4710_v19 }
 0x226   :  { %1925 = vmatmul.bf16.gmra.mxu0 %v1793_v7  ;;  %5887 = vst [vmem:[#allocation121_spill] sm:$0xff] %v4720_v24  ;;  %v1336_v7 = vpop.f32.mrf.mxu1 }
 0x227   :  { %v1493_v1 = vpop.f32.mrf.mxu2 }
 0x228   :  { %v1662_v26 = vpop.f32.mrf.mxu3  ;;  %v1494_v31 = vadd.f32 %v1493_v1, %v1325_v2  ;;  %v1330_v1 = vadd.f32 %v1329_v56, %v4610_v4  ;;  %v4739_v4 = vld [vmem:[%s5656_s3] ss:$0 sm:$0xff] }
 0x22a   :  { %v1663_v19 = vadd.f32 %v1662_v26, %v1494_v31  ;;  %v1332_v26 = vadd.f32 %v1331_v52, %v4614_v10 }
 0x22c   :  { %v4726_v39 = vpop.f32.mrf.mxu0 }
 0x22e   :  { %v1339_v2 = vpop.f32.mrf.mxu1 }
 0x22f   :  { %v1495_v42 = vpop.f32.mrf.mxu2 }
 0x230   :  { %v1664_v50 = vpop.f32.mrf.mxu3  ;;  %v1496_v11 = vadd.f32 %v1495_v42, %v1327_v0  ;;  %v4730_v42 = vor.u32 %v3957_v60, %v3464_v34  ;;  %v3480_v60 = vld [vmem:[#allocation2 + $0x248] sm:$0xf] }
 0x232   :  { %v1665_v47 = vadd.f32 %v1664_v50, %v1496_v11  ;;  %5888 = vst [vmem:[#allocation122_spill] sm:$0xff] %v4730_v42  ;;  %v4732_v50 = vor.u32 %v3955_v44, %v3466_v6  ;;  %v3961_v44 = vld [vmem:[#allocation2 + $0x254] sm:$0xf0]  ;;  %v3959_v6 = vld [vmem:[#allocation2 + $0x24c] sm:$0xf] }
 0x234   :  { %v1794_v20 = vpack.c.bf16 %v1665_v47, %v1663_v19  ;;  %1537 = vmatmul.bf16.gmra.mxu2 %v4718_v58  ;;  %5889 = vst [vmem:[#allocation123_spill] sm:$0xff] %v4732_v50 }
 0x235   :  { %1706 = vmatmul.bf16.gmra.mxu3 %v4720_v24 }
 0x236   :  { %1930 = vmatmul.bf16.gmra.mxu0 %v1794_v20  ;;  %v1341_v56 = vpop.f32.mrf.mxu1 }
 0x237   :  { %v1498_v15 = vpop.f32.mrf.mxu2 }
 0x238   :  { %v1667_v57 = vpop.f32.mrf.mxu3  ;;  %v1499_v0 = vadd.f32 %v1498_v15, %v1330_v1 }
 0x23a   :  { %v1668_v11 = vadd.f32 %v1667_v57, %v1499_v0  ;;  %v1335_v57 = vadd.f32 %v1334_v62, %v4624_v23  ;;  %v1337_v0 = vadd.f32 %v1336_v7, %v4632_v16 }
 0x23f   :  { %v1500_v47 = vpop.f32.mrf.mxu2 }
 0x240   :  { %v1669_v19 = vpop.f32.mrf.mxu3  ;;  %v1501_v31 = vadd.f32 %v1500_v47, %v1332_v26  ;;  %v3482_v26 = vld [vmem:[#allocation2 + $0x258] sm:$0xf0] }
 0x242   :  { %v1670_v20 = vadd.f32 %v1669_v19, %v1501_v31 }
 0x243   :  { %v1896_v24 = vpop.f32.mrf.mxu0 }
 0x244   :  { %v1795_v58 = vpack.c.bf16 %v1670_v20, %v1668_v11  ;;  %1542 = vmatmul.bf16.gmra.mxu2 %v4730_v42  ;;  %v1897_v15 = vadd.f32 %v4739_v4, %v1896_v24  ;;  %v1344_v20 = vpop.f32.mrf.mxu1  ;;  %v4745_v42 = vor.u32 %v3961_v44, %v3480_v60  ;;  %v4747_v24 = vor.u32 %v3959_v6, %v3482_v26  ;;  %v3496_v44 = vld [vmem:[#allocation2 + $0x268] sm:$0xf]  ;;  %v3498_v6 = vld [vmem:[#allocation2 + $0x278] sm:$0xf0] }
 0x245   :  { %1711 = vmatmul.bf16.gmra.mxu3 %v4732_v50  ;;  %v1342_v26 = vadd.f32 %v1341_v56, %v4650_v5 }
 0x246   :  { %1935 = vmatmul.bf16.gmra.mxu0 %v1795_v58  ;;  %v2056_v47 = vmax.f32 %v1897_v15, 0.0  ;;  %5890 = vst [vmem:[#allocation124_spill] sm:$0xff] %v4747_v24 }
 0x247   :  { %v1503_v10 = vpop.f32.mrf.mxu2 }
 0x248   :  { %v1672_v52 = vpop.f32.mrf.mxu3  ;;  %v1504_v19 = vadd.f32 %v1503_v10, %v1335_v57 }
 0x24a   :  { %v1673_v62 = vadd.f32 %v1672_v52, %v1504_v19  ;;  %v3965_v52 = vld [vmem:[#allocation2 + $0x274] sm:$0xf0] }
 0x24b   :  { %v1898_v1 = vpop.f32.mrf.mxu0 }
 0x24c   :  { %v1899_v34 = vadd.f32 %v4739_v4, %v1898_v1  ;;  %v1346_v10 = vpop.f32.mrf.mxu1 }
 0x24e   :  { %v2057_v31 = vmax.f32 %v1899_v34, 0.0  ;;  %v1340_v34 = vadd.f32 %v1339_v2, %v4638_v51 }
 0x24f   :  { %v1505_v11 = vpop.f32.mrf.mxu2 }
 0x250   :  { %v1674_v58 = vpop.f32.mrf.mxu3  ;;  %v1506_v50 = vadd.f32 %v1505_v11, %v1337_v0  ;;  %v4749_v23 = vpack.c.bf16 %v2057_v31, %v2056_v47 }
 0x252   :  { %v1675_v1 = vadd.f32 %v1674_v58, %v1506_v50  ;;  %v3963_v50 = vld [vmem:[#allocation2 + $0x26c] sm:$0xf]  ;;  %v4757_v58 = vor.u32 %v3965_v52, %v3496_v44  ;;  %v3512_v44 = vld [vmem:[#allocation2 + $0x288] sm:$0xf] }
 0x253   :  { %v1901_v63 = vpop.f32.mrf.mxu0  ;;  %v3967_v52 = vld [vmem:[#allocation2 + $0x28c] sm:$0xf] }
 0x254   :  { %v1796_v38 = vpack.c.bf16 %v1675_v1, %v1673_v62  ;;  %1547 = vmatmul.bf16.gmra.mxu2 %v4745_v42  ;;  %v1902_v15 = vadd.f32 %v4739_v4, %v1901_v63  ;;  %5891 = vst [vmem:[#allocation125_spill] sm:$0xff] %v4757_v58  ;;  %v4759_v63 = vor.u32 %v3963_v50, %v3498_v6  ;;  %v3514_v50 = vld [vmem:[#allocation2 + $0x298] sm:$0xf0] }
 0x255   :  { %1716 = vmatmul.bf16.gmra.mxu3 %v4747_v24  ;;  %v1347_v6 = vadd.f32 %v1346_v10, %v4664_v21 }
 0x256   :  { %1940 = vmatmul.bf16.gmra.mxu0 %v1796_v38  ;;  %v2058_v0 = vmax.f32 %v1902_v15, 0.0  ;;  %5892 = vst [vmem:[#allocation126_spill] sm:$0xff] %v4759_v63 }
 0x257   :  { %v1508_v16 = vpop.f32.mrf.mxu2 }
 0x258   :  { %v1677_v7 = vpop.f32.mrf.mxu3  ;;  %v1509_v47 = vadd.f32 %v1508_v16, %v1340_v34  ;;  %v1345_v34 = vadd.f32 %v1344_v20, %v4660_v37 }
 0x25a   :  { %v1678_v51 = vadd.f32 %v1677_v7, %v1509_v47  ;;  %v3969_v7 = vld [vmem:[#allocation2 + $0x294] sm:$0xf0] }
 0x25b   :  { %v1903_v57 = vpop.f32.mrf.mxu0 }
 0x25c   :  { %v1904_v60 = vadd.f32 %v4739_v4, %v1903_v57  ;;  %v1349_v57 = vpop.f32.mrf.mxu1 }
 0x25e   :  { %v2059_v19 = vmax.f32 %v1904_v60, 0.0 }
 0x25f   :  { %v1510_v38 = vpop.f32.mrf.mxu2 }
 0x260   :  { %v1679_v31 = vpop.f32.mrf.mxu3  ;;  %v1511_v11 = vadd.f32 %v1510_v38, %v1342_v26  ;;  %v4761_v62 = vpack.c.bf16 %v2059_v19, %v2058_v0 }
 0x262   :  { %v1680_v2 = vadd.f32 %v1679_v31, %v1511_v11  ;;  %v4769_v11 = vor.u32 %v3969_v7, %v3512_v44  ;;  %v3528_v7 = vld [vmem:[#allocation2 + $0x2a8] sm:$0xf] }
 0x263   :  { %v1906_v1 = vpop.f32.mrf.mxu0 }
 0x264   :  { %v1797_v24 = vpack.c.bf16 %v1680_v2, %v1678_v51  ;;  %1552 = vmatmul.bf16.gmra.mxu2 %v4757_v58  ;;  %v1907_v16 = vadd.f32 %v4739_v4, %v1906_v1  ;;  %v1351_v26 = vpop.f32.mrf.mxu1  ;;  %5893 = vst [vmem:[#allocation127_spill] sm:$0xff] %v4769_v11  ;;  %v4771_v51 = vor.u32 %v3967_v52, %v3514_v50  ;;  %v3971_v52 = vld [vmem:[#allocation2 + $0x2ac] sm:$0xf]  ;;  %v3530_v50 = vld [vmem:[#allocation2 + $0x2b8] sm:$0xf0] }
 0x265   :  { %1721 = vmatmul.bf16.gmra.mxu3 %v4759_v63  ;;  %v5977_v58 = vld [vmem:[#allocation96_spill] sm:$0xff] }
 0x266   :  { %1945 = vmatmul.bf16.gmra.mxu0 %v1797_v24  ;;  %v2060_v0 = vmax.f32 %v1907_v16, 0.0  ;;  %5894 = vst [vmem:[#allocation128_spill] sm:$0xff] %v4771_v51 }
 0x267   :  { %v1513_v5 = vpop.f32.mrf.mxu2 }
 0x268   :  { %v1682_v56 = vpop.f32.mrf.mxu3  ;;  %v1514_v47 = vadd.f32 %v1513_v5, %v1345_v34 }
 0x26a   :  { %v1683_v20 = vadd.f32 %v1682_v56, %v1514_v47  ;;  %v3973_v56 = vld [vmem:[#allocation2 + $0x2b4] sm:$0xf0] }
 0x26b   :  { %v1908_v15 = vpop.f32.mrf.mxu0 }
 0x26c   :  { %v1909_v60 = vadd.f32 %v4739_v4, %v1908_v15  ;;  %v1354_v5 = vpop.f32.mrf.mxu1 }
 0x26e   :  { %v2061_v19 = vmax.f32 %v1909_v60, 0.0  ;;  %v1350_v60 = vadd.f32 %v1349_v57, %v4676_v30 }
 0x26f   :  { %v1515_v24 = vpop.f32.mrf.mxu2 }
 0x270   :  { %v1684_v38 = vpop.f32.mrf.mxu3  ;;  %v1516_v31 = vadd.f32 %v1515_v24, %v1347_v6  ;;  %v4773_v37 = vpack.c.bf16 %v2061_v19, %v2060_v0  ;;  %v1352_v6 = vadd.f32 %v1351_v26, %v4682_v29 }
 0x272   :  { %v1685_v2 = vadd.f32 %v1684_v38, %v1516_v31 }
 0x273   :  { %v1911_v1 = vpop.f32.mrf.mxu0 }
 0x274   :  { %v1798_v15 = vpack.c.bf16 %v1685_v2, %v1683_v20  ;;  %1557 = vmatmul.bf16.gmra.mxu2 %v4769_v11  ;;  %v1912_v16 = vadd.f32 %v4739_v4, %v1911_v1  ;;  %v4781_v20 = vor.u32 %v3973_v56, %v3528_v7  ;;  %v4783_v2 = vor.u32 %v3971_v52, %v3530_v50  ;;  %v1356_v30 = vpop.f32.mrf.mxu1  ;;  %v3977_v7 = vld [vmem:[#allocation2 + $0x2d4] sm:$0xf0]  ;;  %v3975_v56 = vld [vmem:[#allocation2 + $0x2cc] sm:$0xf] }
 0x275   :  { %1726 = vmatmul.bf16.gmra.mxu3 %v4771_v51  ;;  %v1357_v52 = vadd.f32 %v1356_v30, %v4699_v43 }
 0x276   :  { %1950 = vmatmul.bf16.gmra.mxu0 %v1798_v15  ;;  %v2062_v0 = vmax.f32 %v1912_v16, 0.0  ;;  %5895 = vst [vmem:[#allocation129_spill] sm:$0xff] %v4781_v20  ;;  %v1355_v16 = vadd.f32 %v1354_v5, %v4690_v40 }
 0x277   :  { %v1518_v21 = vpop.f32.mrf.mxu2  ;;  %5896 = vst [vmem:[#allocation130_spill] sm:$0xff] %v4783_v2 }
 0x278   :  { %v1687_v10 = vpop.f32.mrf.mxu3  ;;  %v1519_v47 = vadd.f32 %v1518_v21, %v1350_v60 }
 0x27a   :  { %v1688_v57 = vadd.f32 %v1687_v10, %v1519_v47  ;;  %v3546_v10 = vld [vmem:[#allocation2 + $0x2d8] sm:$0xf0] }
 0x27b   :  { %v1913_v34 = vpop.f32.mrf.mxu0 }
 0x27c   :  { %v1914_v44 = vadd.f32 %v4739_v4, %v1913_v34  ;;  %v1359_v60 = vpop.f32.mrf.mxu1 }
 0x27e   :  { %v2063_v19 = vmax.f32 %v1914_v44, 0.0  ;;  %v3544_v44 = vld [vmem:[#allocation2 + $0x2c8] sm:$0xf] }
 0x27f   :  { %v1520_v24 = vpop.f32.mrf.mxu2 }
 0x280   :  { %v1689_v38 = vpop.f32.mrf.mxu3  ;;  %v1521_v31 = vadd.f32 %v1520_v24, %v1352_v6  ;;  %v4785_v1 = vpack.c.bf16 %v2063_v19, %v2062_v0  ;;  %v4795_v19 = vor.u32 %v3977_v7, %v3544_v44  ;;  %v3979_v44 = vld [vmem:[#allocation2 + $0x2ec] sm:$0xf]  ;;  %v3562_v7 = vld [vmem:[#allocation2 + $0x2f8] sm:$0xf0] }
 0x282   :  { %v1690_v15 = vadd.f32 %v1689_v38, %v1521_v31  ;;  %5897 = vst [vmem:[#allocation131_spill] sm:$0xff] %v4795_v19 }
 0x283   :  { %v4787_v34 = vpop.f32.mrf.mxu0 }
 0x284   :  { %v1799_v51 = vpack.c.bf16 %v1690_v15, %v1688_v57  ;;  %1562 = vmatmul.bf16.gmra.mxu2 %v4781_v20  ;;  %v1361_v5 = vpop.f32.mrf.mxu1  ;;  %v1360_v15 = vadd.f32 %v1359_v60, %v4705_v32 }
 0x285   :  { %1731 = vmatmul.bf16.gmra.mxu3 %v4783_v2 }
 0x286   :  { %1955 = vmatmul.bf16.gmra.mxu0 %v1799_v51  ;;  %v4797_v51 = vor.u32 %v3975_v56, %v3546_v10 }
 0x287   :  { %v1523_v29 = vpop.f32.mrf.mxu2 }
 0x288   :  { %v1692_v26 = vpop.f32.mrf.mxu3  ;;  %v1524_v50 = vadd.f32 %v1523_v29, %v1355_v16  ;;  %5898 = vst [vmem:[#allocation132_spill] sm:$0xff] %v4797_v51  ;;  %v3560_v29 = vld [vmem:[#allocation2 + $0x2e8] sm:$0xf]  ;;  %v3981_v16 = vld [vmem:[#allocation2 + $0x2f4] sm:$0xf0] }
 0x28a   :  { %v1693_v24 = vadd.f32 %v1692_v26, %v1524_v50  ;;  %v1362_v26 = vadd.f32 %v1361_v5, %v4714_v53 }
 0x28b   :  { %v4791_v21 = vpop.f32.mrf.mxu0 }
 0x28f   :  { %v1525_v6 = vpop.f32.mrf.mxu2 }
 0x290   :  { %v1694_v0 = vpop.f32.mrf.mxu3  ;;  %v1526_v47 = vadd.f32 %v1525_v6, %v1357_v52  ;;  %v4805_v6 = vor.u32 %v3981_v16, %v3560_v29  ;;  %v3985_v29 = vld [vmem:[#allocation2 + $0x314] sm:$0xf0]  ;;  %v3983_v16 = vld [vmem:[#allocation2 + $0x30c] sm:$0xf] }
 0x292   :  { %v1695_v38 = vadd.f32 %v1694_v0, %v1526_v47  ;;  %5899 = vst [vmem:[#allocation133_spill] sm:$0xff] %v4805_v6  ;;  %v4807_v0 = vor.u32 %v3979_v44, %v3562_v7  ;;  %v1364_v47 = vpop.f32.mrf.mxu1  ;;  %v3578_v44 = vld [vmem:[#allocation2 + $0x318] sm:$0xf0] }
 0x293   :  { %v4799_v31 = vpop.f32.mrf.mxu0 }
 0x294   :  { %v1800_v40 = vpack.c.bf16 %v1695_v38, %v1693_v24  ;;  %1567 = vmatmul.bf16.gmra.mxu2 %v4795_v19  ;;  %5900 = vst [vmem:[#allocation134_spill] sm:$0xff] %v4807_v0 }
 0x295   :  { %1736 = vmatmul.bf16.gmra.mxu3 %v4797_v51 }
 0x296   :  { %1960 = vmatmul.bf16.gmra.mxu0 %v1800_v40 }
 0x297   :  { %v1528_v43 = vpop.f32.mrf.mxu2 }
 0x298   :  { %v1697_v30 = vpop.f32.mrf.mxu3  ;;  %v1529_v56 = vadd.f32 %v1528_v43, %v1360_v15  ;;  %v1365_v43 = vadd.f32 %v1364_v47, %v4722_v55  ;;  %v3576_v15 = vld [vmem:[#allocation2 + $0x308] sm:$0xf] }
 0x29a   :  { %v1698_v24 = vadd.f32 %v1697_v30, %v1529_v56  ;;  %v1366_v60 = vpop.f32.mrf.mxu1 }
 0x29b   :  { %v1923_v57 = vpop.f32.mrf.mxu0  ;;  %v1367_v30 = vadd.f32 %v1366_v60, %v4726_v39 }
 0x29f   :  { %v1530_v10 = vpop.f32.mrf.mxu2 }
 0x2a0   :  { %v1699_v52 = vpop.f32.mrf.mxu3  ;;  %v1531_v50 = vadd.f32 %v1530_v10, %v1362_v26 }
 0x2a2   :  { %v1700_v38 = vadd.f32 %v1699_v52, %v1531_v50  ;;  %v4813_v52 = vor.u32 %v3985_v29, %v3576_v15  ;;  %v4815_v50 = vor.u32 %v3983_v16, %v3578_v44  ;;  %v3592_v15 = vld [vmem:[#allocation2 + $0x328] sm:$0xf]  ;;  %v3989_v29 = vld [vmem:[#allocation2 + $0x334] sm:$0xf0]  ;;  %v3594_v16 = vld [vmem:[#allocation2 + $0x338] sm:$0xf0] }
 0x2a3   :  { %v1926_v40 = vpop.f32.mrf.mxu0 }
 0x2a4   :  { %v1801_v51 = vpack.c.bf16 %v1700_v38, %v1698_v24  ;;  %1572 = vmatmul.bf16.gmra.mxu2 %v4805_v6  ;;  %5901 = vst [vmem:[#allocation135_spill] sm:$0xff] %v4813_v52  ;;  %v1927_v44 = vadd.f32 %v4739_v4, %v1926_v40 }
 0x2a5   :  { %1741 = vmatmul.bf16.gmra.mxu3 %v4807_v0  ;;  %5902 = vst [vmem:[#allocation136_spill] sm:$0xff] %v4815_v50 }
 0x2a6   :  { %1965 = vmatmul.bf16.gmra.mxu0 %v1801_v51  ;;  %v2068_v40 = vmax.f32 %v1927_v44, 0.0 }
 0x2a7   :  { %v1533_v32 = vpop.f32.mrf.mxu2 }
 0x2a8   :  { %v1702_v53 = vpop.f32.mrf.mxu3  ;;  %v1534_v7 = vadd.f32 %v1533_v32, %v1365_v43 }
 0x2aa   :  { %v1703_v51 = vadd.f32 %v1702_v53, %v1534_v7  ;;  %v3987_v53 = vld [vmem:[#allocation2 + $0x32c] sm:$0xf] }
 0x2ab   :  { %v1928_v5 = vpop.f32.mrf.mxu0 }
 0x2ac   :  { %v1929_v60 = vadd.f32 %v4739_v4, %v1928_v5 }
 0x2af   :  { %v1535_v26 = vpop.f32.mrf.mxu2 }
 0x2b0   :  { %v1704_v56 = vpop.f32.mrf.mxu3  ;;  %v1536_v10 = vadd.f32 %v1535_v26, %v1367_v30 }
 0x2b2   :  { %v1705_v24 = vadd.f32 %v1704_v56, %v1536_v10 }
 0x2b3   :  { %v1931_v38 = vpop.f32.mrf.mxu0 }
 0x2b4   :  { %v1802_v0 = vpack.c.bf16 %v1705_v24, %v1703_v51  ;;  %1577 = vmatmul.bf16.gmra.mxu2 %v4813_v52  ;;  %v1932_v39 = vadd.f32 %v4739_v4, %v1931_v38  ;;  %v4825_v51 = vor.u32 %v3989_v29, %v3592_v15  ;;  %v2069_v24 = vmax.f32 %v1929_v60, 0.0  ;;  %v5973_v52 = vld [vmem:[#allocation82_spill] sm:$0xff] }
 0x2b5   :  { %1746 = vmatmul.bf16.gmra.mxu3 %v4815_v50  ;;  %v1922_v50 = vadd.f32 %v4739_v4, %v4799_v31  ;;  %v1917_v60 = vadd.f32 %v4739_v4, %v4787_v34 }
 0x2b6   :  { %1970 = vmatmul.bf16.gmra.mxu0 %v1802_v0  ;;  %v2070_v30 = vmax.f32 %v1932_v39, 0.0  ;;  %v1924_v0 = vadd.f32 %v4739_v4, %v1923_v57  ;;  %5903 = vst [vmem:[#allocation137_spill] sm:$0xff] %v4825_v51  ;;  %v1919_v57 = vadd.f32 %v4739_v4, %v4791_v21 }
 0x2b7   :  { %v1538_v55 = vpop.f32.mrf.mxu2  ;;  %v2066_v15 = vmax.f32 %v1922_v50, 0.0 }
 0x2b8   :  { %v1707_v47 = vpop.f32.mrf.mxu3  ;;  %v1539_v7 = vadd.f32 %v1538_v55, %v4344_v22  ;;  %v2067_v55 = vmax.f32 %v1924_v0, 0.0  ;;  %v2065_v29 = vmax.f32 %v1919_v57, 0.0  ;;  %v3991_v0 = vld [vmem:[#allocation2 + $0x34c] sm:$0xf] }
 0x2ba   :  { %v1708_v39 = vadd.f32 %v1707_v47, %v1539_v7  ;;  %v3608_v7 = vld [vmem:[#allocation2 + $0x348] sm:$0xf] }
 0x2bb   :  { %v1933_v32 = vpop.f32.mrf.mxu0 }
 0x2bc   :  { %v1934_v43 = vadd.f32 %v4739_v4, %v1933_v32  ;;  %v4828_v32 = vor.u32 %v3987_v53, %v3594_v16  ;;  %v2125_v53 = vpack.c.bf16 %v2067_v55, %v2066_v15  ;;  %v2064_v16 = vmax.f32 %v1917_v60, 0.0 }
 0x2be   :  { %v2071_v26 = vmax.f32 %v1934_v43, 0.0  ;;  %5904 = vst [vmem:[#allocation138_spill] sm:$0xff] %v4828_v32 }
 0x2bf   :  { %v1540_v56 = vpop.f32.mrf.mxu2 }
 0x2c0   :  { %v1709_v10 = vpop.f32.mrf.mxu3  ;;  %v1541_v5 = vadd.f32 %v1540_v56, %v4352_v41  ;;  %v2127_v38 = vpack.c.bf16 %v2071_v26, %v2070_v30  ;;  %v2126_v41 = vpack.c.bf16 %v2069_v24, %v2068_v40  ;;  %v2124_v30 = vpack.c.bf16 %v2065_v29, %v2064_v16  ;;  %v3993_v26 = vld [vmem:[#allocation2 + $0x354] sm:$0xf0]  ;;  %v3610_v56 = vld [vmem:[#allocation2 + $0x358] sm:$0xf0]  ;;  %v3995_v29 = vld [vmem:[#allocation2 + $0x36c] sm:$0xf] }
 0x2c1   :  { %v4842_v40 = vor.u32 %v3993_v26, %v3608_v7 }
 0x2c2   :  { %v1710_v2 = vadd.f32 %v1709_v10, %v1541_v5  ;;  %2152 = vmatpush.bf16.msrb.mxu1 %v2127_v38 }
 0x2c3   :  { %v1936_v22 = vpop.f32.mrf.mxu0  ;;  %5905 = vst [vmem:[#allocation139_spill] sm:$0xff] %v4842_v40 }
 0x2c4   :  { %v1803_v43 = vpack.c.bf16 %v1710_v2, %v1708_v39  ;;  %1582 = vmatmul.bf16.gmra.mxu2 %v4825_v51  ;;  %v1937_v21 = vadd.f32 %v4739_v4, %v1936_v22  ;;  %v4844_v39 = vor.u32 %v3991_v0, %v3610_v56  ;;  %v5972_v51 = vld [vmem:[#allocation90_spill] sm:$0xff] }
 0x2c5   :  { %1751 = vmatmul.bf16.gmra.mxu3 %v4828_v32 }
 0x2c6   :  { %1975 = vmatmul.bf16.gmra.mxu0 %v1803_v43  ;;  %2153 = vmatpush.bf16.msrb.mxu1 %v2126_v41  ;;  %v2072_v34 = vmax.f32 %v1937_v21, 0.0  ;;  %5906 = vst [vmem:[#allocation140_spill] sm:$0xff] %v4844_v39 }
 0x2c7   :  { %v1543_v31 = vpop.f32.mrf.mxu2 }
 0x2c8   :  { %v1712_v47 = vpop.f32.mrf.mxu3  ;;  %v1544_v50 = vadd.f32 %v1543_v31, %v4360_v48 }
 0x2ca   :  { %2154 = vmatpush.bf16.msrb.mxu1 %v2125_v53  ;;  %v1713_v57 = vadd.f32 %v1712_v47, %v1544_v50  ;;  %v3624_v47 = vld [vmem:[#allocation2 + $0x368] sm:$0xf]  ;;  %v3626_v53 = vld [vmem:[#allocation2 + $0x378] sm:$0xf0] }
 0x2cb   :  { %v1938_v2 = vpop.f32.mrf.mxu0 }
 0x2cc   :  { %v1939_v44 = vadd.f32 %v4739_v4, %v1938_v2 }
 0x2ce   :  { %v2073_v10 = vmax.f32 %v1939_v44, 0.0  ;;  %2155 = vmatpush.bf16.msrb.mxu1 %v2124_v30 }
 0x2cf   :  { %v1545_v24 = vpop.f32.mrf.mxu2 }
 0x2d0   :  { %v1714_v5 = vpop.f32.mrf.mxu3  ;;  %v1546_v38 = vadd.f32 %v1545_v24, %v4368_v3  ;;  %v4846_v22 = vpack.c.bf16 %v2073_v10, %v2072_v34 }
 0x2d2   :  { %v1715_v55 = vadd.f32 %v1714_v5, %v1546_v38  ;;  %2156 = vmatpush.bf16.msrb.mxu1 %v4785_v1  ;;  %v3997_v1 = vld [vmem:[#allocation2 + $0x374] sm:$0xf0]  ;;  %v3640_v5 = vld [vmem:[#allocation2 + $0x388] sm:$0xf] }
 0x2d3   :  { %v1941_v43 = vpop.f32.mrf.mxu0  ;;  %v4858_v7 = vor.u32 %v3997_v1, %v3624_v47  ;;  %v4001_v38 = vld [vmem:[#allocation2 + $0x394] sm:$0xf0] }
 0x2d4   :  { %v1804_v41 = vpack.c.bf16 %v1715_v55, %v1713_v57  ;;  %1587 = vmatmul.bf16.gmra.mxu2 %v4842_v40  ;;  %v1942_v60 = vadd.f32 %v4739_v4, %v1941_v43  ;;  %v3999_v57 = vld [vmem:[#allocation2 + $0x38c] sm:$0xf]  ;;  %v5971_v40 = vld [vmem:[#allocation25_spill] sm:$0xff] }
 0x2d5   :  { %1756 = vmatmul.bf16.gmra.mxu3 %v4844_v39  ;;  %5907 = vst [vmem:[#allocation141_spill] sm:$0xff] %v4858_v7 }
 0x2d6   :  { %1980 = vmatmul.bf16.gmra.mxu0 %v1804_v41  ;;  %2157 = vmatpush.bf16.msrb.mxu1 %v4773_v37  ;;  %v2074_v16 = vmax.f32 %v1942_v60, 0.0 }
 0x2d7   :  { %v1548_v48 = vpop.f32.mrf.mxu2 }
 0x2d8   :  { %v1717_v3 = vpop.f32.mrf.mxu3  ;;  %v1549_v21 = vadd.f32 %v1548_v48, %v4376_v12 }
 0x2da   :  { %2158 = vmatpush.bf16.msrb.mxu1 %v4761_v62  ;;  %v4860_v62 = vor.u32 %v3995_v29, %v3626_v53  ;;  %v1718_v0 = vadd.f32 %v1717_v3, %v1549_v21 }
 0x2db   :  { %v1943_v15 = vpop.f32.mrf.mxu0 }
 0x2dc   :  { %v1944_v31 = vadd.f32 %v4739_v4, %v1943_v15  ;;  %5908 = vst [vmem:[#allocation142_spill] sm:$0xff] %v4860_v62  ;;  %v4871_v15 = vor.u32 %v4001_v38, %v3640_v5 }
 0x2de   :  { %v2075_v2 = vmax.f32 %v1944_v31, 0.0  ;;  %2159 = vmatpush.bf16.msrb.mxu1 %v4749_v23  ;;  %5909 = vst [vmem:[#allocation143_spill] sm:$0xff] %v4871_v15 }
 0x2df   :  { %v1550_v37 = vpop.f32.mrf.mxu2 }
 0x2e0   :  { %v1719_v44 = vpop.f32.mrf.mxu3  ;;  %v1551_v30 = vadd.f32 %v1550_v37, %v4384_v36  ;;  %v4862_v26 = vpack.c.bf16 %v2075_v2, %v2074_v16 }
 0x2e1   :  { %2160 = vmatmul.bf16.vlgmr.msrb.gmra.mxu1 %v4320_v61  ;;  %v3642_v61 = vld [vmem:[#allocation2 + $0x398] sm:$0xf0] }
 0x2e2   :  { %v1720_v56 = vadd.f32 %v1719_v44, %v1551_v30  ;;  %v4873_v31 = vor.u32 %v3999_v57, %v3642_v61  ;;  %v3656_v44 = vld [vmem:[#allocation2 + $0x3a8] sm:$0xf]  ;;  %v4005_v30 = vld [vmem:[#allocation2 + $0x3b4] sm:$0xf0] }
 0x2e3   :  { %v1946_v34 = vpop.f32.mrf.mxu0 }
 0x2e4   :  { %v1805_v50 = vpack.c.bf16 %v1720_v56, %v1718_v0  ;;  %1592 = vmatmul.bf16.gmra.mxu2 %v4858_v7  ;;  %v1947_v36 = vadd.f32 %v4739_v4, %v1946_v34  ;;  %5910 = vst [vmem:[#allocation144_spill] sm:$0xff] %v4873_v31  ;;  %v4003_v0 = vld [vmem:[#allocation2 + $0x3ac] sm:$0xf] }
 0x2e5   :  { %1761 = vmatmul.bf16.gmra.mxu3 %v4860_v62 }
 0x2e6   :  { %1985 = vmatmul.bf16.gmra.mxu0 %v1805_v50  ;;  %v2076_v55 = vmax.f32 %v1947_v36, 0.0 }
 0x2e7   :  { %v1553_v12 = vpop.f32.mrf.mxu2 }
 0x2e8   :  { %v1722_v23 = vpop.f32.mrf.mxu3  ;;  %v1554_v43 = vadd.f32 %v1553_v12, %v4392_v49 }
 0x2ea   :  { %v1723_v1 = vadd.f32 %v1722_v23, %v1554_v43 }
 0x2eb   :  { %v1948_v10 = vpop.f32.mrf.mxu0 }
 0x2ec   :  { %v1949_v24 = vadd.f32 %v4739_v4, %v1948_v10  ;;  %v4884_v10 = vor.u32 %v4005_v30, %v3656_v44 }
 0x2ee   :  { %v2077_v41 = vmax.f32 %v1949_v24, 0.0  ;;  %5911 = vst [vmem:[#allocation145_spill] sm:$0xff] %v4884_v10 }
 0x2ef   :  { %v1555_v48 = vpop.f32.mrf.mxu2 }
 0x2f0   :  { %v1724_v3 = vpop.f32.mrf.mxu3  ;;  %v1556_v60 = vadd.f32 %v1555_v48, %v4400_v14  ;;  %v4875_v47 = vpack.c.bf16 %v2077_v41, %v2076_v55  ;;  %v3672_v41 = vld [vmem:[#allocation2 + $0x3c8] sm:$0xf]  ;;  %v4009_v48 = vld [vmem:[#allocation2 + $0x3d4] sm:$0xf0] }
 0x2f1   :  { %2165 = vmatmul.bf16.gmra.mxu1 %v4332_v9  ;;  %v3658_v9 = vld [vmem:[#allocation2 + $0x3b8] sm:$0xf0] }
 0x2f2   :  { %v1725_v29 = vadd.f32 %v1724_v3, %v1556_v60  ;;  %v4886_v24 = vor.u32 %v4003_v0, %v3658_v9  ;;  %v4007_v3 = vld [vmem:[#allocation2 + $0x3cc] sm:$0xf]  ;;  %v3674_v60 = vld [vmem:[#allocation2 + $0x3d8] sm:$0xf0]  ;;  %v3688_v0 = vld [vmem:[#allocation2 + $0x3e8] sm:$0xf] }
 0x2f3   :  { %v1951_v53 = vpop.f32.mrf.mxu0  ;;  %v4011_v9 = vld [vmem:[#allocation2 + $0x3ec] sm:$0xf] }
 0x2f4   :  { %v1806_v16 = vpack.c.bf16 %v1725_v29, %v1723_v1  ;;  %1597 = vmatmul.bf16.gmra.mxu2 %v4871_v15  ;;  %v1952_v14 = vadd.f32 %v4739_v4, %v1951_v53  ;;  %5912 = vst [vmem:[#allocation146_spill] sm:$0xff] %v4886_v24 }
 0x2f5   :  { %1766 = vmatmul.bf16.gmra.mxu3 %v4873_v31  ;;  %v5963_v31 = vld [vmem:[#allocation70_spill] sm:$0xff] }
 0x2f6   :  { %1990 = vmatmul.bf16.gmra.mxu0 %v1806_v16  ;;  %v2078_v56 = vmax.f32 %v1952_v14, 0.0  ;;  %v4899_v16 = vor.u32 %v4009_v48, %v3672_v41 }
 0x2f7   :  { %v1558_v49 = vpop.f32.mrf.mxu2 }
 0x2f8   :  { %v1727_v21 = vpop.f32.mrf.mxu3  ;;  %v1559_v34 = vadd.f32 %v1558_v49, %v4408_v46  ;;  %5913 = vst [vmem:[#allocation147_spill] sm:$0xff] %v4899_v16  ;;  %v4901_v49 = vor.u32 %v4007_v3, %v3674_v60 }
 0x2fa   :  { %v1728_v38 = vadd.f32 %v1727_v21, %v1559_v34  ;;  %5914 = vst [vmem:[#allocation148_spill] sm:$0xff] %v4901_v49 }
 0x2fb   :  { %v1953_v2 = vpop.f32.mrf.mxu0 }
 0x2fc   :  { %v1954_v37 = vadd.f32 %v4739_v4, %v1953_v2 }
 0x2fe   :  { %v2079_v50 = vmax.f32 %v1954_v37, 0.0 }
 0x2ff   :  { %v1560_v12 = vpop.f32.mrf.mxu2 }
 0x300   :  { %v1729_v23 = vpop.f32.mrf.mxu3  ;;  %v1561_v36 = vadd.f32 %v1560_v12, %v4416_v35  ;;  %v4888_v5 = vpack.c.bf16 %v2079_v50, %v2078_v56  ;;  %v3690_v56 = vld [vmem:[#allocation2 + $0x3f8] sm:$0xf0] }
 0x301   :  { %2170 = vmatmul.bf16.gmra.mxu1 %v4346_v28 }
 0x302   :  { %v1730_v57 = vadd.f32 %v1729_v23, %v1561_v36  ;;  %v4910_v36 = vor.u32 %v4011_v9, %v3690_v56 }
 0x303   :  { %v4891_v61 = vpop.f32.mrf.mxu0 }
 0x304   :  { %v1807_v55 = vpack.c.bf16 %v1730_v57, %v1728_v38  ;;  %1602 = vmatmul.bf16.gmra.mxu2 %v4884_v10  ;;  %5916 = vst [vmem:[#allocation150_spill] sm:$0xff] %v4910_v36  ;;  %v5968_v10 = vld [vmem:[#allocation76_spill] sm:$0xff] }
 0x305   :  { %1771 = vmatmul.bf16.gmra.mxu3 %v4886_v24  ;;  %v5962_v24 = vld [vmem:[#allocation78_spill] sm:$0xff] }
 0x306   :  { %1995 = vmatmul.bf16.gmra.mxu0 %v1807_v55 }
 0x307   :  { %v1563_v46 = vpop.f32.mrf.mxu2 }
 0x308   :  { %v1732_v35 = vpop.f32.mrf.mxu3  ;;  %v1564_v28 = vadd.f32 %v1563_v46, %v4424_v25 }
 0x30a   :  { %v1733_v21 = vadd.f32 %v1732_v35, %v1564_v28 }
 0x30b   :  { %v4895_v43 = vpop.f32.mrf.mxu0 }
 0x30f   :  { %v1565_v1 = vpop.f32.mrf.mxu2 }
 0x310   :  { %v1734_v29 = vpop.f32.mrf.mxu3  ;;  %v1566_v53 = vadd.f32 %v1565_v1, %v4432_v17  ;;  %v4013_v17 = vld [vmem:[#allocation2 + $0x3f4] sm:$0xf0] }
 0x311   :  { %2175 = vmatmul.bf16.gmra.mxu1 %v4362_v54  ;;  %v4908_v23 = vor.u32 %v4013_v17, %v3688_v0 }
 0x312   :  { %v1735_v14 = vadd.f32 %v1734_v29, %v1566_v53 }
 0x313   :  { %v1961_v2 = vpop.f32.mrf.mxu0  ;;  %5915 = vst [vmem:[#allocation149_spill] sm:$0xff] %v4908_v23 }
 0x314   :  { %v1808_v37 = vpack.c.bf16 %v1735_v14, %v1733_v21  ;;  %1607 = vmatmul.bf16.gmra.mxu2 %v4899_v16  ;;  %v5967_v16 = vld [vmem:[#allocation84_spill] sm:$0xff] }
 0x315   :  { %1776 = vmatmul.bf16.gmra.mxu3 %v4901_v49  ;;  %v5961_v49 = vld [vmem:[#allocation21_spill] sm:$0xff] }
 0x316   :  { %2000 = vmatmul.bf16.gmra.mxu0 %v1808_v37 }
 0x317   :  { %v1568_v25 = vpop.f32.mrf.mxu2 }
 0x318   :  { %v1737_v44 = vpop.f32.mrf.mxu3  ;;  %v1569_v34 = vadd.f32 %v1568_v25, %v4440_v8 }
 0x31a   :  { %v1738_v38 = vadd.f32 %v1737_v44, %v1569_v34 }
 0x31b   :  { %v1963_v30 = vpop.f32.mrf.mxu0 }
 0x31c   :  { %v1964_v56 = vadd.f32 %v4739_v4, %v1963_v30  ;;  %v1957_v30 = vadd.f32 %v4739_v4, %v4891_v61 }
 0x31f   :  { %v1570_v50 = vpop.f32.mrf.mxu2 }
 0x320   :  { %v1739_v54 = vpop.f32.mrf.mxu3  ;;  %v1571_v12 = vadd.f32 %v1570_v50, %v4450_v13 }
 0x321   :  { %2180 = vmatmul.bf16.gmra.mxu1 %v4378_v18 }
 0x322   :  { %v1740_v57 = vadd.f32 %v1739_v54, %v1571_v12  ;;  %v5917_v54 = vld [vmem:[#allocation65_spill] sm:$0xff] }
 0x323   :  { %v1966_v55 = vpop.f32.mrf.mxu0 }
 0x324   :  { %v1809_v46 = vpack.c.bf16 %v1740_v57, %v1738_v38  ;;  %1612 = vmatmul.bf16.gmra.mxu2 %v4908_v23  ;;  %v1967_v44 = vadd.f32 %v4739_v4, %v1966_v55  ;;  %v5918_v38 = vld [vmem:[#allocation47_spill] sm:$0xff]  ;;  %v1962_v57 = vadd.f32 %v4739_v4, %v1961_v2 }
 0x325   :  { %1781 = vmatmul.bf16.gmra.mxu3 %v4910_v36  ;;  %v5966_v23 = vld [vmem:[#allocation23_spill] sm:$0xff] }
 0x326   :  { %2005 = vmatmul.bf16.gmra.mxu0 %v1809_v46  ;;  %v2084_v46 = vmax.f32 %v1967_v44, 0.0 }
 0x327   :  { %v1573_v8 = vpop.f32.mrf.mxu2 }
 0x328   :  { %v1742_v35 = vpop.f32.mrf.mxu3  ;;  %v1574_v13 = vadd.f32 %v1573_v8, %v4460_v45 }
 0x32a   :  { %v1743_v18 = vadd.f32 %v1742_v35, %v1574_v13 }
 0x32b   :  { %v1968_v41 = vpop.f32.mrf.mxu0 }
 0x32c   :  { %v1969_v25 = vadd.f32 %v4739_v4, %v1968_v41  ;;  %v2083_v41 = vmax.f32 %v1964_v56, 0.0 }
 0x32e   :  { %v2085_v34 = vmax.f32 %v1969_v25, 0.0 }
 0x32f   :  { %v1575_v48 = vpop.f32.mrf.mxu2 }
 0x330   :  { %v1744_v3 = vpop.f32.mrf.mxu3  ;;  %v1576_v60 = vadd.f32 %v1575_v48, %v4470_v33  ;;  %v2134_v48 = vpack.c.bf16 %v2085_v34, %v2084_v46 }
 0x331   :  { %2185 = vmatmul.bf16.gmra.mxu1 %v4394_v59 }
 0x332   :  { %v1745_v28 = vadd.f32 %v1744_v3, %v1576_v60  ;;  %v2082_v3 = vmax.f32 %v1962_v57, 0.0 }
 0x333   :  { %v1971_v1 = vpop.f32.mrf.mxu0 }
 0x334   :  { %v1810_v29 = vpack.c.bf16 %v1745_v28, %v1743_v18  ;;  %v1972_v14 = vadd.f32 %v4739_v4, %v1971_v1  ;;  %v2133_v28 = vpack.c.bf16 %v2083_v41, %v2082_v3  ;;  %v2080_v1 = vmax.f32 %v1957_v30, 0.0  ;;  %v5924_v3 = vld [vmem:[#allocation55_spill] sm:$0xff] }
 0x336   :  { %2010 = vmatmul.bf16.gmra.mxu0 %v1810_v29  ;;  %v2086_v0 = vmax.f32 %v1972_v14, 0.0 }
 0x337   :  { %v1578_v53 = vpop.f32.mrf.mxu2 }
 0x338   :  { %v1747_v21 = vpop.f32.mrf.mxu3  ;;  %v1579_v33 = vadd.f32 %v1578_v53, %v4480_v27  ;;  %v1959_v27 = vadd.f32 %v4739_v4, %v4895_v43 }
 0x33a   :  { %v1748_v8 = vadd.f32 %v1747_v21, %v1579_v33  ;;  %v2081_v2 = vmax.f32 %v1959_v27, 0.0 }
 0x33b   :  { %v1973_v37 = vpop.f32.mrf.mxu0 }
 0x33c   :  { %v1974_v45 = vadd.f32 %v4739_v4, %v1973_v37  ;;  %v2132_v21 = vpack.c.bf16 %v2081_v2, %v2080_v1  ;;  %v5919_v37 = vld [vmem:[#allocation68_spill] sm:$0xff] }
 0x33e   :  { %v2087_v59 = vmax.f32 %v1974_v45, 0.0 }
 0x33f   :  { %v1580_v17 = vpop.f32.mrf.mxu2 }
 0x340   :  { %v1749_v9 = vpop.f32.mrf.mxu3  ;;  %v2135_v50 = vpack.c.bf16 %v2087_v59, %v2086_v0  ;;  %v1581_v12 = vadd.f32 %v1580_v17, %v5917_v54  ;;  %v5920_v0 = vld [vmem:[#allocation71_spill] sm:$0xff] }
 0x341   :  { %2190 = vmatmul.bf16.gmra.mxu1 %v5918_v38  ;;  %v5921_v17 = vld [vmem:[#allocation51_spill] sm:$0xff] }
 0x342   :  { %v1750_v35 = vadd.f32 %v1749_v9, %v1581_v12  ;;  %2321 = vmatpush.bf16.msra.mxu2 %v2135_v50 }
 0x343   :  { %v1976_v55 = vpop.f32.mrf.mxu0 }
 0x344   :  { %v1811_v13 = vpack.c.bf16 %v1750_v35, %v1748_v8  ;;  %v1977_v29 = vadd.f32 %v4739_v4, %v1976_v55  ;;  %v5922_v35 = vld [vmem:[#allocation74_spill] sm:$0xff] }
 0x346   :  { %2015 = vmatmul.bf16.gmra.mxu0 %v1811_v13  ;;  %2322 = vmatpush.bf16.msra.mxu2 %v2134_v48  ;;  %v2088_v14 = vmax.f32 %v1977_v29, 0.0 }
 0x347   :  { %v1583_v60 = vpop.f32.mrf.mxu2 }
 0x348   :  { %v1752_v18 = vpop.f32.mrf.mxu3  ;;  %v1584_v25 = vadd.f32 %v1583_v60, %v5919_v37  ;;  %v5926_v37 = vld [vmem:[#allocation80_spill] sm:$0xff] }
 0x34a   :  { %2323 = vmatpush.bf16.msra.mxu2 %v2133_v28  ;;  %v1753_v9 = vadd.f32 %v1752_v18, %v1584_v25 }
 0x34b   :  { %v1978_v53 = vpop.f32.mrf.mxu0 }
 0x34c   :  { %v1979_v43 = vadd.f32 %v4739_v4, %v1978_v53 }
 0x34e   :  { %v2089_v45 = vmax.f32 %v1979_v43, 0.0  ;;  %2324 = vmatpush.bf16.msra.mxu2 %v2132_v21 }
 0x34f   :  { %v1585_v61 = vpop.f32.mrf.mxu2 }
 0x350   :  { %v1754_v44 = vpop.f32.mrf.mxu3  ;;  %v1586_v33 = vadd.f32 %v1585_v61, %v5920_v0  ;;  %v4935_v59 = vpack.c.bf16 %v2089_v45, %v2088_v14 }
 0x351   :  { %2195 = vmatmul.bf16.gmra.mxu1 %v5921_v17 }
 0x352   :  { %v1755_v56 = vadd.f32 %v1754_v44, %v1586_v33  ;;  %2325 = vmatpush.bf16.msra.mxu2 %v4888_v5  ;;  %v5927_v33 = vld [vmem:[#allocation83_spill] sm:$0xff] }
 0x353   :  { %v1981_v34 = vpop.f32.mrf.mxu0 }
 0x354   :  { %v1812_v50 = vpack.c.bf16 %v1755_v56, %v1753_v9  ;;  %v1982_v38 = vadd.f32 %v4739_v4, %v1981_v34  ;;  %v5928_v56 = vld [vmem:[#allocation59_spill] sm:$0xff]  ;;  %v5929_v34 = vld [vmem:[#allocation32_spill] sm:$0xff] }
 0x356   :  { %2020 = vmatmul.bf16.gmra.mxu0 %v1812_v50  ;;  %2326 = vmatpush.bf16.msra.mxu2 %v4875_v47  ;;  %v2090_v8 = vmax.f32 %v1982_v38, 0.0  ;;  %v5923_v47 = vld [vmem:[#allocation77_spill] sm:$0xff] }
 0x357   :  { %v1588_v54 = vpop.f32.mrf.mxu2 }
 0x358   :  { %v1757_v12 = vpop.f32.mrf.mxu3  ;;  %v1589_v55 = vadd.f32 %v1588_v54, %v5922_v35 }
 0x35a   :  { %2327 = vmatpush.bf16.msra.mxu2 %v4862_v26  ;;  %v5925_v26 = vld [vmem:[#allocation29_spill] sm:$0xff]  ;;  %v1758_v60 = vadd.f32 %v1757_v12, %v1589_v55 }
 0x35b   :  { %v1983_v57 = vpop.f32.mrf.mxu0 }
 0x35c   :  { %v1984_v46 = vadd.f32 %v4739_v4, %v1983_v57 }
 0x35e   :  { %v2091_v27 = vmax.f32 %v1984_v46, 0.0  ;;  %2328 = vmatpush.bf16.msra.mxu2 %v4846_v22  ;;  %v4945_v5 = vpop.f32.mrf.mxu1 }
 0x35f   :  { %v1590_v41 = vpop.f32.mrf.mxu2 }
 0x360   :  { %v1759_v13 = vpop.f32.mrf.mxu3  ;;  %v1591_v48 = vadd.f32 %v1590_v41, %v5923_v47  ;;  %v4948_v30 = vpack.c.bf16 %v2091_v27, %v2090_v8 }
 0x361   :  { %2200 = vmatmul.bf16.gmra.mxu1 %v5924_v3  ;;  %2329 = vmatmul.bf16.vlgmr.msra.gmra.mxu2 %v5925_v26 }
 0x362   :  { %v1760_v18 = vadd.f32 %v1759_v13, %v1591_v48  ;;  %v5930_v13 = vld [vmem:[#allocation86_spill] sm:$0xff] }
 0x363   :  { %v1986_v2 = vpop.f32.mrf.mxu0 }
 0x364   :  { %v1813_v28 = vpack.c.bf16 %v1760_v18, %v1758_v60  ;;  %v1987_v53 = vadd.f32 %v4739_v4, %v1986_v2  ;;  %v5931_v18 = vld [vmem:[#allocation89_spill] sm:$0xff] }
 0x366   :  { %2025 = vmatmul.bf16.gmra.mxu0 %v1813_v28  ;;  %v4952_v1 = vpop.f32.mrf.mxu1  ;;  %v2092_v14 = vmax.f32 %v1987_v53, 0.0 }
 0x367   :  { %v1593_v22 = vpop.f32.mrf.mxu2 }
 0x368   :  { %v1762_v29 = vpop.f32.mrf.mxu3  ;;  %v1594_v25 = vadd.f32 %v1593_v22, %v5926_v37  ;;  %v5932_v22 = vld [vmem:[#allocation63_spill] sm:$0xff] }
 0x36a   :  { %v1763_v50 = vadd.f32 %v1762_v29, %v1594_v25  ;;  %v5933_v29 = vld [vmem:[#allocation35_spill] sm:$0xff] }
 0x36b   :  { %v1988_v43 = vpop.f32.mrf.mxu0 }
 0x36c   :  { %v1989_v21 = vadd.f32 %v4739_v4, %v1988_v43 }
 0x36e   :  { %v2093_v45 = vmax.f32 %v1989_v21, 0.0  ;;  %v4957_v61 = vpop.f32.mrf.mxu1 }
 0x36f   :  { %v1595_v44 = vpop.f32.mrf.mxu2 }
 0x370   :  { %v1764_v0 = vpop.f32.mrf.mxu3  ;;  %v1596_v17 = vadd.f32 %v1595_v44, %v5927_v33  ;;  %v4960_v9 = vpack.c.bf16 %v2093_v45, %v2092_v14  ;;  %v5934_v44 = vld [vmem:[#allocation92_spill] sm:$0xff] }
 0x371   :  { %2205 = vmatmul.bf16.gmra.mxu1 %v5928_v56  ;;  %2334 = vmatmul.bf16.gmra.mxu2 %v5929_v34  ;;  %v5935_v34 = vld [vmem:[#allocation95_spill] sm:$0xff] }
 0x372   :  { %v1765_v54 = vadd.f32 %v1764_v0, %v1596_v17 }
 0x373   :  { %v1991_v12 = vpop.f32.mrf.mxu0 }
 0x374   :  { %v1814_v38 = vpack.c.bf16 %v1765_v54, %v1763_v50  ;;  %v1992_v35 = vadd.f32 %v4739_v4, %v1991_v12  ;;  %v5936_v54 = vld [vmem:[#allocation69_spill] sm:$0xff]  ;;  %v5937_v12 = vld [vmem:[#allocation38_spill] sm:$0xff] }
 0x376   :  { %2030 = vmatmul.bf16.gmra.mxu0 %v1814_v38  ;;  %v4964_v57 = vpop.f32.mrf.mxu1  ;;  %v2094_v41 = vmax.f32 %v1992_v35, 0.0 }
 0x377   :  { %v1598_v46 = vpop.f32.mrf.mxu2 }
 0x378   :  { %v1767_v8 = vpop.f32.mrf.mxu3  ;;  %v1599_v47 = vadd.f32 %v1598_v46, %v5930_v13 }
 0x37a   :  { %v1768_v53 = vadd.f32 %v1767_v8, %v1599_v47  ;;  %v5938_v47 = vld [vmem:[#allocation98_spill] sm:$0xff] }
 0x37b   :  { %v1993_v55 = vpop.f32.mrf.mxu0 }
 0x37c   :  { %v1994_v27 = vadd.f32 %v4739_v4, %v1993_v55 }
 0x37e   :  { %v2095_v48 = vmax.f32 %v1994_v27, 0.0  ;;  %v4969_v3 = vpop.f32.mrf.mxu1 }
 0x37f   :  { %v1600_v26 = vpop.f32.mrf.mxu2 }
 0x380   :  { %v1769_v60 = vpop.f32.mrf.mxu3  ;;  %v1601_v2 = vadd.f32 %v1600_v26, %v5931_v18  ;;  %v4972_v28 = vpack.c.bf16 %v2095_v48, %v2094_v41 }
 0x381   :  { %2210 = vmatmul.bf16.gmra.mxu1 %v5932_v22  ;;  %2339 = vmatmul.bf16.gmra.mxu2 %v5933_v29  ;;  %v5940_v29 = vld [vmem:[#allocation75_spill] sm:$0xff] }
 0x382   :  { %v1770_v43 = vadd.f32 %v1769_v60, %v1601_v2  ;;  %v5939_v2 = vld [vmem:[#allocation99_spill] sm:$0xff] }
 0x383   :  { %v4976_v21 = vpop.f32.mrf.mxu0 }
 0x384   :  { %v1815_v4 = vpack.c.bf16 %v1770_v43, %v1768_v53  ;;  %v5941_v53 = vld [vmem:[#allocation41_spill] sm:$0xff] }
 0x386   :  { %2035 = vmatmul.bf16.gmra.mxu0 %v1815_v4  ;;  %v4978_v14 = vpop.f32.mrf.mxu1 }
 0x387   :  { %v1603_v37 = vpop.f32.mrf.mxu2 }
 0x388   :  { %v1772_v25 = vpop.f32.mrf.mxu3  ;;  %v1604_v0 = vadd.f32 %v1603_v37, %v5934_v44 }
 0x38a   :  { %v1773_v38 = vadd.f32 %v1772_v25, %v1604_v0 }
 0x38b   :  { %v4980_v45 = vpop.f32.mrf.mxu0 }
 0x38e   :  { %v4983_v33 = vpop.f32.mrf.mxu1 }
 0x38f   :  { %v1605_v17 = vpop.f32.mrf.mxu2 }
 0x390   :  { %v1774_v56 = vpop.f32.mrf.mxu3  ;;  %v1606_v50 = vadd.f32 %v1605_v17, %v5935_v34  ;;  %v5942_v34 = vld [vmem:[#allocation102_spill] sm:$0xff] }
 0x391   :  { %2215 = vmatmul.bf16.gmra.mxu1 %v5936_v54  ;;  %2344 = vmatmul.bf16.gmra.mxu2 %v5937_v12 }
 0x392   :  { %v1775_v46 = vadd.f32 %v1774_v56, %v1606_v50 }
 0x393   :  { %v2001_v8 = vpop.f32.mrf.mxu0 }
 0x394   :  { %v1816_v35 = vpack.c.bf16 %v1775_v46, %v1773_v38  ;;  %v5943_v38 = vld [vmem:[#allocation103_spill] sm:$0xff] }
 0x396   :  { %2040 = vmatmul.bf16.gmra.mxu0 %v1816_v35  ;;  %v4988_v55 = vpop.f32.mrf.mxu1 }
 0x397   :  { %v1608_v27 = vpop.f32.mrf.mxu2 }
 0x398   :  { %v1777_v41 = vpop.f32.mrf.mxu3  ;;  %v1609_v48 = vadd.f32 %v1608_v27, %v5938_v47  ;;  %v5944_v27 = vld [vmem:[#allocation81_spill] sm:$0xff] }
 0x39a   :  { %v1778_v43 = vadd.f32 %v1777_v41, %v1609_v48  ;;  %v5945_v41 = vld [vmem:[#allocation44_spill] sm:$0xff] }
 0x39b   :  { %v2003_v13 = vpop.f32.mrf.mxu0 }
 0x39e   :  { %v4991_v26 = vpop.f32.mrf.mxu1 }
 0x39f   :  { %v1610_v60 = vpop.f32.mrf.mxu2 }
 0x3a0   :  { %v1779_v18 = vpop.f32.mrf.mxu3  ;;  %v1611_v22 = vadd.f32 %v1610_v60, %v5939_v2 }
 0x3a1   :  { %2220 = vmatmul.bf16.gmra.mxu1 %v5940_v29  ;;  %2349 = vmatmul.bf16.gmra.mxu2 %v5941_v53 }
 0x3a2   :  { %v1780_v4 = vadd.f32 %v1779_v18, %v1611_v22  ;;  %v5009_v22 = vld [vmem:[%s5656_s3] ss:$0 sm:$0xff] }
 0x3a3   :  { %v2006_v37 = vpop.f32.mrf.mxu0 }
 0x3a4   :  { %v1817_v25 = vpack.c.bf16 %v1780_v4, %v1778_v43 }
 0x3a6   :  { %2045 = vmatmul.bf16.gmra.mxu0 %v1817_v25  ;;  %v4996_v44 = vpop.f32.mrf.mxu1  ;;  %v2007_v25 = vadd.f32 %v5009_v22, %v2006_v37  ;;  %v1999_v37 = vadd.f32 %v5009_v22, %v4980_v45  ;;  %v5948_v45 = vld [vmem:[#allocation93_spill] sm:$0xff] }
 0x3a7   :  { %v1613_v0 = vpop.f32.mrf.mxu2 }
 0x3a8   :  { %v1782_v17 = vpop.f32.mrf.mxu3  ;;  %v1614_v50 = vadd.f32 %v1613_v0, %v5942_v34 }
 0x3aa   :  { %v1783_v47 = vadd.f32 %v1782_v17, %v1614_v50  ;;  %v2004_v50 = vadd.f32 %v5009_v22, %v2003_v13  ;;  %v1997_v13 = vadd.f32 %v5009_v22, %v4976_v21 }
 0x3ab   :  { %v2008_v56 = vpop.f32.mrf.mxu0 }
 0x3ac   :  { %v2009_v43 = vadd.f32 %v5009_v22, %v2008_v56 }
 0x3ae   :  { %v4999_v54 = vpop.f32.mrf.mxu1 }
 0x3af   :  { %v1615_v12 = vpop.f32.mrf.mxu2 }
 0x3b0   :  { %v1616_v46 = vadd.f32 %v1615_v12, %v5943_v38  ;;  %v1784_v35 = vpop.f32.mrf.mxu3  ;;  %v2101_v12 = vmax.f32 %v2009_v43, 0.0  ;;  %v2096_v43 = vmax.f32 %v1997_v13, 0.0 }
 0x3b1   :  { %2225 = vmatmul.bf16.gmra.mxu1 %v5944_v27  ;;  %2354 = vmatmul.bf16.gmra.mxu2 %v5945_v41  ;;  %v2002_v27 = vadd.f32 %v5009_v22, %v2001_v8  ;;  %v2100_v41 = vmax.f32 %v2007_v25, 0.0 }
 0x3b2   :  { %v1785_v48 = vadd.f32 %v1784_v35, %v1616_v46  ;;  %v5946_v46 = vld [vmem:[#allocation87_spill] sm:$0xff]  ;;  %v5947_v35 = vld [vmem:[#allocation48_spill] sm:$0xff] }
 0x3b3   :  { %v2011_v60 = vpop.f32.mrf.mxu0 }
 0x3b4   :  { %v1818_v18 = vpack.c.bf16 %v1785_v48, %v1783_v47  ;;  %v2012_v29 = vadd.f32 %v5009_v22, %v2011_v60  ;;  %v2099_v47 = vmax.f32 %v2004_v50, 0.0  ;;  %v2142_v48 = vpack.c.bf16 %v2101_v12, %v2100_v41 }
 0x3b5   :  { %v2098_v60 = vmax.f32 %v2002_v27, 0.0 }
 0x3b6   :  { %2050 = vmatmul.bf16.gmra.mxu0 %v1818_v18  ;;  %v5004_v2 = vpop.f32.mrf.mxu1  ;;  %v2102_v0 = vmax.f32 %v2012_v29, 0.0  ;;  %v2097_v29 = vmax.f32 %v1999_v37, 0.0 }
 0x3bb   :  { %v2013_v53 = vpop.f32.mrf.mxu0 }
 0x3bc   :  { %v2014_v4 = vadd.f32 %v5009_v22, %v2013_v53  ;;  %v2141_v53 = vpack.c.bf16 %v2099_v47, %v2098_v60  ;;  %v5954_v47 = vld [vmem:[#allocation66_spill] sm:$0xff] }
 0x3be   :  { %v2103_v17 = vmax.f32 %v2014_v4, 0.0  ;;  %v5015_v34 = vpop.f32.mrf.mxu1  ;;  %v2140_v4 = vpack.c.bf16 %v2097_v29, %v2096_v43 }
 0x3c0   :  { %v2143_v38 = vpack.c.bf16 %v2103_v17, %v2102_v0  ;;  %v5949_v0 = vld [vmem:[#allocation52_spill] sm:$0xff] }
 0x3c1   :  { %2230 = vmatmul.bf16.gmra.mxu1 %v5946_v46  ;;  %2359 = vmatmul.bf16.gmra.mxu2 %v5947_v35  ;;  %v5951_v46 = vld [vmem:[#allocation61_spill] sm:$0xff]  ;;  %v5952_v35 = vld [vmem:[#allocation56_spill] sm:$0xff] }
 0x3c2   :  { %2490 = vmatpush.bf16.msra.mxu3 %v2143_v38  ;;  %v5950_v38 = vld [vmem:[#allocation15_spill] sm:$0xff] }
 0x3c3   :  { %v5021_v56 = vpop.f32.mrf.mxu0 }
 0x3c6   :  { %2491 = vmatpush.bf16.msra.mxu3 %v2142_v48  ;;  %v5027_v18 = vpop.f32.mrf.mxu1  ;;  %v5955_v48 = vld [vmem:[#allocation60_spill] sm:$0xff] }
 0x3ca   :  { %2492 = vmatpush.bf16.msra.mxu3 %v2141_v53 }
 0x3cb   :  { %v5029_v8 = vpop.f32.mrf.mxu0 }
 0x3ce   :  { %2493 = vmatpush.bf16.msra.mxu3 %v2140_v4  ;;  %v5031_v25 = vpop.f32.mrf.mxu1 }
 0x3d1   :  { %2235 = vmatmul.bf16.gmra.mxu1 %v5948_v45  ;;  %2364 = vmatmul.bf16.gmra.mxu2 %v5949_v0  ;;  %v5956_v45 = vld [vmem:[#allocation19_spill] sm:$0xff]  ;;  %v5957_v0 = vld [vmem:[#allocation72_spill] sm:$0xff] }
 0x3d2   :  { %2494 = vmatpush.bf16.msra.mxu3 %v4972_v28 }
 0x3d3   :  { %v5036_v21 = vpop.f32.mrf.mxu0 }
 0x3d6   :  { %2495 = vmatpush.bf16.msra.mxu3 %v4960_v9  ;;  %v5039_v17 = vpop.f32.mrf.mxu1 }
 0x3da   :  { %2496 = vmatpush.bf16.msra.mxu3 %v4948_v30 }
 0x3db   :  { %v5042_v50 = vpop.f32.mrf.mxu0 }
 0x3de   :  { %2497 = vmatpush.bf16.msra.mxu3 %v4935_v59  ;;  %v5045_v12 = vpop.f32.mrf.mxu1  ;;  %v5953_v59 = vld [vmem:[#allocation17_spill] sm:$0xff] }
 0x3e1   :  { %2240 = vmatmul.bf16.gmra.mxu1 %v5950_v38  ;;  %2498 = vmatmul.bf16.vlgmr.msra.gmra.mxu3 %v5951_v46  ;;  %v5958_v38 = vld [vmem:[#allocation64_spill] sm:$0xff] }
 0x3e2   :  { %2369 = vmatmul.bf16.gmra.mxu2 %v5952_v35 }
 0x3e3   :  { %v5050_v28 = vpop.f32.mrf.mxu0 }
 0x3e4   :  { %v5052_v27 = vpop.f32.mrf.mxu2 }
 0x3e6   :  { %v5054_v9 = vpop.f32.mrf.mxu1 }
 0x3eb   :  { %v5056_v41 = vpop.f32.mrf.mxu0 }
 0x3ec   :  { %v5058_v30 = vpop.f32.mrf.mxu2 }
 0x3ee   :  { %v5060_v37 = vpop.f32.mrf.mxu1 }
 0x3f1   :  { %2245 = vmatmul.bf16.gmra.mxu1 %v5953_v59  ;;  %2503 = vmatmul.bf16.gmra.mxu3 %v5954_v47 }
 0x3f2   :  { %2374 = vmatmul.bf16.gmra.mxu2 %v5955_v48 }
 0x3f3   :  { %v5065_v13 = vpop.f32.mrf.mxu0 }
 0x3f4   :  { %v5067_v60 = vpop.f32.mrf.mxu2 }
 0x3f6   :  { %v5069_v29 = vpop.f32.mrf.mxu1 }
 0x3fb   :  { %v5071_v53 = vpop.f32.mrf.mxu0 }
 0x3fc   :  { %v5073_v43 = vpop.f32.mrf.mxu2 }
 0x3fe   :  { %v5075_v4 = vpop.f32.mrf.mxu1 }
 0x401   :  { %2250 = vmatmul.bf16.gmra.mxu1 %v5956_v45  ;;  %2508 = vmatmul.bf16.gmra.mxu3 %v5957_v0 }
 0x402   :  { %2379 = vmatmul.bf16.gmra.mxu2 %v5958_v38 }
 0x403   :  { %v2036_v46 = vpop.f32.mrf.mxu0 }
 0x404   :  { %v5080_v35 = vpop.f32.mrf.mxu2 }
 0x406   :  { %v5082_v59 = vpop.f32.mrf.mxu1 }
 0x407   :  { %5959 = vst [vmem:[#allocation65_spill] sm:$0xff] %v5082_v59  ;;  %v5978_v59 = vld [vmem:[#allocation88_spill] sm:$0xff] }
 0x40b   :  { %v2038_v47 = vpop.f32.mrf.mxu0 }
 0x40c   :  { %v5084_v48 = vpop.f32.mrf.mxu2 }
 0x40e   :  { %v5086_v36 = vpop.f32.mrf.mxu1 }
 0x40f   :  { %5960 = vst [vmem:[#allocation47_spill] sm:$0xff] %v5086_v36 }
 0x411   :  { %2255 = vmatmul.bf16.gmra.mxu1 %v5961_v49  ;;  %2513 = vmatmul.bf16.gmra.mxu3 %v5962_v24 }
 0x412   :  { %2384 = vmatmul.bf16.gmra.mxu2 %v5963_v31 }
 0x413   :  { %v2041_v45 = vpop.f32.mrf.mxu0 }
 0x414   :  { %v5091_v0 = vpop.f32.mrf.mxu2 }
 0x416   :  { %v5093_v38 = vpop.f32.mrf.mxu1 }
 0x417   :  { %5964 = vst [vmem:[#allocation68_spill] sm:$0xff] %v5093_v38 }
 0x41b   :  { %v2043_v62 = vpop.f32.mrf.mxu0 }
 0x41c   :  { %v5095_v39 = vpop.f32.mrf.mxu2 }
 0x41e   :  { %v5097_v32 = vpop.f32.mrf.mxu1 }
 0x41f   :  { %5965 = vst [vmem:[#allocation71_spill] sm:$0xff] %v5097_v32 }
 0x421   :  { %2260 = vmatmul.bf16.gmra.mxu1 %v5966_v23  ;;  %2518 = vmatmul.bf16.gmra.mxu3 %v5967_v16 }
 0x422   :  { %2389 = vmatmul.bf16.gmra.mxu2 %v5968_v10 }
 0x423   :  { %v2046_v49 = vpop.f32.mrf.mxu0 }
 0x424   :  { %v5102_v24 = vpop.f32.mrf.mxu2 }
 0x426   :  { %v5104_v31 = vpop.f32.mrf.mxu1 }
 0x427   :  { %5969 = vst [vmem:[#allocation51_spill] sm:$0xff] %v5104_v31 }
 0x42b   :  { %v2048_v15 = vpop.f32.mrf.mxu0 }
 0x42c   :  { %v5106_v7 = vpop.f32.mrf.mxu2  ;;  %v2049_v20 = vadd.f32 %v5009_v22, %v2048_v15  ;;  %v2042_v15 = vadd.f32 %v5009_v22, %v2041_v45 }
 0x42e   :  { %v5108_v63 = vpop.f32.mrf.mxu1  ;;  %v2117_v38 = vmax.f32 %v2049_v20, 0.0  ;;  %v2114_v20 = vmax.f32 %v2042_v15, 0.0 }
 0x42f   :  { %5970 = vst [vmem:[#allocation74_spill] sm:$0xff] %v5108_v63 }
 0x431   :  { %2265 = vmatmul.bf16.gmra.mxu1 %v5971_v40  ;;  %2523 = vmatmul.bf16.gmra.mxu3 %v5972_v51  ;;  %v2047_v40 = vadd.f32 %v5009_v22, %v2046_v49 }
 0x432   :  { %2394 = vmatmul.bf16.gmra.mxu2 %v5973_v52  ;;  %v2044_v52 = vadd.f32 %v5009_v22, %v2043_v62 }
 0x433   :  { %v2051_v23 = vpop.f32.mrf.mxu0 }
 0x434   :  { %v5113_v16 = vpop.f32.mrf.mxu2  ;;  %v2052_v6 = vadd.f32 %v5009_v22, %v2051_v23  ;;  %v4061_v23 = vld [vmem:[#allocation8 + $0x38] sm:$0xff]  ;;  %v2115_v49 = vmax.f32 %v2044_v52, 0.0 }
 0x435   :  { %2928 = vmatpush.bf16.msra.mxu1 %v4061_v23  ;;  %v2024_v23 = vadd.f32 %v5009_v22, %v5042_v50  ;;  %v2017_v50 = vadd.f32 %v5009_v22, %v5021_v56  ;;  %v2331_v56 = vadd.f32 %v5052_v27, %v4945_v5  ;;  %v5987_v5 = vld [vmem:[#allocation36_spill] sm:$0xff]  ;;  %v5988_v27 = vld [vmem:[#allocation106_spill] sm:$0xff] }
 0x436   :  { %v5115_v10 = vpop.f32.mrf.mxu1  ;;  %v2118_v63 = vmax.f32 %v2052_v6, 0.0  ;;  %v2039_v6 = vadd.f32 %v5009_v22, %v2038_v47  ;;  %v2029_v47 = vadd.f32 %v5009_v22, %v5056_v41  ;;  %v2022_v41 = vadd.f32 %v5009_v22, %v5036_v21 }
 0x437   :  { %5974 = vst [vmem:[#allocation77_spill] sm:$0xff] %v5115_v10  ;;  %v5976_v10 = vld [vmem:[#allocation27_spill] sm:$0xff]  ;;  %v2104_v21 = vmax.f32 %v2017_v50, 0.0 }
 0x438   :  { %v2113_v45 = vmax.f32 %v2039_v6, 0.0  ;;  %v5980_v6 = vld [vmem:[#allocation100_spill] sm:$0xff] }
 0x43b   :  { %v2053_v19 = vpop.f32.mrf.mxu0 }
 0x43c   :  { %v2054_v31 = vadd.f32 %v5009_v22, %v2053_v19  ;;  %v5120_v32 = vpop.f32.mrf.mxu2  ;;  %v2116_v19 = vmax.f32 %v2047_v40, 0.0 }
 0x43e   :  { %v2119_v51 = vmax.f32 %v2054_v31, 0.0  ;;  %v5123_v11 = vpop.f32.mrf.mxu1  ;;  %v2150_v31 = vpack.c.bf16 %v2117_v38, %v2116_v19  ;;  %v5979_v19 = vld [vmem:[#allocation30_spill] sm:$0xff] }
 0x43f   :  { %5975 = vst [vmem:[#allocation55_spill] sm:$0xff] %v5123_v11 }
 0x440   :  { %v2151_v36 = vpack.c.bf16 %v2119_v51, %v2118_v63  ;;  %v2037_v63 = vadd.f32 %v5009_v22, %v2036_v46  ;;  %v2027_v46 = vadd.f32 %v5009_v22, %v5050_v28  ;;  %v5981_v28 = vld [vmem:[#allocation94_spill] sm:$0xff] }
 0x441   :  { %2270 = vmatmul.bf16.gmra.mxu1 %v5976_v10  ;;  %2528 = vmatmul.bf16.gmra.mxu3 %v5977_v58  ;;  %v2034_v58 = vadd.f32 %v5009_v22, %v5071_v53 }
 0x442   :  { %2659 = vmatpush.bf16.msra.mxu0 %v2151_v36  ;;  %2399 = vmatmul.bf16.gmra.mxu2 %v5978_v59  ;;  %v2149_v36 = vpack.c.bf16 %v2115_v49, %v2114_v20  ;;  %v2032_v59 = vadd.f32 %v5009_v22, %v5065_v13  ;;  %v2112_v10 = vmax.f32 %v2037_v63, 0.0  ;;  %v2109_v13 = vmax.f32 %v2029_v47, 0.0 }
 0x443   :  { %v2111_v38 = vmax.f32 %v2034_v58, 0.0  ;;  %v2108_v49 = vmax.f32 %v2027_v46, 0.0  ;;  %v2107_v63 = vmax.f32 %v2024_v23, 0.0  ;;  %v2106_v58 = vmax.f32 %v2022_v41, 0.0  ;;  %v5984_v46 = vld [vmem:[#allocation104_spill] sm:$0xff] }
 0x444   :  { %v5131_v11 = vpop.f32.mrf.mxu2  ;;  %v2148_v40 = vpack.c.bf16 %v2113_v45, %v2112_v10  ;;  %v2110_v51 = vmax.f32 %v2032_v59, 0.0 }
 0x445   :  { %v2146_v20 = vpack.c.bf16 %v2109_v13, %v2108_v49  ;;  %v2145_v59 = vpack.c.bf16 %v2107_v63, %v2106_v58  ;;  %v5989_v63 = vld [vmem:[#allocation18_spill] sm:$0xff] }
 0x446   :  { %2660 = vmatpush.bf16.msra.mxu0 %v2150_v31  ;;  %v5134_v62 = vpop.f32.mrf.mxu1  ;;  %v2147_v15 = vpack.c.bf16 %v2111_v38, %v2110_v51  ;;  %v2019_v31 = vadd.f32 %v5009_v22, %v5029_v8  ;;  %v5982_v8 = vld [vmem:[#allocation62_spill] sm:$0xff]  ;;  %v5985_v22 = vld [vmem:[#allocation16_spill] sm:$0xff] }
 0x44a   :  { %2661 = vmatpush.bf16.msra.mxu0 %v2149_v36  ;;  %v2105_v36 = vmax.f32 %v2019_v31, 0.0  ;;  %v5986_v31 = vld [vmem:[#allocation67_spill] sm:$0xff] }
 0x44c   :  { %v5146_v53 = vpop.f32.mrf.mxu2  ;;  %v2144_v47 = vpack.c.bf16 %v2105_v36, %v2104_v21  ;;  %v2338_v36 = vadd.f32 %v5073_v43, %v4964_v57  ;;  %v2341_v57 = vadd.f32 %v5080_v35, %v4969_v3  ;;  %v5996_v3 = vld [vmem:[#allocation110_spill] sm:$0xff] }
 0x44d   :  { %v5997_v35 = vld [vmem:[#allocation22_spill] sm:$0xff] }
 0x44e   :  { %2662 = vmatpush.bf16.msra.mxu0 %v2148_v40  ;;  %v5144_v52 = vpop.f32.mrf.mxu1  ;;  %v5983_v40 = vld [vmem:[#allocation33_spill] sm:$0xff] }
 0x451   :  { %2275 = vmatmul.bf16.gmra.mxu1 %v5979_v19  ;;  %2533 = vmatmul.bf16.gmra.mxu3 %v5980_v6  ;;  %v2333_v19 = vadd.f32 %v5058_v30, %v4952_v1 }
 0x452   :  { %2663 = vmatpush.bf16.msra.mxu0 %v2147_v15  ;;  %2404 = vmatmul.bf16.gmra.mxu2 %v5981_v28 }
 0x454   :  { %v5161_v10 = vpop.f32.mrf.mxu2 }
 0x456   :  { %2664 = vmatpush.bf16.msra.mxu0 %v2146_v20  ;;  %v5159_v45 = vpop.f32.mrf.mxu1  ;;  %v2336_v20 = vadd.f32 %v5067_v60, %v4957_v61  ;;  %v4060_v61 = vld [vmem:[#allocation8 + $0x30] sm:$0xff] }
 0x457   :  { %2929 = vmatpush.bf16.msra.mxu1 %v4060_v61 }
 0x45a   :  { %2665 = vmatpush.bf16.msra.mxu0 %v2145_v59 }
 0x45c   :  { %v5171_v51 = vpop.f32.mrf.mxu2 }
 0x45e   :  { %2666 = vmatpush.bf16.msra.mxu0 %v2144_v47  ;;  %v5163_v38 = vpop.f32.mrf.mxu1 }
 0x461   :  { %2667 = vmatmul.bf16.vlgmr.msra.gmra.mxu0 %v5982_v8  ;;  %2280 = vmatmul.bf16.gmra.mxu1 %v5983_v40  ;;  %v5990_v8 = vld [vmem:[#allocation73_spill] sm:$0xff]  ;;  %v5991_v40 = vld [vmem:[#allocation39_spill] sm:$0xff] }
 0x462   :  { %2538 = vmatmul.bf16.gmra.mxu3 %v5984_v46  ;;  %2409 = vmatmul.bf16.gmra.mxu2 %v5985_v22  ;;  %v5992_v46 = vld [vmem:[#allocation108_spill] sm:$0xff] }
 0x463   :  { %v5993_v22 = vld [vmem:[#allocation20_spill] sm:$0xff] }
 0x464   :  { %v2499_v23 = vpop.f32.mrf.mxu3 }
 0x465   :  { %v5173_v13 = vadd.f32 %v2499_v23, %v2331_v56  ;;  %v5181_v49 = vpop.f32.mrf.mxu2 }
 0x466   :  { %v5175_v15 = vpop.f32.mrf.mxu1 }
 0x46c   :  { %v2501_v6 = vpop.f32.mrf.mxu3 }
 0x46d   :  { %v5179_v41 = vadd.f32 %v2501_v6, %v2333_v19  ;;  %v5195_v58 = vpop.f32.mrf.mxu2  ;;  %v2343_v19 = vadd.f32 %v5084_v48, %v4978_v14 }
 0x46e   :  { %v5183_v28 = vpop.f32.mrf.mxu1 }
 0x471   :  { %2672 = vmatmul.bf16.gmra.mxu0 %v5986_v31  ;;  %2285 = vmatmul.bf16.gmra.mxu1 %v5987_v5 }
 0x472   :  { %2543 = vmatmul.bf16.gmra.mxu3 %v5988_v27  ;;  %2414 = vmatmul.bf16.gmra.mxu2 %v5989_v63  ;;  %v5994_v63 = vld [vmem:[#allocation79_spill] sm:$0xff] }
 0x474   :  { %v2504_v50 = vpop.f32.mrf.mxu3 }
 0x475   :  { %v5191_v1 = vadd.f32 %v2504_v50, %v2336_v20  ;;  %v5205_v60 = vpop.f32.mrf.mxu2  ;;  %v5995_v20 = vld [vmem:[#allocation42_spill] sm:$0xff]  ;;  %v2346_v50 = vadd.f32 %v5091_v0, %v4983_v33  ;;  %v5999_v33 = vld [vmem:[#allocation45_spill] sm:$0xff]  ;;  %v6000_v0 = vld [vmem:[#allocation112_spill] sm:$0xff] }
 0x476   :  { %v5193_v30 = vpop.f32.mrf.mxu1 }
 0x47c   :  { %v2506_v59 = vpop.f32.mrf.mxu3 }
 0x47d   :  { %v5199_v21 = vadd.f32 %v2506_v59, %v2338_v36  ;;  %v5217_v6 = vpop.f32.mrf.mxu2 }
 0x47e   :  { %v5201_v47 = vpop.f32.mrf.mxu1 }
 0x481   :  { %2677 = vmatmul.bf16.gmra.mxu0 %v5990_v8  ;;  %2290 = vmatmul.bf16.gmra.mxu1 %v5991_v40  ;;  %v2348_v8 = vadd.f32 %v5095_v39, %v4988_v55 }
 0x482   :  { %2548 = vmatmul.bf16.gmra.mxu3 %v5992_v46  ;;  %2419 = vmatmul.bf16.gmra.mxu2 %v5993_v22 }
 0x484   :  { %v2509_v43 = vpop.f32.mrf.mxu3 }
 0x485   :  { %v5211_v56 = vadd.f32 %v2509_v43, %v2341_v57  ;;  %v5231_v48 = vpop.f32.mrf.mxu2  ;;  %v5998_v57 = vld [vmem:[#allocation85_spill] sm:$0xff]  ;;  %v6001_v43 = vld [vmem:[#allocation24_spill] sm:$0xff] }
 0x486   :  { %v5213_v23 = vpop.f32.mrf.mxu1 }
 0x48c   :  { %v2511_v31 = vpop.f32.mrf.mxu3 }
 0x48d   :  { %v5219_v5 = vadd.f32 %v2511_v31, %v2343_v19  ;;  %v5241_v22 = vpop.f32.mrf.mxu2  ;;  %v2351_v19 = vadd.f32 %v5102_v24, %v4991_v26  ;;  %v4059_v26 = vld [vmem:[#allocation8 + $0x28] sm:$0xff]  ;;  %v6004_v24 = vld [vmem:[#allocation114_spill] sm:$0xff] }
 0x48e   :  { %v5221_v27 = vpop.f32.mrf.mxu1  ;;  %2930 = vmatpush.bf16.msra.mxu1 %v4059_v26  ;;  %v6007_v26 = vld [vmem:[#allocation53_spill] sm:$0xff] }
 0x491   :  { %2682 = vmatmul.bf16.gmra.mxu0 %v5994_v63  ;;  %2295 = vmatmul.bf16.gmra.mxu1 %v5995_v20  ;;  %v2353_v20 = vadd.f32 %v5106_v7, %v4996_v44 }
 0x492   :  { %2553 = vmatmul.bf16.gmra.mxu3 %v5996_v3  ;;  %2424 = vmatmul.bf16.gmra.mxu2 %v5997_v35 }
 0x494   :  { %v2514_v36 = vpop.f32.mrf.mxu3 }
 0x495   :  { %v5229_v14 = vadd.f32 %v2514_v36, %v2346_v50  ;;  %v5253_v63 = vpop.f32.mrf.mxu2  ;;  %v6002_v36 = vld [vmem:[#allocation91_spill] sm:$0xff] }
 0x496   :  { %v5233_v59 = vpop.f32.mrf.mxu1 }
 0x49c   :  { %v2516_v40 = vpop.f32.mrf.mxu3 }
 0x49d   :  { %v5237_v61 = vadd.f32 %v2516_v40, %v2348_v8  ;;  %v6003_v8 = vld [vmem:[#allocation49_spill] sm:$0xff]  ;;  %v6005_v40 = vld [vmem:[#allocation26_spill] sm:$0xff]  ;;  %v5267_v7 = vpop.f32.mrf.mxu2 }
 0x49e   :  { %v5239_v46 = vpop.f32.mrf.mxu1 }
 0x4a1   :  { %2687 = vmatmul.bf16.gmra.mxu0 %v5998_v57  ;;  %2300 = vmatmul.bf16.gmra.mxu1 %v5999_v33  ;;  %v4058_v57 = vld [vmem:[#allocation8 + $0x20] sm:$0xff]  ;;  %v2356_v33 = vadd.f32 %v5113_v16, %v4999_v54  ;;  %v4056_v54 = vld [vmem:[#allocation8 + $0x10] sm:$0xff] }
 0x4a2   :  { %2558 = vmatmul.bf16.gmra.mxu3 %v6000_v0  ;;  %2429 = vmatmul.bf16.gmra.mxu2 %v6001_v43  ;;  %v6006_v16 = vld [vmem:[#allocation97_spill] sm:$0xff] }
 0x4a3   :  { %2931 = vmatpush.bf16.msra.mxu1 %v4058_v57  ;;  %v2361_v57 = vadd.f32 %v5131_v11, %v5015_v34  ;;  %v6012_v11 = vld [vmem:[#allocation101_spill] sm:$0xff] }
 0x4a4   :  { %v2519_v31 = vpop.f32.mrf.mxu3  ;;  %v6013_v34 = vld [vmem:[#allocation57_spill] sm:$0xff] }
 0x4a5   :  { %v5249_v39 = vadd.f32 %v2519_v31, %v2351_v19  ;;  %v4057_v19 = vld [vmem:[#allocation8 + $0x18] sm:$0xff]  ;;  %v2358_v31 = vadd.f32 %v5120_v32, %v5004_v2  ;;  %v6009_v32 = vld [vmem:[#allocation28_spill] sm:$0xff] }
 0x4a6   :  { %v5251_v55 = vpop.f32.mrf.mxu1 }
 0x4a7   :  { %2932 = vmatpush.bf16.msra.mxu1 %v4057_v19  ;;  %v4054_v19 = vld [vmem:[#allocation8] sm:$0xff] }
 0x4ab   :  { %2933 = vmatpush.bf16.msra.mxu1 %v4056_v54 }
 0x4ac   :  { %v2521_v3 = vpop.f32.mrf.mxu3 }
 0x4ad   :  { %v5257_v35 = vadd.f32 %v2521_v3, %v2353_v20 }
 0x4ae   :  { %v5259_v50 = vpop.f32.mrf.mxu1 }
 0x4b1   :  { %2692 = vmatmul.bf16.gmra.mxu0 %v6002_v36  ;;  %2305 = vmatmul.bf16.gmra.mxu1 %v6003_v8  ;;  %v5277_v36 = vpop.f32.mrf.mxu2 }
 0x4b2   :  { %2563 = vmatmul.bf16.gmra.mxu3 %v6004_v24  ;;  %2434 = vmatmul.bf16.gmra.mxu2 %v6005_v40  ;;  %v4055_v24 = vld [vmem:[#allocation8 + $0x8] sm:$0xff] }
 0x4b3   :  { %v6008_v40 = vld [vmem:[#allocation116_spill] sm:$0xff]  ;;  %2934 = vmatpush.bf16.msra.mxu1 %v4055_v24  ;;  %v2366_v24 = vadd.f32 %v5161_v10, %v5031_v25  ;;  %v6020_v10 = vld [vmem:[#allocation34_spill] sm:$0xff] }
 0x4b4   :  { %v2524_v44 = vpop.f32.mrf.mxu3  ;;  %v6019_v25 = vld [vmem:[#allocation120_spill] sm:$0xff] }
 0x4b5   :  { %v5269_v0 = vadd.f32 %v2524_v44, %v2356_v33 }
 0x4b6   :  { %v5271_v43 = vpop.f32.mrf.mxu1 }
 0x4b7   :  { %2935 = vmatpush.bf16.msra.mxu1 %v4054_v19  ;;  %v2368_v19 = vadd.f32 %v5171_v51, %v5039_v17 }
 0x4bc   :  { %v2526_v20 = vpop.f32.mrf.mxu3 }
 0x4bd   :  { %v5275_v3 = vadd.f32 %v2526_v20, %v2358_v31  ;;  %v5291_v31 = vpop.f32.mrf.mxu2  ;;  %v2363_v20 = vadd.f32 %v5146_v53, %v5027_v18 }
 0x4be   :  { %v5279_v8 = vpop.f32.mrf.mxu1 }
 0x4c1   :  { %2697 = vmatmul.bf16.gmra.mxu0 %v6006_v16  ;;  %2310 = vmatmul.bf16.gmra.mxu1 %v6007_v26 }
 0x4c2   :  { %2568 = vmatmul.bf16.gmra.mxu3 %v6008_v40  ;;  %2439 = vmatmul.bf16.gmra.mxu2 %v6009_v32  ;;  %v6015_v32 = vld [vmem:[#allocation31_spill] sm:$0xff] }
 0x4c4   :  { %v2529_v2 = vpop.f32.mrf.mxu3 }
 0x4c5   :  { %v5287_v33 = vadd.f32 %v2529_v2, %v2361_v57  ;;  %v5301_v40 = vpop.f32.mrf.mxu2  ;;  %v6014_v57 = vld [vmem:[#allocation118_spill] sm:$0xff] }
 0x4c6   :  { %v5289_v44 = vpop.f32.mrf.mxu1 }
 0x4c7   :  { %6010 = vst [vmem:[#allocation29_spill] sm:$0xff] %v5289_v44 }
 0x4cc   :  { %v2531_v54 = vpop.f32.mrf.mxu3 }
 0x4cd   :  { %v5295_v16 = vadd.f32 %v2531_v54, %v2363_v20  ;;  %v5313_v20 = vpop.f32.mrf.mxu2 }
 0x4ce   :  { %v5297_v26 = vpop.f32.mrf.mxu1 }
 0x4cf   :  { %6011 = vst [vmem:[#allocation80_spill] sm:$0xff] %v5297_v26  ;;  %v6018_v26 = vld [vmem:[#allocation105_spill] sm:$0xff] }
 0x4d1   :  { %2702 = vmatmul.bf16.gmra.mxu0 %v6012_v11  ;;  %2315 = vmatmul.bf16.gmra.mxu1 %v6013_v34 }
 0x4d2   :  { %2573 = vmatmul.bf16.gmra.mxu3 %v6014_v57  ;;  %2444 = vmatmul.bf16.gmra.mxu2 %v6015_v32 }
 0x4d4   :  { %v2534_v2 = vpop.f32.mrf.mxu3 }
 0x4d5   :  { %v5307_v18 = vadd.f32 %v2534_v2, %v2366_v24  ;;  %v2371_v24 = vadd.f32 %v5181_v49, %v5045_v12  ;;  %v5324_v2 = vpop.f32.mrf.mxu2 }
 0x4d6   :  { %v5309_v53 = vpop.f32.mrf.mxu1 }
 0x4d7   :  { %6016 = vst [vmem:[#allocation83_spill] sm:$0xff] %v5309_v53 }
 0x4dc   :  { %v2536_v54 = vpop.f32.mrf.mxu3 }
 0x4dd   :  { %v5315_v11 = vadd.f32 %v2536_v54, %v2368_v19  ;;  %v5338_v44 = vpop.f32.mrf.mxu2 }
 0x4de   :  { %v2668_v34 = vpop.f32.mrf.mxu0  ;;  %v5317_v57 = vpop.f32.mrf.mxu1 }
 0x4df   :  { %6017 = vst [vmem:[#allocation59_spill] sm:$0xff] %v5317_v57  ;;  %v2669_v54 = vadd.f32 %v2668_v34, %v5173_v13  ;;  %v6024_v13 = vld [vmem:[#allocation37_spill] sm:$0xff] }
 0x4e1   :  { %2707 = vmatmul.bf16.gmra.mxu0 %v6018_v26 }
 0x4e2   :  { %2578 = vmatmul.bf16.gmra.mxu3 %v6019_v25  ;;  %2449 = vmatmul.bf16.gmra.mxu2 %v6020_v10  ;;  %v2373_v25 = vadd.f32 %v5195_v58, %v5054_v9 }
 0x4e5   :  { %v2539_v32 = vpop.f32.mrf.mxu3 }
 0x4e6   :  { %v2670_v17 = vpop.f32.mrf.mxu0  ;;  %v5326_v51 = vpop.f32.mrf.mxu1  ;;  %v5328_v19 = vadd.f32 %v2539_v32, %v2371_v24  ;;  %v6023_v24 = vld [vmem:[#allocation122_spill] sm:$0xff] }
 0x4e7   :  { %6021 = vst [vmem:[#allocation32_spill] sm:$0xff] %v5326_v51  ;;  %v2671_v57 = vadd.f32 %v2670_v17, %v5179_v41  ;;  %v6022_v51 = vld [vmem:[#allocation107_spill] sm:$0xff]  ;;  %v2376_v41 = vadd.f32 %v5205_v60, %v5060_v37 }
 0x4e9   :  { %v2828_v26 = vpack.c.bf16 %v2671_v57, %v2669_v54 }
 0x4eb   :  { %2936 = vmatmul.bf16.vlgmr.msra.gmra.mxu1 %v2828_v26  ;;  %v5351_v26 = vpop.f32.mrf.mxu2 }
 0x4ed   :  { %v2541_v10 = vpop.f32.mrf.mxu3 }
 0x4ee   :  { %v2673_v53 = vpop.f32.mrf.mxu0  ;;  %v5334_v12 = vpop.f32.mrf.mxu1  ;;  %v5336_v49 = vadd.f32 %v2541_v10, %v2373_v25 }
 0x4ef   :  { %v2674_v32 = vadd.f32 %v2673_v53, %v5191_v1  ;;  %v2381_v53 = vadd.f32 %v5231_v48, %v5075_v4 }
 0x4f1   :  { %2712 = vmatmul.bf16.gmra.mxu0 %v6022_v51  ;;  %v2378_v51 = vadd.f32 %v5217_v6, %v5069_v29 }
 0x4f2   :  { %2583 = vmatmul.bf16.gmra.mxu3 %v6023_v24  ;;  %2454 = vmatmul.bf16.gmra.mxu2 %v6024_v13  ;;  %v6025_v24 = vld [vmem:[#allocation109_spill] sm:$0xff] }
 0x4f3   :  { %v5361_v1 = vpop.f32.mrf.mxu2 }
 0x4f5   :  { %v2544_v34 = vpop.f32.mrf.mxu3 }
 0x4f6   :  { %v2675_v57 = vpop.f32.mrf.mxu0  ;;  %v5345_v9 = vpop.f32.mrf.mxu1  ;;  %v5347_v58 = vadd.f32 %v2544_v34, %v2376_v41 }
 0x4f7   :  { %v2676_v17 = vadd.f32 %v2675_v57, %v5199_v21  ;;  %v6026_v21 = vld [vmem:[#allocation40_spill] sm:$0xff] }
 0x4f9   :  { %v2829_v54 = vpack.c.bf16 %v2676_v17, %v2674_v32 }
 0x4fb   :  { %2941 = vmatmul.bf16.gmra.mxu1 %v2829_v54 }
 0x4fd   :  { %v2546_v25 = vpop.f32.mrf.mxu3 }
 0x4fe   :  { %v2678_v10 = vpop.f32.mrf.mxu0  ;;  %v5355_v37 = vpop.f32.mrf.mxu1  ;;  %v5357_v60 = vadd.f32 %v2546_v25, %v2378_v51 }
 0x4ff   :  { %v2679_v34 = vadd.f32 %v2678_v10, %v5211_v56  ;;  %v5374_v51 = vpop.f32.mrf.mxu2  ;;  %v6030_v56 = vld [vmem:[#allocation43_spill] sm:$0xff] }
 0x501   :  { %2717 = vmatmul.bf16.gmra.mxu0 %v6025_v24  ;;  %v6028_v24 = vld [vmem:[#allocation111_spill] sm:$0xff] }
 0x502   :  { %2588 = vmatmul.bf16.gmra.mxu3 %v4745_v42  ;;  %2459 = vmatmul.bf16.gmra.mxu2 %v6026_v21  ;;  %v6027_v42 = vld [vmem:[#allocation65_spill] sm:$0xff] }
 0x503   :  { %v2383_v17 = vadd.f32 %v5241_v22, %v6027_v42  ;;  %v6029_v21 = vld [vmem:[#allocation125_spill] sm:$0xff] }
 0x505   :  { %v2549_v13 = vpop.f32.mrf.mxu3 }
 0x506   :  { %v2680_v41 = vpop.f32.mrf.mxu0  ;;  %v5366_v29 = vpop.f32.mrf.mxu1  ;;  %v5368_v6 = vadd.f32 %v2549_v13, %v2381_v53 }
 0x507   :  { %v2681_v57 = vadd.f32 %v2680_v41, %v5219_v5  ;;  %v6031_v5 = vld [vmem:[#allocation47_spill] sm:$0xff] }
 0x508   :  { %v2386_v10 = vadd.f32 %v5253_v63, %v6031_v5  ;;  %v6034_v5 = vld [vmem:[#allocation113_spill] sm:$0xff] }
 0x509   :  { %v2830_v32 = vpack.c.bf16 %v2681_v57, %v2679_v34 }
 0x50b   :  { %2946 = vmatmul.bf16.gmra.mxu1 %v2830_v32  ;;  %v5391_v32 = vpop.f32.mrf.mxu2 }
 0x50d   :  { %v2551_v54 = vpop.f32.mrf.mxu3 }
 0x50e   :  { %v2683_v25 = vpop.f32.mrf.mxu0  ;;  %v5376_v4 = vpop.f32.mrf.mxu1  ;;  %v5378_v48 = vadd.f32 %v2551_v54, %v2383_v17  ;;  %v6032_v17 = vld [vmem:[#allocation68_spill] sm:$0xff] }
 0x50f   :  { %v2684_v34 = vadd.f32 %v2683_v25, %v5229_v14  ;;  %v2388_v54 = vadd.f32 %v5267_v7, %v6032_v17  ;;  %v6035_v14 = vld [vmem:[#allocation127_spill] sm:$0xff] }
 0x510   :  { %v6037_v25 = vld [vmem:[#allocation71_spill] sm:$0xff] }
 0x511   :  { %2722 = vmatmul.bf16.gmra.mxu0 %v6028_v24 }
 0x512   :  { %2593 = vmatmul.bf16.gmra.mxu3 %v6029_v21  ;;  %2464 = vmatmul.bf16.gmra.mxu2 %v6030_v56 }
 0x515   :  { %v2554_v53 = vpop.f32.mrf.mxu3 }
 0x516   :  { %v2685_v13 = vpop.f32.mrf.mxu0  ;;  %v5385_v22 = vpop.f32.mrf.mxu1  ;;  %v5387_v41 = vadd.f32 %v2554_v53, %v2386_v10  ;;  %v2391_v53 = vadd.f32 %v5277_v36, %v6037_v25 }
 0x517   :  { %v2686_v57 = vadd.f32 %v2685_v13, %v5237_v61  ;;  %v5400_v10 = vpop.f32.mrf.mxu2  ;;  %v6036_v61 = vld [vmem:[#allocation46_spill] sm:$0xff] }
 0x519   :  { %v2831_v42 = vpack.c.bf16 %v2686_v57, %v2684_v34 }
 0x51b   :  { %2951 = vmatmul.bf16.gmra.mxu1 %v2831_v42 }
 0x51d   :  { %v2556_v24 = vpop.f32.mrf.mxu3 }
 0x51e   :  { %v2688_v21 = vpop.f32.mrf.mxu0  ;;  %v5395_v63 = vpop.f32.mrf.mxu1  ;;  %v5397_v56 = vadd.f32 %v2556_v24, %v2388_v54 }
 0x51f   :  { %6033 = vst [vmem:[#allocation86_spill] sm:$0xff] %v5395_v63  ;;  %v2689_v42 = vadd.f32 %v2688_v21, %v5249_v39  ;;  %v5412_v24 = vpop.f32.mrf.mxu2  ;;  %v6043_v39 = vld [vmem:[#allocation50_spill] sm:$0xff] }
 0x521   :  { %2727 = vmatmul.bf16.gmra.mxu0 %v6034_v5  ;;  %v6039_v5 = vld [vmem:[#allocation51_spill] sm:$0xff] }
 0x522   :  { %2598 = vmatmul.bf16.gmra.mxu3 %v6035_v14  ;;  %2469 = vmatmul.bf16.gmra.mxu2 %v6036_v61  ;;  %v2393_v14 = vadd.f32 %v5291_v31, %v6039_v5 }
 0x525   :  { %v2559_v13 = vpop.f32.mrf.mxu3 }
 0x526   :  { %v2690_v34 = vpop.f32.mrf.mxu0  ;;  %v5406_v7 = vpop.f32.mrf.mxu1  ;;  %v5408_v57 = vadd.f32 %v2559_v13, %v2391_v53  ;;  %v6042_v53 = vld [vmem:[#allocation129_spill] sm:$0xff] }
 0x527   :  { %6038 = vst [vmem:[#allocation89_spill] sm:$0xff] %v5406_v7  ;;  %v2691_v17 = vadd.f32 %v2690_v34, %v5257_v35  ;;  %v6041_v7 = vld [vmem:[#allocation115_spill] sm:$0xff]  ;;  %v6044_v35 = vld [vmem:[#allocation74_spill] sm:$0xff]  ;;  %v5425_v34 = vpop.f32.mrf.mxu2 }
 0x528   :  { %v2396_v21 = vadd.f32 %v5301_v40, %v6044_v35 }
 0x529   :  { %v2832_v54 = vpack.c.bf16 %v2691_v17, %v2689_v42 }
 0x52b   :  { %2956 = vmatmul.bf16.gmra.mxu1 %v2832_v54 }
 0x52d   :  { %v2561_v61 = vpop.f32.mrf.mxu3 }
 0x52e   :  { %v2693_v63 = vpop.f32.mrf.mxu0  ;;  %v5416_v36 = vpop.f32.mrf.mxu1  ;;  %v5418_v25 = vadd.f32 %v2561_v61, %v2393_v14  ;;  %v6045_v14 = vld [vmem:[#allocation77_spill] sm:$0xff] }
 0x52f   :  { %6040 = vst [vmem:[#allocation63_spill] sm:$0xff] %v5416_v36  ;;  %v2694_v17 = vadd.f32 %v2693_v63, %v5269_v0  ;;  %v2398_v61 = vadd.f32 %v5313_v20, %v6045_v14  ;;  %v5437_v35 = vpop.f32.mrf.mxu2  ;;  %v6046_v36 = vld [vmem:[#allocation117_spill] sm:$0xff]  ;;  %v6047_v0 = vld [vmem:[#allocation131_spill] sm:$0xff] }
 0x530   :  { %v6049_v63 = vld [vmem:[#allocation55_spill] sm:$0xff] }
 0x531   :  { %2732 = vmatmul.bf16.gmra.mxu0 %v6041_v7 }
 0x532   :  { %2603 = vmatmul.bf16.gmra.mxu3 %v6042_v53  ;;  %2474 = vmatmul.bf16.gmra.mxu2 %v6043_v39 }
 0x535   :  { %v2564_v13 = vpop.f32.mrf.mxu3 }
 0x536   :  { %v2695_v42 = vpop.f32.mrf.mxu0  ;;  %v5427_v31 = vadd.f32 %v2564_v13, %v2396_v21  ;;  %v5431_v5 = vpop.f32.mrf.mxu1  ;;  %v2401_v13 = vadd.f32 %v5324_v2, %v6049_v63  ;;  %v6050_v63 = vld [vmem:[#allocation119_spill] sm:$0xff] }
 0x537   :  { %v2696_v54 = vadd.f32 %v2695_v42, %v5275_v3  ;;  %v6048_v3 = vld [vmem:[#allocation54_spill] sm:$0xff] }
 0x539   :  { %v2833_v7 = vpack.c.bf16 %v2696_v54, %v2694_v17 }
 0x53b   :  { %2961 = vmatmul.bf16.gmra.mxu1 %v2833_v7 }
 0x53d   :  { %v2566_v53 = vpop.f32.mrf.mxu3 }
 0x53e   :  { %v2698_v39 = vpop.f32.mrf.mxu0  ;;  %v5435_v40 = vadd.f32 %v2566_v53, %v2398_v61  ;;  %v5440_v21 = vpop.f32.mrf.mxu1  ;;  %v2403_v53 = vadd.f32 %v5338_v44, %v5134_v62 }
 0x53f   :  { %v2699_v54 = vadd.f32 %v2698_v39, %v5287_v33  ;;  %v5450_v61 = vpop.f32.mrf.mxu2  ;;  %v2406_v39 = vadd.f32 %v5351_v26, %v5144_v52  ;;  %v6053_v26 = vld [vmem:[#allocation121_spill] sm:$0xff] }
 0x541   :  { %2737 = vmatmul.bf16.gmra.mxu0 %v6046_v36 }
 0x542   :  { %2608 = vmatmul.bf16.gmra.mxu3 %v6047_v0  ;;  %2479 = vmatmul.bf16.gmra.mxu2 %v6048_v3 }
 0x545   :  { %v2569_v42 = vpop.f32.mrf.mxu3 }
 0x546   :  { %v2700_v17 = vpop.f32.mrf.mxu0  ;;  %v5446_v20 = vadd.f32 %v2569_v42, %v2401_v13  ;;  %v5452_v36 = vpop.f32.mrf.mxu1  ;;  %v6051_v13 = vld [vmem:[#allocation133_spill] sm:$0xff] }
 0x547   :  { %v2701_v7 = vadd.f32 %v2700_v17, %v5295_v16  ;;  %v5460_v33 = vpop.f32.mrf.mxu2  ;;  %v6052_v16 = vld [vmem:[#allocation58_spill] sm:$0xff] }
 0x549   :  { %v2834_v14 = vpack.c.bf16 %v2701_v7, %v2699_v54 }
 0x54b   :  { %2966 = vmatmul.bf16.gmra.mxu1 %v2834_v14 }
 0x54d   :  { %v2571_v0 = vpop.f32.mrf.mxu3 }
 0x54e   :  { %v2703_v3 = vpop.f32.mrf.mxu0  ;;  %v5456_v2 = vadd.f32 %v2571_v0, %v2403_v53  ;;  %v5465_v54 = vpop.f32.mrf.mxu1  ;;  %v2408_v53 = vadd.f32 %v5361_v1, %v5159_v45 }
 0x54f   :  { %v2704_v44 = vadd.f32 %v2703_v3, %v5307_v18  ;;  %v2411_v18 = vadd.f32 %v5374_v51, %v5163_v38  ;;  %v2413_v38 = vadd.f32 %v5391_v32, %v5175_v15 }
 0x551   :  { %2742 = vmatmul.bf16.gmra.mxu0 %v6050_v63 }
 0x552   :  { %2613 = vmatmul.bf16.gmra.mxu3 %v6051_v13  ;;  %2484 = vmatmul.bf16.gmra.mxu2 %v6052_v16  ;;  %v6054_v16 = vld [vmem:[#allocation135_spill] sm:$0xff] }
 0x555   :  { %v2574_v42 = vpop.f32.mrf.mxu3 }
 0x556   :  { %v2705_v17 = vpop.f32.mrf.mxu0  ;;  %v5467_v62 = vadd.f32 %v2574_v42, %v2406_v39  ;;  %v5475_v52 = vpop.f32.mrf.mxu1 }
 0x557   :  { %v2706_v7 = vadd.f32 %v2705_v17, %v5315_v11  ;;  %v5484_v11 = vld [vmem:[%s5658_s5] ss:$0 sm:$0xff]  ;;  %s4228_s5 = smov [#allocation10]  }
 0x558   :  { %s3165_s22 = sshll.u32 %s4228_s5, 4  ;;  %s3166_s22 = int_to_ptr.vmem [resolvable:$true] %s3165_s22 }
 0x559   :  { %v2835_v14 = vpack.c.bf16 %v2706_v7, %v2704_v44 }
 0x55b   :  { %2971 = vmatmul.bf16.gmra.mxu1 %v2835_v14 }
 0x55d   :  { %v2576_v0 = vpop.f32.mrf.mxu3 }
 0x55e   :  { %v2708_v63 = vpop.f32.mrf.mxu0  ;;  %v5473_v13 = vadd.f32 %v2576_v0, %v2408_v53 }
 0x55f   :  { %v2709_v39 = vadd.f32 %v2708_v63, %v5328_v19  ;;  %v6056_v19 = vld [vmem:[#allocation137_spill] sm:$0xff] }
 0x561   :  { %2747 = vmatmul.bf16.gmra.mxu0 %v6053_v26 }
 0x562   :  { %2618 = vmatmul.bf16.gmra.mxu3 %v6054_v16  ;;  %v6055_v16 = vld [vmem:[#allocation123_spill] sm:$0xff] }
 0x565   :  { %v2579_v3 = vpop.f32.mrf.mxu3 }
 0x566   :  { %v2710_v45 = vpop.f32.mrf.mxu0  ;;  %v5486_v1 = vadd.f32 %v2579_v3, %v2411_v18 }
 0x567   :  { %v2711_v42 = vadd.f32 %v2710_v45, %v5336_v49  ;;  %v2416_v49 = vadd.f32 %v5400_v10, %v5183_v28 }
 0x568   :  { %v2937_v17 = vpop.f32.mrf.mxu1 }
 0x569   :  { %v2836_v44 = vpack.c.bf16 %v2711_v42, %v2709_v39  ;;  %v2938_v7 = vadd.f32 %v5484_v11, %v2937_v17  ;;  %v2418_v17 = vadd.f32 %v5412_v24, %v5193_v30 }
 0x56b   :  { %3097 = vst [vmem:[#allocation10] sm:$0xff] %v2938_v7  ;;  %2976 = vmatmul.bf16.gmra.mxu1 %v2836_v44 }
 0x56d   :  { %v2581_v51 = vpop.f32.mrf.mxu3 }
 0x56e   :  { %v2713_v14 = vpop.f32.mrf.mxu0  ;;  %v5493_v53 = vadd.f32 %v2581_v51, %v2413_v38  ;;  %v6057_v51 = vld [vmem:[#allocation124_spill] sm:$0xff] }
 0x56f   :  { %v2714_v15 = vadd.f32 %v2713_v14, %v5347_v58  ;;  %v6058_v58 = vld [vmem:[#allocation139_spill] sm:$0xff] }
 0x570   :  { %v2939_v0 = vpop.f32.mrf.mxu1 }
 0x571   :  { %v2940_v26 = vadd.f32 %v5484_v11, %v2939_v0  ;;  %2752 = vmatmul.bf16.gmra.mxu0 %v6055_v16 }
 0x572   :  { %2623 = vmatmul.bf16.gmra.mxu3 %v6056_v19 }
 0x573   :  { %3098 = vst [vmem:[#allocation10 + $0x8] sm:$0xff] %v2940_v26 }
 0x575   :  { %v2584_v63 = vpop.f32.mrf.mxu3 }
 0x576   :  { %v2715_v18 = vpop.f32.mrf.mxu0  ;;  %v5500_v3 = vadd.f32 %v2584_v63, %v2416_v49  ;;  %v2423_v63 = vadd.f32 %v5437_v35, %v5213_v23 }
 0x577   :  { %v2716_v32 = vadd.f32 %v2715_v18, %v5357_v60  ;;  %v2421_v60 = vadd.f32 %v5425_v34, %v5201_v47 }
 0x578   :  { %v2942_v45 = vpop.f32.mrf.mxu1 }
 0x579   :  { %v2837_v39 = vpack.c.bf16 %v2716_v32, %v2714_v15  ;;  %v2943_v42 = vadd.f32 %v5484_v11, %v2942_v45  ;;  %v6059_v45 = vld [vmem:[#allocation126_spill] sm:$0xff] }
 0x57b   :  { %3099 = vst [vmem:[#allocation10 + $0x10] sm:$0xff] %v2943_v42  ;;  %2981 = vmatmul.bf16.gmra.mxu1 %v2837_v39 }
 0x57d   :  { %v2586_v44 = vpop.f32.mrf.mxu3 }
 0x57e   :  { %v2718_v7 = vpop.f32.mrf.mxu0  ;;  %v5507_v28 = vadd.f32 %v2586_v44, %v2418_v17 }
 0x57f   :  { %v2719_v30 = vadd.f32 %v2718_v7, %v5368_v6  ;;  %v6060_v6 = vld [vmem:[#allocation141_spill] sm:$0xff] }
 0x580   :  { %v2944_v10 = vpop.f32.mrf.mxu1 }
 0x581   :  { %v2945_v38 = vadd.f32 %v5484_v11, %v2944_v10  ;;  %2757 = vmatmul.bf16.gmra.mxu0 %v6057_v51 }
 0x582   :  { %2628 = vmatmul.bf16.gmra.mxu3 %v6058_v58 }
 0x583   :  { %3100 = vst [vmem:[#allocation10 + $0x18] sm:$0xff] %v2945_v38  ;;  %v2428_v38 = vadd.f32 %v5460_v33, %v5233_v59 }
 0x585   :  { %v2589_v14 = vpop.f32.mrf.mxu3 }
 0x586   :  { %v2720_v0 = vpop.f32.mrf.mxu0  ;;  %v5514_v26 = vadd.f32 %v2589_v14, %v2421_v60  ;;  %v6061_v14 = vld [vmem:[#allocation128_spill] sm:$0xff] }
 0x587   :  { %v2721_v24 = vadd.f32 %v2720_v0, %v5378_v48  ;;  %v2426_v48 = vadd.f32 %v5450_v61, %v5221_v27 }
 0x588   :  { %v2947_v16 = vpop.f32.mrf.mxu1 }
 0x589   :  { %v2838_v19 = vpack.c.bf16 %v2721_v24, %v2719_v30  ;;  %v2948_v49 = vadd.f32 %v5484_v11, %v2947_v16 }
 0x58b   :  { %3101 = vst [vmem:[#allocation10 + $0x20] sm:$0xff] %v2948_v49  ;;  %2986 = vmatmul.bf16.gmra.mxu1 %v2838_v19 }
 0x58d   :  { %v2591_v18 = vpop.f32.mrf.mxu3 }
 0x58e   :  { %v2723_v15 = vpop.f32.mrf.mxu0  ;;  %v5521_v47 = vadd.f32 %v2591_v18, %v2423_v63  ;;  %v6063_v63 = vld [vmem:[#allocation130_spill] sm:$0xff]  ;;  %v6064_v18 = vld [vmem:[#allocation145_spill] sm:$0xff] }
 0x58f   :  { %v2724_v23 = vadd.f32 %v2723_v15, %v5387_v41  ;;  %v6062_v41 = vld [vmem:[#allocation143_spill] sm:$0xff] }
 0x590   :  { %v2949_v34 = vpop.f32.mrf.mxu1 }
 0x591   :  { %v2950_v32 = vadd.f32 %v5484_v11, %v2949_v34  ;;  %2762 = vmatmul.bf16.gmra.mxu0 %v6059_v45 }
 0x592   :  { %2633 = vmatmul.bf16.gmra.mxu3 %v6060_v6 }
 0x593   :  { %3102 = vst [vmem:[#allocation10 + $0x28] sm:$0xff] %v2950_v32 }
 0x595   :  { %v2594_v39 = vpop.f32.mrf.mxu3 }
 0x596   :  { %v2725_v42 = vpop.f32.mrf.mxu0  ;;  %v5528_v17 = vadd.f32 %v2594_v39, %v2426_v48 }
 0x597   :  { %v2726_v35 = vadd.f32 %v2725_v42, %v5397_v56  ;;  %v6065_v42 = vld [vmem:[#allocation132_spill] sm:$0xff] }
 0x598   :  { %v2952_v44 = vpop.f32.mrf.mxu1 }
 0x599   :  { %v2839_v7 = vpack.c.bf16 %v2726_v35, %v2724_v23  ;;  %v2953_v10 = vadd.f32 %v5484_v11, %v2952_v44  ;;  %v6066_v23 = vld [vmem:[#allocation147_spill] sm:$0xff] }
 0x59b   :  { %3103 = vst [vmem:[#allocation10 + $0x30] sm:$0xff] %v2953_v10  ;;  %2991 = vmatmul.bf16.gmra.mxu1 %v2839_v7 }
 0x59d   :  { %v2596_v51 = vpop.f32.mrf.mxu3 }
 0x59e   :  { %v2728_v58 = vpop.f32.mrf.mxu0  ;;  %v5535_v27 = vadd.f32 %v2596_v51, %v2428_v38 }
 0x59f   :  { %v2729_v0 = vadd.f32 %v2728_v58, %v5408_v57 }
 0x5a0   :  { %v2954_v61 = vpop.f32.mrf.mxu1 }
 0x5a1   :  { %v2955_v60 = vadd.f32 %v5484_v11, %v2954_v61  ;;  %2767 = vmatmul.bf16.gmra.mxu0 %v6061_v14  ;;  %v6067_v61 = vld [vmem:[#allocation134_spill] sm:$0xff] }
 0x5a2   :  { %2638 = vmatmul.bf16.gmra.mxu3 %v6062_v41 }
 0x5a3   :  { %3104 = vst [vmem:[#allocation10 + $0x38] sm:$0xff] %v2955_v60  ;;  %v6068_v60 = vld [vmem:[#allocation149_spill] sm:$0xff] }
 0x5a6   :  { %v2730_v56 = vpop.f32.mrf.mxu0 }
 0x5a7   :  { %v2731_v30 = vadd.f32 %v2730_v56, %v5418_v25 }
 0x5a8   :  { %v2957_v24 = vpop.f32.mrf.mxu1 }
 0x5a9   :  { %v2840_v16 = vpack.c.bf16 %v2731_v30, %v2729_v0  ;;  %v2958_v59 = vadd.f32 %v5484_v11, %v2957_v24 }
 0x5ab   :  { %3105 = vst [vmem:[#allocation10 + $0x40] sm:$0xff] %v2958_v59  ;;  %2996 = vmatmul.bf16.gmra.mxu1 %v2840_v16  ;;  %v6069_v59 = vld [vmem:[#allocation136_spill] sm:$0xff] }
 0x5ae   :  { %v2733_v33 = vpop.f32.mrf.mxu0 }
 0x5af   :  { %v2734_v57 = vadd.f32 %v2733_v33, %v5427_v31 }
 0x5b0   :  { %v2959_v19 = vpop.f32.mrf.mxu1 }
 0x5b1   :  { %v2960_v49 = vadd.f32 %v5484_v11, %v2959_v19  ;;  %2772 = vmatmul.bf16.gmra.mxu0 %v6063_v63 }
 0x5b2   :  { %2643 = vmatmul.bf16.gmra.mxu3 %v6064_v18  ;;  %v2430_v18 = vpop.f32.mrf.mxu2 }
 0x5b3   :  { %3106 = vst [vmem:[#allocation10 + $0x48] sm:$0xff] %v2960_v49 }
 0x5b6   :  { %v2735_v15 = vpop.f32.mrf.mxu0 }
 0x5b7   :  { %v2736_v25 = vadd.f32 %v2735_v15, %v5435_v40  ;;  %v2599_v15 = vpop.f32.mrf.mxu3 }
 0x5b8   :  { %v2962_v34 = vpop.f32.mrf.mxu1 }
 0x5b9   :  { %v2841_v32 = vpack.c.bf16 %v2736_v25, %v2734_v57  ;;  %v2963_v45 = vadd.f32 %v5484_v11, %v2962_v34 }
 0x5bb   :  { %3107 = vst [vmem:[#allocation10 + $0x50] sm:$0xff] %v2963_v45  ;;  %3001 = vmatmul.bf16.gmra.mxu1 %v2841_v32  ;;  %v6070_v32 = vld [vmem:[#allocation138_spill] sm:$0xff]  ;;  %v2432_v45 = vpop.f32.mrf.mxu2 }
 0x5be   :  { %v2738_v6 = vpop.f32.mrf.mxu0 }
 0x5bf   :  { %v2739_v31 = vadd.f32 %v2738_v6, %v5446_v20 }
 0x5c0   :  { %v2964_v48 = vpop.f32.mrf.mxu1 }
 0x5c1   :  { %v2965_v39 = vadd.f32 %v5484_v11, %v2964_v48  ;;  %2777 = vmatmul.bf16.gmra.mxu0 %v6065_v42 }
 0x5c2   :  { %2648 = vmatmul.bf16.gmra.mxu3 %v6066_v23 }
 0x5c3   :  { %3108 = vst [vmem:[#allocation10 + $0x58] sm:$0xff] %v2965_v39 }
 0x5c6   :  { %v2740_v35 = vpop.f32.mrf.mxu0 }
 0x5c7   :  { %v2741_v40 = vadd.f32 %v2740_v35, %v5456_v2 }
 0x5c8   :  { %v2967_v44 = vpop.f32.mrf.mxu1 }
 0x5c9   :  { %v2842_v7 = vpack.c.bf16 %v2741_v40, %v2739_v31  ;;  %v2968_v10 = vadd.f32 %v5484_v11, %v2967_v44  ;;  %v2435_v31 = vpop.f32.mrf.mxu2 }
 0x5cb   :  { %3109 = vst [vmem:[#allocation10 + $0x60] sm:$0xff] %v2968_v10  ;;  %3006 = vmatmul.bf16.gmra.mxu1 %v2842_v7  ;;  %v6071_v10 = vld [vmem:[#allocation140_spill] sm:$0xff] }
 0x5ce   :  { %v2743_v38 = vpop.f32.mrf.mxu0 }
 0x5cf   :  { %v2744_v20 = vadd.f32 %v2743_v38, %v5467_v62 }
 0x5d0   :  { %v2969_v51 = vpop.f32.mrf.mxu1 }
 0x5d1   :  { %v2970_v58 = vadd.f32 %v5484_v11, %v2969_v51  ;;  %2782 = vmatmul.bf16.gmra.mxu0 %v6067_v61 }
 0x5d2   :  { %2653 = vmatmul.bf16.gmra.mxu3 %v6068_v60 }
 0x5d3   :  { %3110 = vst [vmem:[#allocation10 + $0x68] sm:$0xff] %v2970_v58  ;;  %v2437_v58 = vpop.f32.mrf.mxu2 }
 0x5d6   :  { %v2745_v14 = vpop.f32.mrf.mxu0 }
 0x5d7   :  { %v2746_v2 = vadd.f32 %v2745_v14, %v5473_v13 }
 0x5d8   :  { %v2972_v41 = vpop.f32.mrf.mxu1 }
 0x5d9   :  { %v2843_v56 = vpack.c.bf16 %v2746_v2, %v2744_v20  ;;  %v2973_v0 = vadd.f32 %v5484_v11, %v2972_v41 }
 0x5db   :  { %3111 = vst [vmem:[#allocation10 + $0x70] sm:$0xff] %v2973_v0  ;;  %3011 = vmatmul.bf16.gmra.mxu1 %v2843_v56  ;;  %v6072_v56 = vld [vmem:[#allocation142_spill] sm:$0xff]  ;;  %v2440_v0 = vpop.f32.mrf.mxu2 }
 0x5de   :  { %v2748_v30 = vpop.f32.mrf.mxu0 }
 0x5df   :  { %v2749_v19 = vadd.f32 %v2748_v30, %v5486_v1  ;;  %v2601_v1 = vpop.f32.mrf.mxu3 }
 0x5e0   :  { %v2974_v24 = vpop.f32.mrf.mxu1 }
 0x5e1   :  { %v2975_v16 = vadd.f32 %v5484_v11, %v2974_v24  ;;  %2787 = vmatmul.bf16.gmra.mxu0 %v6069_v59 }
 0x5e3   :  { %3112 = vst [vmem:[#allocation10 + $0x78] sm:$0xff] %v2975_v16 }
 0x5e6   :  { %v2750_v33 = vpop.f32.mrf.mxu0 }
 0x5e7   :  { %v2751_v62 = vadd.f32 %v2750_v33, %v5493_v53  ;;  %v2604_v44 = vpop.f32.mrf.mxu3 }
 0x5e8   :  { %v2977_v49 = vpop.f32.mrf.mxu1 }
 0x5e9   :  { %v2844_v13 = vpack.c.bf16 %v2751_v62, %v2749_v19  ;;  %v2978_v63 = vadd.f32 %v5484_v11, %v2977_v49  ;;  %v2442_v19 = vpop.f32.mrf.mxu2 }
 0x5eb   :  { %3113 = vst [vmem:[#allocation10 + $0x80] sm:$0xff] %v2978_v63  ;;  %3016 = vmatmul.bf16.gmra.mxu1 %v2844_v13 }
 0x5ee   :  { %v2753_v57 = vpop.f32.mrf.mxu0 }
 0x5ef   :  { %v2754_v53 = vadd.f32 %v2753_v57, %v5500_v3  ;;  %v2606_v14 = vpop.f32.mrf.mxu3  ;;  %v6073_v57 = vld [vmem:[#allocation144_spill] sm:$0xff] }
 0x5f0   :  { %v2979_v25 = vpop.f32.mrf.mxu1 }
 0x5f1   :  { %v2980_v34 = vadd.f32 %v5484_v11, %v2979_v25  ;;  %2792 = vmatmul.bf16.gmra.mxu0 %v6070_v32  ;;  %v2431_v25 = vadd.f32 %v2430_v18, %v5239_v46  ;;  %v6074_v18 = vld [vmem:[#allocation146_spill] sm:$0xff] }
 0x5f3   :  { %3114 = vst [vmem:[#allocation10 + $0x88] sm:$0xff] %v2980_v34 }
 0x5f6   :  { %v2755_v6 = vpop.f32.mrf.mxu0 }
 0x5f7   :  { %v2756_v48 = vadd.f32 %v2755_v6, %v5507_v28  ;;  %v2609_v30 = vpop.f32.mrf.mxu3  ;;  %v2445_v6 = vpop.f32.mrf.mxu2 }
 0x5f8   :  { %v2982_v39 = vpop.f32.mrf.mxu1 }
 0x5f9   :  { %v2845_v42 = vpack.c.bf16 %v2756_v48, %v2754_v53  ;;  %v2983_v23 = vadd.f32 %v5484_v11, %v2982_v39 }
 0x5fb   :  { %3115 = vst [vmem:[#allocation10 + $0x90] sm:$0xff] %v2983_v23  ;;  %3021 = vmatmul.bf16.gmra.mxu1 %v2845_v42 }
 0x5fe   :  { %v2758_v35 = vpop.f32.mrf.mxu0 }
 0x5ff   :  { %v2759_v3 = vadd.f32 %v2758_v35, %v5514_v26  ;;  %v2611_v49 = vpop.f32.mrf.mxu3 }
 0x600   :  { %v2984_v40 = vpop.f32.mrf.mxu1 }
 0x601   :  { %v2985_v7 = vadd.f32 %v5484_v11, %v2984_v40  ;;  %2797 = vmatmul.bf16.gmra.mxu0 %v6071_v10  ;;  %v2447_v10 = vpop.f32.mrf.mxu2 }
 0x603   :  { %3116 = vst [vmem:[#allocation10 + $0x98] sm:$0xff] %v2985_v7 }
 0x606   :  { %v2760_v38 = vpop.f32.mrf.mxu0 }
 0x607   :  { %v2761_v28 = vadd.f32 %v2760_v38, %v5521_v47  ;;  %v2614_v42 = vpop.f32.mrf.mxu3 }
 0x608   :  { %v2987_v51 = vpop.f32.mrf.mxu1 }
 0x609   :  { %v2846_v61 = vpack.c.bf16 %v2761_v28, %v2759_v3  ;;  %v2988_v60 = vadd.f32 %v5484_v11, %v2987_v51 }
 0x60b   :  { %3117 = vst [vmem:[#allocation10 + $0xa0] sm:$0xff] %v2988_v60  ;;  %3026 = vmatmul.bf16.gmra.mxu1 %v2846_v61 }
 0x60e   :  { %v2763_v20 = vpop.f32.mrf.mxu0 }
 0x60f   :  { %v2764_v47 = vadd.f32 %v2763_v20, %v5528_v17  ;;  %v2433_v17 = vadd.f32 %v2432_v45, %v5251_v55  ;;  %v2616_v55 = vpop.f32.mrf.mxu3  ;;  %v2438_v45 = vadd.f32 %v2437_v58, %v5271_v43  ;;  %v2441_v43 = vadd.f32 %v2440_v0, %v5279_v8 }
 0x610   :  { %v2989_v2 = vpop.f32.mrf.mxu1 }
 0x611   :  { %v2990_v41 = vadd.f32 %v5484_v11, %v2989_v2  ;;  %2802 = vmatmul.bf16.gmra.mxu0 %v6072_v56  ;;  %v2602_v34 = vadd.f32 %v2601_v1, %v2433_v17  ;;  %v2607_v38 = vadd.f32 %v2606_v14, %v2438_v45  ;;  %v2450_v2 = vpop.f32.mrf.mxu2 }
 0x613   :  { %3118 = vst [vmem:[#allocation10 + $0xa8] sm:$0xff] %v2990_v41 }
 0x616   :  { %v2765_v26 = vpop.f32.mrf.mxu0 }
 0x617   :  { %v2766_v24 = vadd.f32 %v2765_v26, %v5535_v27  ;;  %v2600_v27 = vadd.f32 %v2599_v15, %v2431_v25  ;;  %v2436_v15 = vadd.f32 %v2435_v31, %v5259_v50  ;;  %v2619_v41 = vpop.f32.mrf.mxu3  ;;  %v6075_v31 = vld [vmem:[#allocation148_spill] sm:$0xff] }
 0x618   :  { %v2992_v16 = vpop.f32.mrf.mxu1 }
 0x619   :  { %v2847_v59 = vpack.c.bf16 %v2766_v24, %v2764_v47  ;;  %v2993_v33 = vadd.f32 %v5484_v11, %v2992_v16  ;;  %v2605_v1 = vadd.f32 %v2604_v44, %v2436_v15  ;;  %v6076_v44 = vld [vmem:[#allocation29_spill] sm:$0xff]  ;;  %v2452_v14 = vpop.f32.mrf.mxu2  ;;  %v2610_v47 = vadd.f32 %v2609_v30, %v2441_v43  ;;  %v6078_v30 = vld [vmem:[#allocation80_spill] sm:$0xff] }
 0x61a   :  { %v2443_v58 = vadd.f32 %v2442_v19, %v6076_v44  ;;  %v6077_v19 = vld [vmem:[#allocation150_spill] sm:$0xff] }
 0x61b   :  { %3119 = vst [vmem:[#allocation10 + $0xb0] sm:$0xff] %v2993_v33  ;;  %3031 = vmatmul.bf16.gmra.mxu1 %v2847_v59 }
 0x61c   :  { %v2612_v24 = vadd.f32 %v2611_v49, %v2443_v58  ;;  %v2446_v49 = vadd.f32 %v2445_v6, %v6078_v30 }
 0x61e   :  { %v2768_v62 = vpop.f32.mrf.mxu0 }
 0x61f   :  { %v2769_v53 = vadd.f32 %v2768_v62, %v2600_v27  ;;  %v2621_v59 = vpop.f32.mrf.mxu3 }
 0x620   :  { %v2994_v13 = vpop.f32.mrf.mxu1 }
 0x621   :  { %v2995_v63 = vadd.f32 %v5484_v11, %v2994_v13  ;;  %2807 = vmatmul.bf16.gmra.mxu0 %v6073_v57  ;;  %v2455_v17 = vpop.f32.mrf.mxu2 }
 0x623   :  { %3120 = vst [vmem:[#allocation10 + $0xb8] sm:$0xff] %v2995_v63 }
 0x626   :  { %v2770_v32 = vpop.f32.mrf.mxu0 }
 0x627   :  { %v2771_v48 = vadd.f32 %v2770_v32, %v2602_v34  ;;  %v2624_v8 = vpop.f32.mrf.mxu3  ;;  %v6079_v34 = vld [vmem:[#allocation83_spill] sm:$0xff] }
 0x628   :  { %v2997_v39 = vpop.f32.mrf.mxu1  ;;  %v2448_v32 = vadd.f32 %v2447_v10, %v6079_v34 }
 0x629   :  { %v2848_v23 = vpack.c.bf16 %v2771_v48, %v2769_v53  ;;  %v2998_v35 = vadd.f32 %v5484_v11, %v2997_v39  ;;  %v2615_v53 = vadd.f32 %v2614_v42, %v2446_v49  ;;  %v6081_v42 = vld [vmem:[#allocation32_spill] sm:$0xff] }
 0x62a   :  { %v2617_v48 = vadd.f32 %v2616_v55, %v2448_v32  ;;  %v2453_v55 = vadd.f32 %v2452_v14, %v6081_v42  ;;  %v2456_v14 = vadd.f32 %v2455_v17, %v5334_v12 }
 0x62b   :  { %3121 = vst [vmem:[#allocation10 + $0xc0] sm:$0xff] %v2998_v35  ;;  %3036 = vmatmul.bf16.gmra.mxu1 %v2848_v23 }
 0x62e   :  { %v2773_v40 = vpop.f32.mrf.mxu0 }
 0x62f   :  { %v2774_v28 = vadd.f32 %v2773_v40, %v2605_v1  ;;  %v2626_v15 = vpop.f32.mrf.mxu3 }
 0x630   :  { %v2999_v7 = vpop.f32.mrf.mxu1 }
 0x631   :  { %v3000_v46 = vadd.f32 %v5484_v11, %v2999_v7  ;;  %2812 = vmatmul.bf16.gmra.mxu0 %v6074_v18  ;;  %v2457_v7 = vpop.f32.mrf.mxu2 }
 0x633   :  { %3122 = vst [vmem:[#allocation10 + $0xc8] sm:$0xff] %v3000_v46 }
 0x636   :  { %v2775_v3 = vpop.f32.mrf.mxu0 }
 0x637   :  { %v2776_v51 = vadd.f32 %v2775_v3, %v2607_v38  ;;  %v6080_v3 = vld [vmem:[#allocation59_spill] sm:$0xff] }
 0x638   :  { %v3002_v61 = vpop.f32.mrf.mxu1  ;;  %v2451_v10 = vadd.f32 %v2450_v2, %v6080_v3 }
 0x639   :  { %v2849_v60 = vpack.c.bf16 %v2776_v51, %v2774_v28  ;;  %v3003_v20 = vadd.f32 %v5484_v11, %v3002_v61  ;;  %v2460_v38 = vpop.f32.mrf.mxu2  ;;  %v2629_v28 = vpop.f32.mrf.mxu3  ;;  %v2622_v61 = vadd.f32 %v2621_v59, %v2453_v55 }
 0x63a   :  { %v2620_v51 = vadd.f32 %v2619_v41, %v2451_v10  ;;  %v2458_v41 = vadd.f32 %v2457_v7, %v5345_v9  ;;  %v2461_v9 = vadd.f32 %v2460_v38, %v5355_v37 }
 0x63b   :  { %3123 = vst [vmem:[#allocation10 + $0xd0] sm:$0xff] %v3003_v20  ;;  %3041 = vmatmul.bf16.gmra.mxu1 %v2849_v60 }
 0x63c   :  { %v2630_v49 = vadd.f32 %v2629_v28, %v2461_v9 }
 0x63e   :  { %v2778_v56 = vpop.f32.mrf.mxu0 }
 0x63f   :  { %v2779_v33 = vadd.f32 %v2778_v56, %v2610_v47 }
 0x640   :  { %v3004_v26 = vpop.f32.mrf.mxu1 }
 0x641   :  { %v3005_v50 = vadd.f32 %v5484_v11, %v3004_v26  ;;  %2817 = vmatmul.bf16.gmra.mxu0 %v6075_v31  ;;  %v2462_v43 = vpop.f32.mrf.mxu2  ;;  %v2631_v58 = vpop.f32.mrf.mxu3 }
 0x643   :  { %3124 = vst [vmem:[#allocation10 + $0xd8] sm:$0xff] %v3005_v50 }
 0x646   :  { %v2780_v16 = vpop.f32.mrf.mxu0 }
 0x647   :  { %v2781_v62 = vadd.f32 %v2780_v16, %v2612_v24  ;;  %v2625_v24 = vadd.f32 %v2624_v8, %v2456_v14  ;;  %v2627_v16 = vadd.f32 %v2626_v15, %v2458_v41  ;;  %v2463_v8 = vadd.f32 %v2462_v43, %v5366_v29 }
 0x648   :  { %v3007_v13 = vpop.f32.mrf.mxu1 }
 0x649   :  { %v2850_v63 = vpack.c.bf16 %v2781_v62, %v2779_v33  ;;  %v3008_v57 = vadd.f32 %v5484_v11, %v3007_v13  ;;  %v2465_v33 = vpop.f32.mrf.mxu2  ;;  %v2632_v34 = vadd.f32 %v2631_v58, %v2463_v8 }
 0x64a   :  { %v2466_v15 = vadd.f32 %v2465_v33, %v5376_v4 }
 0x64b   :  { %3125 = vst [vmem:[#allocation10 + $0xe0] sm:$0xff] %v3008_v57  ;;  %3046 = vmatmul.bf16.gmra.mxu1 %v2850_v63  ;;  %v2634_v57 = vpop.f32.mrf.mxu3 }
 0x64e   :  { %v2783_v25 = vpop.f32.mrf.mxu0 }
 0x64f   :  { %v2784_v23 = vadd.f32 %v2783_v25, %v2615_v53 }
 0x650   :  { %v3009_v27 = vpop.f32.mrf.mxu1 }
 0x651   :  { %v3010_v0 = vadd.f32 %v5484_v11, %v3009_v27  ;;  %2822 = vmatmul.bf16.gmra.mxu0 %v6077_v19  ;;  %v2467_v30 = vpop.f32.mrf.mxu2 }
 0x652   :  { %v2468_v29 = vadd.f32 %v2467_v30, %v5385_v22  ;;  %v6082_v22 = vld [vmem:[#allocation86_spill] sm:$0xff] }
 0x653   :  { %3126 = vst [vmem:[#allocation10 + $0xe8] sm:$0xff] %v3010_v0  ;;  %v2636_v17 = vpop.f32.mrf.mxu3 }
 0x656   :  { %v2785_v39 = vpop.f32.mrf.mxu0 }
 0x657   :  { %v2786_v35 = vadd.f32 %v2785_v39, %v2617_v48 }
 0x658   :  { %v3012_v40 = vpop.f32.mrf.mxu1 }
 0x659   :  { %v2851_v46 = vpack.c.bf16 %v2786_v35, %v2784_v23  ;;  %v3013_v18 = vadd.f32 %v5484_v11, %v3012_v40  ;;  %v2470_v40 = vpop.f32.mrf.mxu2 }
 0x65b   :  { %3127 = vst [vmem:[#allocation10 + $0xf0] sm:$0xff] %v3013_v18  ;;  %3051 = vmatmul.bf16.gmra.mxu1 %v2851_v46  ;;  %v2639_v7 = vpop.f32.mrf.mxu3 }
 0x65e   :  { %v2788_v45 = vpop.f32.mrf.mxu0 }
 0x65f   :  { %v2789_v20 = vadd.f32 %v2788_v45, %v2620_v51 }
 0x660   :  { %v3014_v1 = vpop.f32.mrf.mxu1 }
 0x661   :  { %v3015_v6 = vadd.f32 %v5484_v11, %v3014_v1  ;;  %v2472_v45 = vpop.f32.mrf.mxu2  ;;  %v2635_v1 = vadd.f32 %v2634_v57, %v2466_v15  ;;  %v6084_v57 = vld [vmem:[#allocation63_spill] sm:$0xff] }
 0x663   :  { %3128 = vst [vmem:[#allocation10 + $0xf8] sm:$0xff] %v3015_v6  ;;  %v2637_v6 = vadd.f32 %v2636_v17, %v2468_v29  ;;  %v2641_v3 = vpop.f32.mrf.mxu3 }
 0x666   :  { %v2790_v60 = vpop.f32.mrf.mxu0 }
 0x667   :  { %v2791_v56 = vadd.f32 %v2790_v60, %v2622_v61 }
 0x668   :  { %v3017_v26 = vpop.f32.mrf.mxu1 }
 0x669   :  { %v2852_v50 = vpack.c.bf16 %v2791_v56, %v2789_v20  ;;  %v3018_v31 = vadd.f32 %v5484_v11, %v3017_v26  ;;  %v2475_v60 = vpop.f32.mrf.mxu2  ;;  %v2471_v26 = vadd.f32 %v2470_v40, %v6082_v22 }
 0x66b   :  { %3129 = vst [vmem:[#allocation10 + $0x100] sm:$0xff] %v3018_v31  ;;  %3056 = vmatmul.bf16.gmra.mxu1 %v2852_v50  ;;  %v2644_v4 = vpop.f32.mrf.mxu3  ;;  %v6083_v50 = vld [vmem:[#allocation89_spill] sm:$0xff]  ;;  %v2640_v43 = vadd.f32 %v2639_v7, %v2471_v26 }
 0x66c   :  { %v2473_v31 = vadd.f32 %v2472_v45, %v6083_v50 }
 0x66e   :  { %v2793_v44 = vpop.f32.mrf.mxu0 }
 0x66f   :  { %v2794_v62 = vadd.f32 %v2793_v44, %v2625_v24  ;;  %v2642_v44 = vadd.f32 %v2641_v3, %v2473_v31 }
 0x670   :  { %v3019_v47 = vpop.f32.mrf.mxu1 }
 0x671   :  { %v3020_v2 = vadd.f32 %v5484_v11, %v3019_v47  ;;  %v2477_v41 = vpop.f32.mrf.mxu2 }
 0x673   :  { %3130 = vst [vmem:[#allocation10 + $0x108] sm:$0xff] %v3020_v2 }
 0x676   :  { %v2795_v59 = vpop.f32.mrf.mxu0 }
 0x677   :  { %v2796_v13 = vadd.f32 %v2795_v59, %v2627_v16  ;;  %v2646_v59 = vpop.f32.mrf.mxu3 }
 0x678   :  { %v3022_v63 = vpop.f32.mrf.mxu1 }
 0x679   :  { %v2853_v25 = vpack.c.bf16 %v2796_v13, %v2794_v62  ;;  %v3023_v27 = vadd.f32 %v5484_v11, %v3022_v63  ;;  %v2480_v63 = vpop.f32.mrf.mxu2 }
 0x67b   :  { %3131 = vst [vmem:[#allocation10 + $0x110] sm:$0xff] %v3023_v27  ;;  %3061 = vmatmul.bf16.gmra.mxu1 %v2853_v25  ;;  %v2476_v25 = vadd.f32 %v2475_v60, %v6084_v57  ;;  %v2478_v27 = vadd.f32 %v2477_v41, %v5431_v5  ;;  %v2481_v5 = vadd.f32 %v2480_v63, %v5440_v21 }
 0x67d   :  { %v2647_v30 = vadd.f32 %v2646_v59, %v2478_v27 }
 0x67e   :  { %v2798_v0 = vpop.f32.mrf.mxu0 }
 0x67f   :  { %v2799_v53 = vadd.f32 %v2798_v0, %v2630_v49  ;;  %v2649_v0 = vpop.f32.mrf.mxu3 }
 0x680   :  { %v3024_v19 = vpop.f32.mrf.mxu1  ;;  %v2650_v40 = vadd.f32 %v2649_v0, %v2481_v5 }
 0x681   :  { %v3025_v12 = vadd.f32 %v5484_v11, %v3024_v19  ;;  %v2645_v19 = vadd.f32 %v2644_v4, %v2476_v25 }
 0x683   :  { %3132 = vst [vmem:[#allocation10 + $0x118] sm:$0xff] %v3025_v12 }
 0x686   :  { %v2800_v32 = vpop.f32.mrf.mxu0 }
 0x687   :  { %v2801_v48 = vadd.f32 %v2800_v32, %v2632_v34  ;;  %v2482_v32 = vpop.f32.mrf.mxu2 }
 0x688   :  { %v3027_v39 = vpop.f32.mrf.mxu1 }
 0x689   :  { %v2854_v23 = vpack.c.bf16 %v2801_v48, %v2799_v53  ;;  %v3028_v35 = vadd.f32 %v5484_v11, %v3027_v39  ;;  %v2651_v48 = vpop.f32.mrf.mxu3 }
 0x68b   :  { %3133 = vst [vmem:[#allocation10 + $0x120] sm:$0xff] %v3028_v35  ;;  %3066 = vmatmul.bf16.gmra.mxu1 %v2854_v23  ;;  %v2483_v35 = vadd.f32 %v2482_v32, %v5452_v36 }
 0x68d   :  { %v2652_v7 = vadd.f32 %v2651_v48, %v2483_v35 }
 0x68e   :  { %v2803_v46 = vpop.f32.mrf.mxu0 }
 0x68f   :  { %v2804_v10 = vadd.f32 %v2803_v46, %v2635_v1 }
 0x690   :  { %v3029_v18 = vpop.f32.mrf.mxu1 }
 0x691   :  { %v3030_v37 = vadd.f32 %v5484_v11, %v3029_v18  ;;  %v2485_v18 = vpop.f32.mrf.mxu2  ;;  %v2654_v45 = vpop.f32.mrf.mxu3 }
 0x692   :  { %v2486_v36 = vadd.f32 %v2485_v18, %v5465_v54 }
 0x693   :  { %3134 = vst [vmem:[#allocation10 + $0x128] sm:$0xff] %v3030_v37 }
 0x696   :  { %v2805_v38 = vpop.f32.mrf.mxu0 }
 0x697   :  { %v2806_v42 = vadd.f32 %v2805_v38, %v2637_v6 }
 0x698   :  { %v3032_v55 = vpop.f32.mrf.mxu1 }
 0x699   :  { %v2855_v28 = vpack.c.bf16 %v2806_v42, %v2804_v10  ;;  %v3033_v51 = vadd.f32 %v5484_v11, %v3032_v55  ;;  %v2487_v10 = vpop.f32.mrf.mxu2  ;;  %v2656_v42 = vpop.f32.mrf.mxu3 }
 0x69a   :  { %v2488_v55 = vadd.f32 %v2487_v10, %v5475_v52 }
 0x69b   :  { %3135 = vst [vmem:[#allocation10 + $0x130] sm:$0xff] %v3033_v51  ;;  %3071 = vmatmul.bf16.gmra.mxu1 %v2855_v28  ;;  %v2655_v28 = vadd.f32 %v2654_v45, %v2486_v36 }
 0x69c   :  { %v2657_v51 = vadd.f32 %v2656_v42, %v2488_v55 }
 0x69e   :  { %v2808_v61 = vpop.f32.mrf.mxu0 }
 0x69f   :  { %v2809_v47 = vadd.f32 %v2808_v61, %v2640_v43 }
 0x6a0   :  { %v3034_v20 = vpop.f32.mrf.mxu1 }
 0x6a1   :  { %v3035_v56 = vadd.f32 %v5484_v11, %v3034_v20 }
 0x6a3   :  { %3136 = vst [vmem:[#allocation10 + $0x138] sm:$0xff] %v3035_v56 }
 0x6a6   :  { %v2810_v58 = vpop.f32.mrf.mxu0 }
 0x6a7   :  { %v2811_v2 = vadd.f32 %v2810_v58, %v2642_v44 }
 0x6a8   :  { %v3037_v14 = vpop.f32.mrf.mxu1 }
 0x6a9   :  { %v2856_v24 = vpack.c.bf16 %v2811_v2, %v2809_v47  ;;  %v3038_v16 = vadd.f32 %v5484_v11, %v3037_v14 }
 0x6ab   :  { %3137 = vst [vmem:[#allocation10 + $0x140] sm:$0xff] %v3038_v16  ;;  %3076 = vmatmul.bf16.gmra.mxu1 %v2856_v24 }
 0x6ae   :  { %v2813_v33 = vpop.f32.mrf.mxu0 }
 0x6af   :  { %v2814_v17 = vadd.f32 %v2813_v33, %v2645_v19 }
 0x6b0   :  { %v3039_v62 = vpop.f32.mrf.mxu1 }
 0x6b1   :  { %v3040_v13 = vadd.f32 %v5484_v11, %v3039_v62 }
 0x6b3   :  { %3138 = vst [vmem:[#allocation10 + $0x148] sm:$0xff] %v3040_v13 }
 0x6b6   :  { %v2815_v12 = vpop.f32.mrf.mxu0 }
 0x6b7   :  { %v2816_v9 = vadd.f32 %v2815_v12, %v2647_v30 }
 0x6b8   :  { %v3042_v8 = vpop.f32.mrf.mxu1 }
 0x6b9   :  { %v2857_v49 = vpack.c.bf16 %v2816_v9, %v2814_v17  ;;  %v3043_v34 = vadd.f32 %v5484_v11, %v3042_v8 }
 0x6bb   :  { %3139 = vst [vmem:[#allocation10 + $0x150] sm:$0xff] %v3043_v34  ;;  %3081 = vmatmul.bf16.gmra.mxu1 %v2857_v49 }
 0x6be   :  { %v2818_v53 = vpop.f32.mrf.mxu0 }
 0x6bf   :  { %v2819_v37 = vadd.f32 %v2818_v53, %v2650_v40 }
 0x6c0   :  { %v3044_v39 = vpop.f32.mrf.mxu1 }
 0x6c1   :  { %v3045_v23 = vadd.f32 %v5484_v11, %v3044_v39 }
 0x6c3   :  { %3140 = vst [vmem:[#allocation10 + $0x158] sm:$0xff] %v3045_v23 }
 0x6c6   :  { %v2820_v46 = vpop.f32.mrf.mxu0 }
 0x6c7   :  { %v2821_v15 = vadd.f32 %v2820_v46, %v2652_v7 }
 0x6c8   :  { %v3047_v29 = vpop.f32.mrf.mxu1 }
 0x6c9   :  { %v2858_v1 = vpack.c.bf16 %v2821_v15, %v2819_v37  ;;  %v3048_v6 = vadd.f32 %v5484_v11, %v3047_v29 }
 0x6cb   :  { %3141 = vst [vmem:[#allocation10 + $0x160] sm:$0xff] %v3048_v6  ;;  %3086 = vmatmul.bf16.gmra.mxu1 %v2858_v1 }
 0x6ce   :  { %v2823_v38 = vpop.f32.mrf.mxu0 }
 0x6cf   :  { %v2824_v60 = vadd.f32 %v2823_v38, %v2655_v28 }
 0x6d0   :  { %v3049_v3 = vpop.f32.mrf.mxu1 }
 0x6d1   :  { %v3050_v21 = vadd.f32 %v5484_v11, %v3049_v3 }
 0x6d3   :  { %3142 = vst [vmem:[#allocation10 + $0x168] sm:$0xff] %v3050_v21 }
 0x6d6   :  { %v2825_v61 = vpop.f32.mrf.mxu0 }
 0x6d7   :  { %v2826_v20 = vadd.f32 %v2825_v61, %v2657_v51 }
 0x6d8   :  { %v3052_v4 = vpop.f32.mrf.mxu1 }
 0x6d9   :  { %v2859_v56 = vpack.c.bf16 %v2826_v20, %v2824_v60  ;;  %v3053_v22 = vadd.f32 %v5484_v11, %v3052_v4 }
 0x6db   :  { %3143 = vst [vmem:[#allocation10 + $0x170] sm:$0xff] %v3053_v22  ;;  %3091 = vmatmul.bf16.gmra.mxu1 %v2859_v56 }
 0x6e0   :  { %v3054_v26 = vpop.f32.mrf.mxu1 }
 0x6e1   :  { %v3055_v50 = vadd.f32 %v5484_v11, %v3054_v26 }
 0x6e3   :  { %3144 = vst [vmem:[#allocation10 + $0x178] sm:$0xff] %v3055_v50 }
 0x6e8   :  { %v3057_v31 = vpop.f32.mrf.mxu1 }
 0x6e9   :  { %v3058_v54 = vadd.f32 %v5484_v11, %v3057_v31 }
 0x6eb   :  { %3145 = vst [vmem:[#allocation10 + $0x180] sm:$0xff] %v3058_v54 }
 0x6f0   :  { %v3059_v52 = vpop.f32.mrf.mxu1 }
 0x6f1   :  { %v3060_v43 = vadd.f32 %v5484_v11, %v3059_v52 }
 0x6f3   :  { %3146 = vst [vmem:[#allocation10 + $0x188] sm:$0xff] %v3060_v43 }
 0x6f8   :  { %v3062_v44 = vpop.f32.mrf.mxu1 }
 0x6f9   :  { %v3063_v58 = vadd.f32 %v5484_v11, %v3062_v44 }
 0x6fb   :  { %3147 = vst [vmem:[#allocation10 + $0x190] sm:$0xff] %v3063_v58 }
 0x700   :  { %v3064_v47 = vpop.f32.mrf.mxu1 }
 0x701   :  { %v3065_v2 = vadd.f32 %v5484_v11, %v3064_v47 }
 0x703   :  { %3148 = vst [vmem:[#allocation10 + $0x198] sm:$0xff] %v3065_v2 }
 0x708   :  { %v3067_v14 = vpop.f32.mrf.mxu1 }
 0x709   :  { %v3068_v41 = vadd.f32 %v5484_v11, %v3067_v14 }
 0x70b   :  { %3149 = vst [vmem:[#allocation10 + $0x1a0] sm:$0xff] %v3068_v41 }
 0x710   :  { %v3069_v24 = vpop.f32.mrf.mxu1 }
 0x711   :  { %v3070_v16 = vadd.f32 %v5484_v11, %v3069_v24 }
 0x713   :  { %3150 = vst [vmem:[#allocation10 + $0x1a8] sm:$0xff] %v3070_v16 }
 0x718   :  { %v3072_v59 = vpop.f32.mrf.mxu1 }
 0x719   :  { %v3073_v33 = vadd.f32 %v5484_v11, %v3072_v59 }
 0x71b   :  { %3151 = vst [vmem:[#allocation10 + $0x1b0] sm:$0xff] %v3073_v33 }
 0x720   :  { %v3074_v62 = vpop.f32.mrf.mxu1 }
 0x721   :  { %v3075_v13 = vadd.f32 %v5484_v11, %v3074_v62 }
 0x723   :  { %3152 = vst [vmem:[#allocation10 + $0x1b8] sm:$0xff] %v3075_v13 }
 0x728   :  { %v3077_v63 = vpop.f32.mrf.mxu1 }
 0x729   :  { %v3078_v57 = vadd.f32 %v5484_v11, %v3077_v63 }
 0x72b   :  { %3153 = vst [vmem:[#allocation10 + $0x1c0] sm:$0xff] %v3078_v57 }
 0x730   :  { %v3079_v25 = vpop.f32.mrf.mxu1 }
 0x731   :  { %v3080_v27 = vadd.f32 %v5484_v11, %v3079_v25 }
 0x733   :  { %3154 = vst [vmem:[#allocation10 + $0x1c8] sm:$0xff] %v3080_v27 }
 0x738   :  { %v3082_v0 = vpop.f32.mrf.mxu1 }
 0x739   :  { %v3083_v19 = vadd.f32 %v5484_v11, %v3082_v0 }
 0x73b   :  { %3155 = vst [vmem:[#allocation10 + $0x1d0] sm:$0xff] %v3083_v19 }
 0x740   :  { %v3084_v30 = vpop.f32.mrf.mxu1 }
 0x741   :  { %v3085_v12 = vadd.f32 %v5484_v11, %v3084_v30 }
 0x743   :  { %3156 = vst [vmem:[#allocation10 + $0x1d8] sm:$0xff] %v3085_v12 }
 0x748   :  { %v3087_v17 = vpop.f32.mrf.mxu1 }
 0x749   :  { %v3088_v9 = vadd.f32 %v5484_v11, %v3087_v17 }
 0x74b   :  { %3157 = vst [vmem:[#allocation10 + $0x1e0] sm:$0xff] %v3088_v9 }
 0x750   :  { %v3089_v8 = vpop.f32.mrf.mxu1 }
 0x751   :  { %v3090_v49 = vadd.f32 %v5484_v11, %v3089_v8 }
 0x753   :  { %3158 = vst [vmem:[#allocation10 + $0x1e8] sm:$0xff] %v3090_v49 }
 0x758   :  { %v3092_v34 = vpop.f32.mrf.mxu1 }
 0x759   :  { %v3093_v32 = vadd.f32 %v5484_v11, %v3092_v34 }
 0x75b   :  { %3159 = vst [vmem:[#allocation10 + $0x1f0] sm:$0xff] %v3093_v32 }
 0x760   :  { %v3094_v53 = vpop.f32.mrf.mxu1 }
 0x761   :  { %v3095_v48 = vadd.f32 %v5484_v11, %v3094_v53 }
 0x763   :  { %3160 = vst [vmem:[#allocation10 + $0x1f8] sm:$0xff] %v3095_v48 }
 0x764   :  { %3173 = dma.vmem_to_hbm [thread:$0]  %s3166_s22, 8192, %s3168_s25, [#allocation4], %s4229_s26, %s4229_s26, %s4230_s27  }
 0x765   :  { %4218 = dma.done.wait [#allocation4], 8192  }
 0x766   :  { %4219 = vsyncadd [#allocation4], 4294959104 }
 0x767   :  { %3178 = vsyncpa [#allocation3], 1 }
 0x768   :  { %3179 = vsyncpa [#allocation6], 1 }
 0x769   :  { %3180 = vsyncpa [#allocation9], 1 }
 0x76a   :  { %3181 = vsyncpa [#allocation4], 1 }

</bundles_post_ra>
